<compile_context>
chip_gen: v5e
topology: v5e:2x2
jax: 0.10.0
libtpu: 0.0.40
codegen_flags: <defaults>
</compile_context>

<pallas_src>
import jax
import jax.numpy as jnp
from jax.experimental import pallas as pl
from jax.experimental.pallas import tpu as pltpu

# ---- small-but-consistent hyperparameters (module defaults scaled down) ----
EMBEDDING_DIM = 32          # module: 100
HIDDEN = 64                 # module: 512
C_EXT = HIDDEN * 2          # channel_external_size (=128 -> one lane tile)
C_INT = HIDDEN              # channel_internal_size (=64)
LATENT = 32                 # module default
VOCAB = 128                 # module: len(itos)
NUM_DIL = 2                 # module default: 5  (conv blocks = 2 * NUM_DIL)
NB = 2 * NUM_DIL            # number of conv blocks
B = 2
T = 8                       # encoder/decoder sequence length
PAD_IDX = 0
CZ = C_EXT - EMBEDDING_DIM  # latent2channel output width (96)
PADL = 8                    # causal left-pad rows (>= 2*max_dilation; 8 = tile)
DILATIONS = tuple(2 ** i for i in list(range(NUM_DIL)) * 2)   # (1, 2, 1, 2)

H4 = 4 * HIDDEN
H8 = 8 * HIDDEN
BCI = B * C_INT             # 128 (packed internal lanes)
BCE = B * C_EXT             # 256 (packed external lanes)
BV = B * VOCAB              # 256


def _full(shape):
    """Whole-array VMEM block for a grid=(1,) call."""
    zeros = (0,) * len(shape)
    return pl.BlockSpec(shape, lambda i: zeros)


# ------------------------------ fused kernel -------------------------------

def _vae_kernel(enc_idx_ref, dec_cols_ref, eps_ref,
                embwih_ref, bias_ref, whh_ref,
                wmv_ref, bmv_ref, wl2c_ref, bl2c_ref,
                embdec_ref, w1_ref, b1_ref, w2_ref, b2_ref, w3_ref, b3_ref,
                wout_ref, bout_ref,
                logits_ref, kld_ref,
                g_sc, hpad_sc):
    H, L = HIDDEN, LATENT

    # ---- encoder embedding + hoisted LSTM input projection (fwd|bwd fused) ----
    # one-hot rows are padded to 8 sublanes per timestep so every per-step gate
    # read below starts at a tile boundary; padded rows carry index -1 -> zeros.
    vlane = jax.lax.broadcasted_iota(jnp.int32, (T * 8, VOCAB), 1)
    oh_enc = (enc_idx_ref[...] == vlane).astype(jnp.float32)        # [T*8, V]
    g_sc[...] = (jnp.dot(oh_enc, embwih_ref[...],
                         preferred_element_type=jnp.float32) + bias_ref[...])

    # ---- forward LSTM recurrence (only serial chain; all VMEM resident) ----
    whh = whh_ref[...]
    h = jnp.zeros((B, H), jnp.float32)
    c = jnp.zeros((B, H), jnp.float32)
    for t in range(T):                                              # static unroll
        g = g_sc[t * 8:t * 8 + B, 0:H4] + jnp.dot(
            h, whh, preferred_element_type=jnp.float32)
        i_g = jax.nn.sigmoid(g[:, 0:H])
        f_g = jax.nn.sigmoid(g[:, H:2 * H])
        g_g = jnp.tanh(g[:, 2 * H:3 * H])
        o_g = jax.nn.sigmoid(g[:, 3 * H:4 * H])
        c = f_g * c + i_g * g_g
        h = o_g * jnp.tanh(c)

    # ---- backward direction: states[:, -1, :] only needs ONE reverse step
    # (h0=c0=0, so Whh_b@h0==0); its gates were computed by the hoisted matmul.
    gb = g_sc[(T - 1) * 8:(T - 1) * 8 + B, H4:H8]
    i_b = jax.nn.sigmoid(gb[:, 0:H])
    g_b = jnp.tanh(gb[:, 2 * H:3 * H])
    o_b = jax.nn.sigmoid(gb[:, 3 * H:4 * H])
    h_b = o_b * jnp.tanh(i_b * g_b)

    # ---- mu/logvar (fused along N), reparametrize, KLD ----
    muvl = (jnp.dot(h, wmv_ref[0:H, :], preferred_element_type=jnp.float32)
            + jnp.dot(h_b, wmv_ref[H:2 * H, :], preferred_element_type=jnp.float32)
            + bmv_ref[...])                                         # [B, 2L]
    mu = muvl[:, 0:L]
    logvar = muvl[:, L:2 * L]
    z = mu + eps_ref[...] * jnp.exp(0.5 * logvar)                   # [B, L]
    kld_ref[...] = -0.5 * jnp.sum(logvar - mu * mu - jnp.exp(logvar) + 1.0,
                                  keepdims=True)

    # ---- latent2channel with per-batch lane placement -> flat [1, B*C_EXT] ----
    # weights are pre-placed at lanes [b*C_EXT+E, (b+1)*C_EXT), so the later
    # broadcast add forms cat([xx2, z_rep]) with no concat / reshape.
    zc = bl2c_ref[...]
    for b in range(B):
        zc = zc + jnp.dot(z[b:b + 1, :], wl2c_ref[b],
                          preferred_element_type=jnp.float32)
    zc = jnp.maximum(zc, 0.0)                                       # [1, BCE]

    # ---- decoder input: batch-packed one-hot embedding + latent channels ----
    jlane = jax.lax.broadcasted_iota(jnp.int32, (T, BV), 1)
    oh_dec = jnp.zeros((T, BV), jnp.float32)
    for b in range(B):
        oh_dec = oh_dec + (dec_cols_ref[:, b:b + 1] == jlane).astype(jnp.float32)
    x = (jnp.dot(oh_dec, embdec_ref[...], preferred_element_type=jnp.float32)
         + jnp.broadcast_to(zc, (T, BCE)))                          # [T, BCE]

    # ---- conv blocks: k=1 -> dilated causal k=3 -> k=1 -> residual+ReLU ----
    # (Dropout(0.1) layers are identity in eval mode.)
    hpad_sc[0:PADL, :] = jnp.zeros((PADL, BCI), jnp.float32)        # causal pad
    for blk, d in enumerate(DILATIONS):
        h1 = jnp.maximum(
            jnp.dot(x, w1_ref[blk], preferred_element_type=jnp.float32)
            + b1_ref[blk], 0.0)                                     # [T, BCI]
        hpad_sc[PADL:PADL + T, :] = h1                              # full-width vst

        # taps x[t-2d], x[t-d], x[t]: aligned full-width slices, fused along K
        taps = jnp.concatenate(
            [hpad_sc[PADL - 2 * d + k * d: PADL - 2 * d + k * d + T, :]
             for k in range(3)], axis=1)                            # [T, 3*BCI]
        h2 = jnp.maximum(
            jnp.dot(taps, w2_ref[blk], preferred_element_type=jnp.float32)
            + b2_ref[blk], 0.0)                                     # [T, BCI]

        h3 = jnp.maximum(
            jnp.dot(h2, w3_ref[blk], preferred_element_type=jnp.float32)
            + b3_ref[blk], 0.0)                                     # [T, BCE]
        x = jnp.maximum(h3 + x, 0.0)                                # residual

    # ---- output2vocab, unpacked to batch-major rows (aligned [T,128] stores) ----
    for b in range(B):
        logits_ref[b * T:(b + 1) * T, :] = (
            jnp.dot(x[:, b * C_EXT:(b + 1) * C_EXT], wout_ref[...],
                    preferred_element_type=jnp.float32) + bout_ref[...])


def vae_call(enc_pad, dec_cols, eps, p):
    return pl.pallas_call(
        _vae_kernel,
        out_shape=(jax.ShapeDtypeStruct((B * T, VOCAB), jnp.float32),   # logits
                   jax.ShapeDtypeStruct((1, 1), jnp.float32)),          # kld
        grid=(1,),
        in_specs=[_full((T * 8, 1)),
                  _full((T, B)),
                  _full((B, LATENT)),
                  _full((VOCAB, H8)),
                  _full((1, H8)),
                  _full((HIDDEN, H4)),
                  _full((2 * HIDDEN, 2 * LATENT)),
                  _full((1, 2 * LATENT)),
                  _full((B, LATENT, BCE)),
                  _full((1, BCE)),
                  _full((BV, BCE)),
                  _full((NB, BCE, BCI)),
                  _full((NB, 1, BCI)),
                  _full((NB, 3 * BCI, BCI)),
                  _full((NB, 1, BCI)),
                  _full((NB, BCI, BCE)),
                  _full((NB, 1, BCE)),
                  _full((C_EXT, VOCAB)),
                  _full((1, VOCAB))],
        out_specs=(_full((B * T, VOCAB)), _full((1, 1))),
        scratch_shapes=[pltpu.VMEM((T * 8, H8), jnp.float32),       # hoisted gates
                        pltpu.VMEM((PADL + T, BCI), jnp.float32)],  # causal-pad slab
        compiler_params=pltpu.CompilerParams(
            dimension_semantics=("arbitrary",),
            vmem_limit_bytes=32 * 1024 * 1024),
    )(enc_pad, dec_cols, eps,
      p["emb_wih"], p["bias_all"], p["whh_f_t"],
      p["w_muvl"], p["b_muvl"], p["wl2c_place"], p["bl2c_place"],
      p["emb_dec"], p["w1"], p["b1"], p["w2"], p["b2"], p["w3"], p["b3"],
      p["w_out_t"], p["b_out"])


# ------------------------------ parameter init ------------------------------

def init_params(key):
    def nrm(k, shape, scale=0.05):
        return scale * jax.random.normal(k, shape, dtype=jnp.float32)

    def blockdiag(w):                       # [Cin, Cout] -> [B*Cin, B*Cout]
        cin, cout = w.shape
        out = jnp.zeros((B * cin, B * cout), jnp.float32)
        for b in range(B):
            out = out.at[b * cin:(b + 1) * cin, b * cout:(b + 1) * cout].set(w)
        return out

    keys = iter(jax.random.split(key, 64))
    p = {}

    emb = nrm(next(keys), (VOCAB, EMBEDDING_DIM)).at[PAD_IDX].set(0.0)  # padding_idx

    # bidirectional LSTM (PyTorch layout W_ih [4H,E], W_hh [4H,H]; gates i,f,g,o)
    wih_f = nrm(next(keys), (4 * HIDDEN, EMBEDDING_DIM))
    whh_f = nrm(next(keys), (4 * HIDDEN, HIDDEN))
    bih_f = nrm(next(keys), (4 * HIDDEN,)); bhh_f = nrm(next(keys), (4 * HIDDEN,))
    wih_b = nrm(next(keys), (4 * HIDDEN, EMBEDDING_DIM))
    _whh_b = nrm(next(keys), (4 * HIDDEN, HIDDEN))   # unused: backward h0 == 0
    bih_b = nrm(next(keys), (4 * HIDDEN,)); bhh_b = nrm(next(keys), (4 * HIDDEN,))

    # fold embedding gather into the hoisted projection:  x@Wih^T == onehot@(emb@Wih^T)
    p["emb_wih"] = jnp.concatenate([emb @ wih_f.T, emb @ wih_b.T], axis=1)  # [V, 8H]
    p["bias_all"] = jnp.concatenate([bih_f + bhh_f, bih_b + bhh_b]).reshape(1, -1)
    p["whh_f_t"] = whh_f.T                                                  # [H, 4H]

    # context2mu / context2logvar fused along N
    w_mu = nrm(next(keys), (LATENT, 2 * HIDDEN)); b_mu = nrm(next(keys), (LATENT,))
    w_lv = nrm(next(keys), (LATENT, 2 * HIDDEN)); b_lv = nrm(next(keys), (LATENT,))
    p["w_muvl"] = jnp.concatenate([w_mu.T, w_lv.T], axis=1)                 # [2H, 2L]
    p["b_muvl"] = jnp.concatenate([b_mu, b_lv]).reshape(1, -1)

    # latent2channel: per-batch lane placement at [b*C_EXT+E, (b+1)*C_EXT)
    w_l2c = nrm(next(keys), (CZ, LATENT)); b_l2c = nrm(next(keys), (CZ,))
    w_l2c_pad = jnp.concatenate(
        [jnp.zeros((LATENT, EMBEDDING_DIM), jnp.float32), w_l2c.T], axis=1)  # [L, C_EXT]
    b_l2c_pad = jnp.concatenate([jnp.zeros((EMBEDDING_DIM,), jnp.float32), b_l2c])
    place = []
    for b in range(B):
        w = jnp.zeros((LATENT, BCE), jnp.float32)
        place.append(w.at[:, b * C_EXT:(b + 1) * C_EXT].set(w_l2c_pad))
    p["wl2c_place"] = jnp.stack(place, axis=0)                              # [B, L, BCE]
    p["bl2c_place"] = jnp.tile(b_l2c_pad, (B,)).reshape(1, -1)              # [1, BCE]

    # decoder embedding, batch-packed block-diagonal (zeros in lanes [E, C_EXT))
    emb_pad = jnp.concatenate(
        [emb, jnp.zeros((VOCAB, C_EXT - EMBEDDING_DIM), jnp.float32)], axis=1)
    p["emb_dec"] = blockdiag(emb_pad)                                       # [BV, BCE]

    # decoder conv stacks (Conv1d weight [C_out,C_in,K] -> [C_in,C_out]), batch-packed
    w1s, b1s, w2s, b2s, w3s, b3s = [], [], [], [], [], []
    for _ in range(NB):
        w1 = nrm(next(keys), (C_INT, C_EXT, 1)); b1 = nrm(next(keys), (C_INT,))
        w2 = nrm(next(keys), (C_INT, C_INT, 3)); b2 = nrm(next(keys), (C_INT,))
        w3 = nrm(next(keys), (C_EXT, C_INT, 1)); b3 = nrm(next(keys), (C_EXT,))
        w1s.append(blockdiag(w1[:, :, 0].T))                                # [BCE, BCI]
        b1s.append(jnp.tile(b1, (B,)).reshape(1, -1))
        # 3 taps stacked along the contraction axis (k = 0,1,2 -> x[t-2d], x[t-d], x[t])
        w2s.append(jnp.concatenate(
            [blockdiag(w2[:, :, k].T) for k in range(3)], axis=0))          # [3*BCI, BCI]
        b2s.append(jnp.tile(b2, (B,)).reshape(1, -1))
        w3s.append(blockdiag(w3[:, :, 0].T))                                # [BCI, BCE]
        b3s.append(jnp.tile(b3, (B,)).reshape(1, -1))
    p["w1"] = jnp.stack(w1s); p["b1"] = jnp.stack(b1s)
    p["w2"] = jnp.stack(w2s); p["b2"] = jnp.stack(b2s)
    p["w3"] = jnp.stack(w3s); p["b3"] = jnp.stack(b3s)

    w_out = nrm(next(keys), (VOCAB, C_EXT)); b_out = nrm(next(keys), (VOCAB,))
    p["w_out_t"] = w_out.T
    p["b_out"] = b_out.reshape(1, -1)
    return p


# --------------------------------- forward ----------------------------------

def forward(params, encoder_input, decoder_input, eps_key):
    # encoder indices: time-major, 8 rows per timestep (batch rows 0..B-1,
    # padded rows hold -1 so their one-hot is all zero -> tile-aligned gate reads)
    enc_pad = jnp.full((T, 8), -1, dtype=jnp.int32)
    enc_pad = enc_pad.at[:, :B].set(encoder_input.T.astype(jnp.int32))
    enc_pad = enc_pad.reshape(T * 8, 1)

    # decoder indices offset into the batch-packed one-hot lane space
    dec_cols = (decoder_input.T.astype(jnp.int32)
                + (jnp.arange(B, dtype=jnp.int32) * VOCAB)[None, :])        # [T, B]

    eps = jax.random.normal(eps_key, (B, LATENT), dtype=jnp.float32)

    logits_flat, kld = vae_call(enc_pad, dec_cols, eps, params)
    logits = logits_flat.reshape(B, T, VOCAB)
    return logits, None, kld[0, 0]


# ----------------------------------- main ------------------------------------

if __name__ == "__main__":
    root = jax.random.PRNGKey(0)
    k_param, k_enc, k_dec, k_eps = jax.random.split(root, 4)

    params = init_params(k_param)
    encoder_input = jax.random.randint(k_enc, (B, T), 0, VOCAB, dtype=jnp.int32)
    decoder_input = jax.random.randint(k_dec, (B, T), 0, VOCAB, dtype=jnp.int32)

    fwd = jax.jit(lambda enc, dec: forward(params, enc, dec, k_eps))
    logits, _, kld = fwd(encoder_input, decoder_input)
    jax.block_until_ready((logits, kld))

    assert logits.shape == (B, T, VOCAB)
    assert kld.shape == ()
    print("KERNEL_OK")
</pallas_src>

<mosaic_0001>
module attributes {stable_mosaic.version = 11 : i64} {
  func.func @_vae_kernel(%arg0: i32, %arg1: memref<64x1xi32, #tpu.memory_space<vmem>>, %arg2: memref<8x2xi32, #tpu.memory_space<vmem>>, %arg3: memref<2x32xf32, #tpu.memory_space<vmem>>, %arg4: memref<128x512xf32, #tpu.memory_space<vmem>>, %arg5: memref<1x512xf32, #tpu.memory_space<vmem>>, %arg6: memref<64x256xf32, #tpu.memory_space<vmem>>, %arg7: memref<128x64xf32, #tpu.memory_space<vmem>>, %arg8: memref<1x64xf32, #tpu.memory_space<vmem>>, %arg9: memref<2x32x256xf32, #tpu.memory_space<vmem>>, %arg10: memref<1x256xf32, #tpu.memory_space<vmem>>, %arg11: memref<256x256xf32, #tpu.memory_space<vmem>>, %arg12: memref<4x256x128xf32, #tpu.memory_space<vmem>>, %arg13: memref<4x1x128xf32, #tpu.memory_space<vmem>>, %arg14: memref<4x384x128xf32, #tpu.memory_space<vmem>>, %arg15: memref<4x1x128xf32, #tpu.memory_space<vmem>>, %arg16: memref<4x128x256xf32, #tpu.memory_space<vmem>>, %arg17: memref<4x1x256xf32, #tpu.memory_space<vmem>>, %arg18: memref<128x128xf32, #tpu.memory_space<vmem>>, %arg19: memref<1x128xf32, #tpu.memory_space<vmem>>, %arg20: memref<16x128xf32, #tpu.memory_space<vmem>>, %arg21: memref<1x1xf32, #tpu.memory_space<vmem>>, %arg22: memref<64x512xf32, #tpu.memory_space<vmem>>, %arg23: memref<16x128xf32, #tpu.memory_space<vmem>>) attributes {dimension_semantics = [#tpu.dimension_semantics<arbitrary>], iteration_bounds = array<i64: 1>, scalar_prefetch = 0 : i64, scratch_operands = 2 : i64, tpu.core_type = #tpu.core_type<tc>, window_params = [{pipeline_mode = #tpu.pipeline_mode<synchronous>, transform_indices = @transform_0, window_bounds = array<i64: 64, 1>}, {pipeline_mode = #tpu.pipeline_mode<synchronous>, transform_indices = @transform_1, window_bounds = array<i64: 8, 2>}, {pipeline_mode = #tpu.pipeline_mode<synchronous>, transform_indices = @transform_2, window_bounds = array<i64: 2, 32>}, {pipeline_mode = #tpu.pipeline_mode<synchronous>, transform_indices = @transform_3, window_bounds = array<i64: 128, 512>}, {pipeline_mode = #tpu.pipeline_mode<synchronous>, transform_indices = @transform_4, window_bounds = array<i64: 1, 512>}, {pipeline_mode = #tpu.pipeline_mode<synchronous>, transform_indices = @transform_5, window_bounds = array<i64: 64, 256>}, {pipeline_mode = #tpu.pipeline_mode<synchronous>, transform_indices = @transform_6, window_bounds = array<i64: 128, 64>}, {pipeline_mode = #tpu.pipeline_mode<synchronous>, transform_indices = @transform_7, window_bounds = array<i64: 1, 64>}, {pipeline_mode = #tpu.pipeline_mode<synchronous>, transform_indices = @transform_8, window_bounds = array<i64: 2, 32, 256>}, {pipeline_mode = #tpu.pipeline_mode<synchronous>, transform_indices = @transform_9, window_bounds = array<i64: 1, 256>}, {pipeline_mode = #tpu.pipeline_mode<synchronous>, transform_indices = @transform_10, window_bounds = array<i64: 256, 256>}, {pipeline_mode = #tpu.pipeline_mode<synchronous>, transform_indices = @transform_11, window_bounds = array<i64: 4, 256, 128>}, {pipeline_mode = #tpu.pipeline_mode<synchronous>, transform_indices = @transform_12, window_bounds = array<i64: 4, 1, 128>}, {pipeline_mode = #tpu.pipeline_mode<synchronous>, transform_indices = @transform_13, window_bounds = array<i64: 4, 384, 128>}, {pipeline_mode = #tpu.pipeline_mode<synchronous>, transform_indices = @transform_14, window_bounds = array<i64: 4, 1, 128>}, {pipeline_mode = #tpu.pipeline_mode<synchronous>, transform_indices = @transform_15, window_bounds = array<i64: 4, 128, 256>}, {pipeline_mode = #tpu.pipeline_mode<synchronous>, transform_indices = @transform_16, window_bounds = array<i64: 4, 1, 256>}, {pipeline_mode = #tpu.pipeline_mode<synchronous>, transform_indices = @transform_17, window_bounds = array<i64: 128, 128>}, {pipeline_mode = #tpu.pipeline_mode<synchronous>, transform_indices = @transform_18, window_bounds = array<i64: 1, 128>}, {pipeline_mode = #tpu.pipeline_mode<synchronous>, transform_indices = @transform_19, window_bounds = array<i64: 16, 128>}, {pipeline_mode = #tpu.pipeline_mode<synchronous>, transform_indices = @transform_20, window_bounds = array<i64: 1, 1>}]} {
    %0 = tpu.iota {dimensions = array<i32: 1>} : vector<64x128xi32>
    %c0 = arith.constant 0 : index
    %c0_0 = arith.constant 0 : index
    %1 = vector.load %arg1[%c0, %c0_0] : memref<64x1xi32, #tpu.memory_space<vmem>>, vector<64x1xi32>
    %2 = vector.broadcast %1 : vector<64x1xi32> to vector<64x128xi32>
    %3 = arith.cmpi eq, %2, %0 : vector<64x128xi32>
    %4 = arith.extui %3 : vector<64x128xi1> to vector<64x128xi32>
    %5 = arith.sitofp %4 : vector<64x128xi32> to vector<64x128xf32>
    %c0_1 = arith.constant 0 : index
    %c0_2 = arith.constant 0 : index
    %6 = vector.load %arg4[%c0_1, %c0_2] : memref<128x512xf32, #tpu.memory_space<vmem>>, vector<128x512xf32>
    %cst = arith.constant dense<0.000000e+00> : vector<64x512xf32>
    %7 = tpu.matmul %5, %6, %cst {dimension_numbers = #tpu.dot_dimension_numbers<[1], [0], [0], [1], [0, 0, 1, 1], [], []>} : vector<64x128xf32>, vector<128x512xf32>, vector<64x512xf32> -> vector<64x512xf32>
    %c0_3 = arith.constant 0 : index
    %c0_4 = arith.constant 0 : index
    %8 = vector.load %arg5[%c0_3, %c0_4] : memref<1x512xf32, #tpu.memory_space<vmem>>, vector<1x512xf32>
    %9 = vector.broadcast %8 : vector<1x512xf32> to vector<64x512xf32>
    %10 = arith.addf %7, %9 : vector<64x512xf32>
    %c0_5 = arith.constant 0 : index
    %c0_6 = arith.constant 0 : index
    %11 = vector.load %arg22[%c0_5, %c0_6] : memref<64x512xf32, #tpu.memory_space<vmem>>, vector<64x512xf32>
    tpu.vector_store %arg22[%c0_5, %c0_6], %10 {strides = array<i32>} : memref<64x512xf32, #tpu.memory_space<vmem>>, vector<64x512xf32>,
    %c0_7 = arith.constant 0 : index
    %c0_8 = arith.constant 0 : index
    %12 = vector.load %arg6[%c0_7, %c0_8] : memref<64x256xf32, #tpu.memory_space<vmem>>, vector<64x256xf32>
    %cst_9 = arith.constant 0.000000e+00 : f32
    %13 = vector.broadcast %cst_9 : f32 to vector<2x64xf32>
    %cst_10 = arith.constant 0.000000e+00 : f32
    %14 = vector.broadcast %cst_10 : f32 to vector<2x64xf32>
    %c0_11 = arith.constant 0 : index
    %c0_12 = arith.constant 0 : index
    %15 = vector.load %arg22[%c0_11, %c0_12] : memref<64x512xf32, #tpu.memory_space<vmem>>, vector<2x256xf32>
    %cst_13 = arith.constant dense<0.000000e+00> : vector<2x256xf32>
    %16 = tpu.matmul %13, %12, %cst_13 {dimension_numbers = #tpu.dot_dimension_numbers<[1], [0], [0], [1], [0, 0, 1, 1], [], []>} : vector<2x64xf32>, vector<64x256xf32>, vector<2x256xf32> -> vector<2x256xf32>
    %17 = arith.addf %15, %16 : vector<2x256xf32>
    %18 = vector.extract_strided_slice %17 {offsets = [0, 0], sizes = [2, 64], strides = [1, 1]} : vector<2x256xf32> to vector<2x64xf32>
    %19 = arith.negf %18 : vector<2x64xf32>
    %20 = math.exp %19 : vector<2x64xf32>
    %cst_14 = arith.constant 1.000000e+00 : f32
    %21 = vector.broadcast %cst_14 : f32 to vector<2x64xf32>
    %22 = arith.addf %21, %20 : vector<2x64xf32>
    %23 = arith.divf %21, %22 : vector<2x64xf32>
    %24 = vector.extract_strided_slice %17 {offsets = [0, 64], sizes = [2, 64], strides = [1, 1]} : vector<2x256xf32> to vector<2x64xf32>
    %25 = arith.negf %24 : vector<2x64xf32>
    %26 = math.exp %25 : vector<2x64xf32>
    %cst_15 = arith.constant 1.000000e+00 : f32
    %27 = vector.broadcast %cst_15 : f32 to vector<2x64xf32>
    %28 = arith.addf %27, %26 : vector<2x64xf32>
    %29 = arith.divf %27, %28 : vector<2x64xf32>
    %30 = vector.extract_strided_slice %17 {offsets = [0, 128], sizes = [2, 64], strides = [1, 1]} : vector<2x256xf32> to vector<2x64xf32>
    %31 = math.tanh %30 : vector<2x64xf32>
    %32 = vector.extract_strided_slice %17 {offsets = [0, 192], sizes = [2, 64], strides = [1, 1]} : vector<2x256xf32> to vector<2x64xf32>
    %33 = arith.negf %32 : vector<2x64xf32>
    %34 = math.exp %33 : vector<2x64xf32>
    %cst_16 = arith.constant 1.000000e+00 : f32
    %35 = vector.broadcast %cst_16 : f32 to vector<2x64xf32>
    %36 = arith.addf %35, %34 : vector<2x64xf32>
    %37 = arith.divf %35, %36 : vector<2x64xf32>
    %38 = arith.mulf %29, %14 : vector<2x64xf32>
    %39 = arith.mulf %23, %31 : vector<2x64xf32>
    %40 = arith.addf %38, %39 : vector<2x64xf32>
    %41 = math.tanh %40 : vector<2x64xf32>
    %42 = arith.mulf %37, %41 : vector<2x64xf32>
    %c8 = arith.constant 8 : index
    %c0_17 = arith.constant 0 : index
    %43 = vector.load %arg22[%c8, %c0_17] : memref<64x512xf32, #tpu.memory_space<vmem>>, vector<2x256xf32>
    %cst_18 = arith.constant dense<0.000000e+00> : vector<2x256xf32>
    %44 = tpu.matmul %42, %12, %cst_18 {dimension_numbers = #tpu.dot_dimension_numbers<[1], [0], [0], [1], [0, 0, 1, 1], [], []>} : vector<2x64xf32>, vector<64x256xf32>, vector<2x256xf32> -> vector<2x256xf32>
    %45 = arith.addf %43, %44 : vector<2x256xf32>
    %46 = vector.extract_strided_slice %45 {offsets = [0, 0], sizes = [2, 64], strides = [1, 1]} : vector<2x256xf32> to vector<2x64xf32>
    %47 = arith.negf %46 : vector<2x64xf32>
    %48 = math.exp %47 : vector<2x64xf32>
    %cst_19 = arith.constant 1.000000e+00 : f32
    %49 = vector.broadcast %cst_19 : f32 to vector<2x64xf32>
    %50 = arith.addf %49, %48 : vector<2x64xf32>
    %51 = arith.divf %49, %50 : vector<2x64xf32>
    %52 = vector.extract_strided_slice %45 {offsets = [0, 64], sizes = [2, 64], strides = [1, 1]} : vector<2x256xf32> to vector<2x64xf32>
    %53 = arith.negf %52 : vector<2x64xf32>
    %54 = math.exp %53 : vector<2x64xf32>
    %cst_20 = arith.constant 1.000000e+00 : f32
    %55 = vector.broadcast %cst_20 : f32 to vector<2x64xf32>
    %56 = arith.addf %55, %54 : vector<2x64xf32>
    %57 = arith.divf %55, %56 : vector<2x64xf32>
    %58 = vector.extract_strided_slice %45 {offsets = [0, 128], sizes = [2, 64], strides = [1, 1]} : vector<2x256xf32> to vector<2x64xf32>
    %59 = math.tanh %58 : vector<2x64xf32>
    %60 = vector.extract_strided_slice %45 {offsets = [0, 192], sizes = [2, 64], strides = [1, 1]} : vector<2x256xf32> to vector<2x64xf32>
    %61 = arith.negf %60 : vector<2x64xf32>
    %62 = math.exp %61 : vector<2x64xf32>
    %cst_21 = arith.constant 1.000000e+00 : f32
    %63 = vector.broadcast %cst_21 : f32 to vector<2x64xf32>
    %64 = arith.addf %63, %62 : vector<2x64xf32>
    %65 = arith.divf %63, %64 : vector<2x64xf32>
    %66 = arith.mulf %57, %40 : vector<2x64xf32>
    %67 = arith.mulf %51, %59 : vector<2x64xf32>
    %68 = arith.addf %66, %67 : vector<2x64xf32>
    %69 = math.tanh %68 : vector<2x64xf32>
    %70 = arith.mulf %65, %69 : vector<2x64xf32>
    %c16 = arith.constant 16 : index
    %c0_22 = arith.constant 0 : index
    %71 = vector.load %arg22[%c16, %c0_22] : memref<64x512xf32, #tpu.memory_space<vmem>>, vector<2x256xf32>
    %cst_23 = arith.constant dense<0.000000e+00> : vector<2x256xf32>
    %72 = tpu.matmul %70, %12, %cst_23 {dimension_numbers = #tpu.dot_dimension_numbers<[1], [0], [0], [1], [0, 0, 1, 1], [], []>} : vector<2x64xf32>, vector<64x256xf32>, vector<2x256xf32> -> vector<2x256xf32>
    %73 = arith.addf %71, %72 : vector<2x256xf32>
    %74 = vector.extract_strided_slice %73 {offsets = [0, 0], sizes = [2, 64], strides = [1, 1]} : vector<2x256xf32> to vector<2x64xf32>
    %75 = arith.negf %74 : vector<2x64xf32>
    %76 = math.exp %75 : vector<2x64xf32>
    %cst_24 = arith.constant 1.000000e+00 : f32
    %77 = vector.broadcast %cst_24 : f32 to vector<2x64xf32>
    %78 = arith.addf %77, %76 : vector<2x64xf32>
    %79 = arith.divf %77, %78 : vector<2x64xf32>
    %80 = vector.extract_strided_slice %73 {offsets = [0, 64], sizes = [2, 64], strides = [1, 1]} : vector<2x256xf32> to vector<2x64xf32>
    %81 = arith.negf %80 : vector<2x64xf32>
    %82 = math.exp %81 : vector<2x64xf32>
    %cst_25 = arith.constant 1.000000e+00 : f32
    %83 = vector.broadcast %cst_25 : f32 to vector<2x64xf32>
    %84 = arith.addf %83, %82 : vector<2x64xf32>
    %85 = arith.divf %83, %84 : vector<2x64xf32>
    %86 = vector.extract_strided_slice %73 {offsets = [0, 128], sizes = [2, 64], strides = [1, 1]} : vector<2x256xf32> to vector<2x64xf32>
    %87 = math.tanh %86 : vector<2x64xf32>
    %88 = vector.extract_strided_slice %73 {offsets = [0, 192], sizes = [2, 64], strides = [1, 1]} : vector<2x256xf32> to vector<2x64xf32>
    %89 = arith.negf %88 : vector<2x64xf32>
    %90 = math.exp %89 : vector<2x64xf32>
    %cst_26 = arith.constant 1.000000e+00 : f32
    %91 = vector.broadcast %cst_26 : f32 to vector<2x64xf32>
    %92 = arith.addf %91, %90 : vector<2x64xf32>
    %93 = arith.divf %91, %92 : vector<2x64xf32>
    %94 = arith.mulf %85, %68 : vector<2x64xf32>
    %95 = arith.mulf %79, %87 : vector<2x64xf32>
    %96 = arith.addf %94, %95 : vector<2x64xf32>
    %97 = math.tanh %96 : vector<2x64xf32>
    %98 = arith.mulf %93, %97 : vector<2x64xf32>
    %c24 = arith.constant 24 : index
    %c0_27 = arith.constant 0 : index
    %99 = vector.load %arg22[%c24, %c0_27] : memref<64x512xf32, #tpu.memory_space<vmem>>, vector<2x256xf32>
    %cst_28 = arith.constant dense<0.000000e+00> : vector<2x256xf32>
    %100 = tpu.matmul %98, %12, %cst_28 {dimension_numbers = #tpu.dot_dimension_numbers<[1], [0], [0], [1], [0, 0, 1, 1], [], []>} : vector<2x64xf32>, vector<64x256xf32>, vector<2x256xf32> -> vector<2x256xf32>
    %101 = arith.addf %99, %100 : vector<2x256xf32>
    %102 = vector.extract_strided_slice %101 {offsets = [0, 0], sizes = [2, 64], strides = [1, 1]} : vector<2x256xf32> to vector<2x64xf32>
    %103 = arith.negf %102 : vector<2x64xf32>
    %104 = math.exp %103 : vector<2x64xf32>
    %cst_29 = arith.constant 1.000000e+00 : f32
    %105 = vector.broadcast %cst_29 : f32 to vector<2x64xf32>
    %106 = arith.addf %105, %104 : vector<2x64xf32>
    %107 = arith.divf %105, %106 : vector<2x64xf32>
    %108 = vector.extract_strided_slice %101 {offsets = [0, 64], sizes = [2, 64], strides = [1, 1]} : vector<2x256xf32> to vector<2x64xf32>
    %109 = arith.negf %108 : vector<2x64xf32>
    %110 = math.exp %109 : vector<2x64xf32>
    %cst_30 = arith.constant 1.000000e+00 : f32
    %111 = vector.broadcast %cst_30 : f32 to vector<2x64xf32>
    %112 = arith.addf %111, %110 : vector<2x64xf32>
    %113 = arith.divf %111, %112 : vector<2x64xf32>
    %114 = vector.extract_strided_slice %101 {offsets = [0, 128], sizes = [2, 64], strides = [1, 1]} : vector<2x256xf32> to vector<2x64xf32>
    %115 = math.tanh %114 : vector<2x64xf32>
    %116 = vector.extract_strided_slice %101 {offsets = [0, 192], sizes = [2, 64], strides = [1, 1]} : vector<2x256xf32> to vector<2x64xf32>
    %117 = arith.negf %116 : vector<2x64xf32>
    %118 = math.exp %117 : vector<2x64xf32>
    %cst_31 = arith.constant 1.000000e+00 : f32
    %119 = vector.broadcast %cst_31 : f32 to vector<2x64xf32>
    %120 = arith.addf %119, %118 : vector<2x64xf32>
    %121 = arith.divf %119, %120 : vector<2x64xf32>
    %122 = arith.mulf %113, %96 : vector<2x64xf32>
    %123 = arith.mulf %107, %115 : vector<2x64xf32>
    %124 = arith.addf %122, %123 : vector<2x64xf32>
    %125 = math.tanh %124 : vector<2x64xf32>
    %126 = arith.mulf %121, %125 : vector<2x64xf32>
    %c32 = arith.constant 32 : index
    %c0_32 = arith.constant 0 : index
    %127 = vector.load %arg22[%c32, %c0_32] : memref<64x512xf32, #tpu.memory_space<vmem>>, vector<2x256xf32>
    %cst_33 = arith.constant dense<0.000000e+00> : vector<2x256xf32>
    %128 = tpu.matmul %126, %12, %cst_33 {dimension_numbers = #tpu.dot_dimension_numbers<[1], [0], [0], [1], [0, 0, 1, 1], [], []>} : vector<2x64xf32>, vector<64x256xf32>, vector<2x256xf32> -> vector<2x256xf32>
    %129 = arith.addf %127, %128 : vector<2x256xf32>
    %130 = vector.extract_strided_slice %129 {offsets = [0, 0], sizes = [2, 64], strides = [1, 1]} : vector<2x256xf32> to vector<2x64xf32>
    %131 = arith.negf %130 : vector<2x64xf32>
    %132 = math.exp %131 : vector<2x64xf32>
    %cst_34 = arith.constant 1.000000e+00 : f32
    %133 = vector.broadcast %cst_34 : f32 to vector<2x64xf32>
    %134 = arith.addf %133, %132 : vector<2x64xf32>
    %135 = arith.divf %133, %134 : vector<2x64xf32>
    %136 = vector.extract_strided_slice %129 {offsets = [0, 64], sizes = [2, 64], strides = [1, 1]} : vector<2x256xf32> to vector<2x64xf32>
    %137 = arith.negf %136 : vector<2x64xf32>
    %138 = math.exp %137 : vector<2x64xf32>
    %cst_35 = arith.constant 1.000000e+00 : f32
    %139 = vector.broadcast %cst_35 : f32 to vector<2x64xf32>
    %140 = arith.addf %139, %138 : vector<2x64xf32>
    %141 = arith.divf %139, %140 : vector<2x64xf32>
    %142 = vector.extract_strided_slice %129 {offsets = [0, 128], sizes = [2, 64], strides = [1, 1]} : vector<2x256xf32> to vector<2x64xf32>
    %143 = math.tanh %142 : vector<2x64xf32>
    %144 = vector.extract_strided_slice %129 {offsets = [0, 192], sizes = [2, 64], strides = [1, 1]} : vector<2x256xf32> to vector<2x64xf32>
    %145 = arith.negf %144 : vector<2x64xf32>
    %146 = math.exp %145 : vector<2x64xf32>
    %cst_36 = arith.constant 1.000000e+00 : f32
    %147 = vector.broadcast %cst_36 : f32 to vector<2x64xf32>
    %148 = arith.addf %147, %146 : vector<2x64xf32>
    %149 = arith.divf %147, %148 : vector<2x64xf32>
    %150 = arith.mulf %141, %124 : vector<2x64xf32>
    %151 = arith.mulf %135, %143 : vector<2x64xf32>
    %152 = arith.addf %150, %151 : vector<2x64xf32>
    %153 = math.tanh %152 : vector<2x64xf32>
    %154 = arith.mulf %149, %153 : vector<2x64xf32>
    %c40 = arith.constant 40 : index
    %c0_37 = arith.constant 0 : index
    %155 = vector.load %arg22[%c40, %c0_37] : memref<64x512xf32, #tpu.memory_space<vmem>>, vector<2x256xf32>
    %cst_38 = arith.constant dense<0.000000e+00> : vector<2x256xf32>
    %156 = tpu.matmul %154, %12, %cst_38 {dimension_numbers = #tpu.dot_dimension_numbers<[1], [0], [0], [1], [0, 0, 1, 1], [], []>} : vector<2x64xf32>, vector<64x256xf32>, vector<2x256xf32> -> vector<2x256xf32>
    %157 = arith.addf %155, %156 : vector<2x256xf32>
    %158 = vector.extract_strided_slice %157 {offsets = [0, 0], sizes = [2, 64], strides = [1, 1]} : vector<2x256xf32> to vector<2x64xf32>
    %159 = arith.negf %158 : vector<2x64xf32>
    %160 = math.exp %159 : vector<2x64xf32>
    %cst_39 = arith.constant 1.000000e+00 : f32
    %161 = vector.broadcast %cst_39 : f32 to vector<2x64xf32>
    %162 = arith.addf %161, %160 : vector<2x64xf32>
    %163 = arith.divf %161, %162 : vector<2x64xf32>
    %164 = vector.extract_strided_slice %157 {offsets = [0, 64], sizes = [2, 64], strides = [1, 1]} : vector<2x256xf32> to vector<2x64xf32>
    %165 = arith.negf %164 : vector<2x64xf32>
    %166 = math.exp %165 : vector<2x64xf32>
    %cst_40 = arith.constant 1.000000e+00 : f32
    %167 = vector.broadcast %cst_40 : f32 to vector<2x64xf32>
    %168 = arith.addf %167, %166 : vector<2x64xf32>
    %169 = arith.divf %167, %168 : vector<2x64xf32>
    %170 = vector.extract_strided_slice %157 {offsets = [0, 128], sizes = [2, 64], strides = [1, 1]} : vector<2x256xf32> to vector<2x64xf32>
    %171 = math.tanh %170 : vector<2x64xf32>
    %172 = vector.extract_strided_slice %157 {offsets = [0, 192], sizes = [2, 64], strides = [1, 1]} : vector<2x256xf32> to vector<2x64xf32>
    %173 = arith.negf %172 : vector<2x64xf32>
    %174 = math.exp %173 : vector<2x64xf32>
    %cst_41 = arith.constant 1.000000e+00 : f32
    %175 = vector.broadcast %cst_41 : f32 to vector<2x64xf32>
    %176 = arith.addf %175, %174 : vector<2x64xf32>
    %177 = arith.divf %175, %176 : vector<2x64xf32>
    %178 = arith.mulf %169, %152 : vector<2x64xf32>
    %179 = arith.mulf %163, %171 : vector<2x64xf32>
    %180 = arith.addf %178, %179 : vector<2x64xf32>
    %181 = math.tanh %180 : vector<2x64xf32>
    %182 = arith.mulf %177, %181 : vector<2x64xf32>
    %c48 = arith.constant 48 : index
    %c0_42 = arith.constant 0 : index
    %183 = vector.load %arg22[%c48, %c0_42] : memref<64x512xf32, #tpu.memory_space<vmem>>, vector<2x256xf32>
    %cst_43 = arith.constant dense<0.000000e+00> : vector<2x256xf32>
    %184 = tpu.matmul %182, %12, %cst_43 {dimension_numbers = #tpu.dot_dimension_numbers<[1], [0], [0], [1], [0, 0, 1, 1], [], []>} : vector<2x64xf32>, vector<64x256xf32>, vector<2x256xf32> -> vector<2x256xf32>
    %185 = arith.addf %183, %184 : vector<2x256xf32>
    %186 = vector.extract_strided_slice %185 {offsets = [0, 0], sizes = [2, 64], strides = [1, 1]} : vector<2x256xf32> to vector<2x64xf32>
    %187 = arith.negf %186 : vector<2x64xf32>
    %188 = math.exp %187 : vector<2x64xf32>
    %cst_44 = arith.constant 1.000000e+00 : f32
    %189 = vector.broadcast %cst_44 : f32 to vector<2x64xf32>
    %190 = arith.addf %189, %188 : vector<2x64xf32>
    %191 = arith.divf %189, %190 : vector<2x64xf32>
    %192 = vector.extract_strided_slice %185 {offsets = [0, 64], sizes = [2, 64], strides = [1, 1]} : vector<2x256xf32> to vector<2x64xf32>
    %193 = arith.negf %192 : vector<2x64xf32>
    %194 = math.exp %193 : vector<2x64xf32>
    %cst_45 = arith.constant 1.000000e+00 : f32
    %195 = vector.broadcast %cst_45 : f32 to vector<2x64xf32>
    %196 = arith.addf %195, %194 : vector<2x64xf32>
    %197 = arith.divf %195, %196 : vector<2x64xf32>
    %198 = vector.extract_strided_slice %185 {offsets = [0, 128], sizes = [2, 64], strides = [1, 1]} : vector<2x256xf32> to vector<2x64xf32>
    %199 = math.tanh %198 : vector<2x64xf32>
    %200 = vector.extract_strided_slice %185 {offsets = [0, 192], sizes = [2, 64], strides = [1, 1]} : vector<2x256xf32> to vector<2x64xf32>
    %201 = arith.negf %200 : vector<2x64xf32>
    %202 = math.exp %201 : vector<2x64xf32>
    %cst_46 = arith.constant 1.000000e+00 : f32
    %203 = vector.broadcast %cst_46 : f32 to vector<2x64xf32>
    %204 = arith.addf %203, %202 : vector<2x64xf32>
    %205 = arith.divf %203, %204 : vector<2x64xf32>
    %206 = arith.mulf %197, %180 : vector<2x64xf32>
    %207 = arith.mulf %191, %199 : vector<2x64xf32>
    %208 = arith.addf %206, %207 : vector<2x64xf32>
    %209 = math.tanh %208 : vector<2x64xf32>
    %210 = arith.mulf %205, %209 : vector<2x64xf32>
    %c56 = arith.constant 56 : index
    %c0_47 = arith.constant 0 : index
    %211 = vector.load %arg22[%c56, %c0_47] : memref<64x512xf32, #tpu.memory_space<vmem>>, vector<2x256xf32>
    %cst_48 = arith.constant dense<0.000000e+00> : vector<2x256xf32>
    %212 = tpu.matmul %210, %12, %cst_48 {dimension_numbers = #tpu.dot_dimension_numbers<[1], [0], [0], [1], [0, 0, 1, 1], [], []>} : vector<2x64xf32>, vector<64x256xf32>, vector<2x256xf32> -> vector<2x256xf32>
    %213 = arith.addf %211, %212 : vector<2x256xf32>
    %214 = vector.extract_strided_slice %213 {offsets = [0, 0], sizes = [2, 64], strides = [1, 1]} : vector<2x256xf32> to vector<2x64xf32>
    %215 = arith.negf %214 : vector<2x64xf32>
    %216 = math.exp %215 : vector<2x64xf32>
    %cst_49 = arith.constant 1.000000e+00 : f32
    %217 = vector.broadcast %cst_49 : f32 to vector<2x64xf32>
    %218 = arith.addf %217, %216 : vector<2x64xf32>
    %219 = arith.divf %217, %218 : vector<2x64xf32>
    %220 = vector.extract_strided_slice %213 {offsets = [0, 64], sizes = [2, 64], strides = [1, 1]} : vector<2x256xf32> to vector<2x64xf32>
    %221 = arith.negf %220 : vector<2x64xf32>
    %222 = math.exp %221 : vector<2x64xf32>
    %cst_50 = arith.constant 1.000000e+00 : f32
    %223 = vector.broadcast %cst_50 : f32 to vector<2x64xf32>
    %224 = arith.addf %223, %222 : vector<2x64xf32>
    %225 = arith.divf %223, %224 : vector<2x64xf32>
    %226 = vector.extract_strided_slice %213 {offsets = [0, 128], sizes = [2, 64], strides = [1, 1]} : vector<2x256xf32> to vector<2x64xf32>
    %227 = math.tanh %226 : vector<2x64xf32>
    %228 = vector.extract_strided_slice %213 {offsets = [0, 192], sizes = [2, 64], strides = [1, 1]} : vector<2x256xf32> to vector<2x64xf32>
    %229 = arith.negf %228 : vector<2x64xf32>
    %230 = math.exp %229 : vector<2x64xf32>
    %cst_51 = arith.constant 1.000000e+00 : f32
    %231 = vector.broadcast %cst_51 : f32 to vector<2x64xf32>
    %232 = arith.addf %231, %230 : vector<2x64xf32>
    %233 = arith.divf %231, %232 : vector<2x64xf32>
    %234 = arith.mulf %225, %208 : vector<2x64xf32>
    %235 = arith.mulf %219, %227 : vector<2x64xf32>
    %236 = arith.addf %234, %235 : vector<2x64xf32>
    %237 = math.tanh %236 : vector<2x64xf32>
    %238 = arith.mulf %233, %237 : vector<2x64xf32>
    %c56_52 = arith.constant 56 : index
    %c256 = arith.constant 256 : index
    %239 = vector.load %arg22[%c56_52, %c256] : memref<64x512xf32, #tpu.memory_space<vmem>>, vector<2x256xf32>
    %240 = vector.extract_strided_slice %239 {offsets = [0, 0], sizes = [2, 64], strides = [1, 1]} : vector<2x256xf32> to vector<2x64xf32>
    %241 = arith.negf %240 : vector<2x64xf32>
    %242 = math.exp %241 : vector<2x64xf32>
    %cst_53 = arith.constant 1.000000e+00 : f32
    %243 = vector.broadcast %cst_53 : f32 to vector<2x64xf32>
    %244 = arith.addf %243, %242 : vector<2x64xf32>
    %245 = arith.divf %243, %244 : vector<2x64xf32>
    %246 = vector.extract_strided_slice %239 {offsets = [0, 128], sizes = [2, 64], strides = [1, 1]} : vector<2x256xf32> to vector<2x64xf32>
    %247 = math.tanh %246 : vector<2x64xf32>
    %248 = vector.extract_strided_slice %239 {offsets = [0, 192], sizes = [2, 64], strides = [1, 1]} : vector<2x256xf32> to vector<2x64xf32>
    %249 = arith.negf %248 : vector<2x64xf32>
    %250 = math.exp %249 : vector<2x64xf32>
    %cst_54 = arith.constant 1.000000e+00 : f32
    %251 = vector.broadcast %cst_54 : f32 to vector<2x64xf32>
    %252 = arith.addf %251, %250 : vector<2x64xf32>
    %253 = arith.divf %251, %252 : vector<2x64xf32>
    %254 = arith.mulf %245, %247 : vector<2x64xf32>
    %255 = math.tanh %254 : vector<2x64xf32>
    %256 = arith.mulf %253, %255 : vector<2x64xf32>
    %c0_55 = arith.constant 0 : index
    %c0_56 = arith.constant 0 : index
    %257 = vector.load %arg7[%c0_55, %c0_56] : memref<128x64xf32, #tpu.memory_space<vmem>>, vector<64x64xf32>
    %cst_57 = arith.constant dense<0.000000e+00> : vector<2x64xf32>
    %258 = tpu.matmul %238, %257, %cst_57 {dimension_numbers = #tpu.dot_dimension_numbers<[1], [0], [0], [1], [0, 0, 1, 1], [], []>} : vector<2x64xf32>, vector<64x64xf32>, vector<2x64xf32> -> vector<2x64xf32>
    %c64 = arith.constant 64 : index
    %c0_58 = arith.constant 0 : index
    %259 = vector.load %arg7[%c64, %c0_58] : memref<128x64xf32, #tpu.memory_space<vmem>>, vector<64x64xf32>
    %cst_59 = arith.constant dense<0.000000e+00> : vector<2x64xf32>
    %260 = tpu.matmul %256, %259, %cst_59 {dimension_numbers = #tpu.dot_dimension_numbers<[1], [0], [0], [1], [0, 0, 1, 1], [], []>} : vector<2x64xf32>, vector<64x64xf32>, vector<2x64xf32> -> vector<2x64xf32>
    %261 = arith.addf %258, %260 : vector<2x64xf32>
    %c0_60 = arith.constant 0 : index
    %c0_61 = arith.constant 0 : index
    %262 = vector.load %arg8[%c0_60, %c0_61] : memref<1x64xf32, #tpu.memory_space<vmem>>, vector<1x64xf32>
    %263 = vector.broadcast %262 : vector<1x64xf32> to vector<2x64xf32>
    %264 = arith.addf %261, %263 : vector<2x64xf32>
    %265 = vector.extract_strided_slice %264 {offsets = [0, 0], sizes = [2, 32], strides = [1, 1]} : vector<2x64xf32> to vector<2x32xf32>
    %266 = vector.extract_strided_slice %264 {offsets = [0, 32], sizes = [2, 32], strides = [1, 1]} : vector<2x64xf32> to vector<2x32xf32>
    %c0_62 = arith.constant 0 : index
    %c0_63 = arith.constant 0 : index
    %267 = vector.load %arg3[%c0_62, %c0_63] : memref<2x32xf32, #tpu.memory_space<vmem>>, vector<2x32xf32>
    %cst_64 = arith.constant 5.000000e-01 : f32
    %268 = vector.broadcast %cst_64 : f32 to vector<2x32xf32>
    %269 = arith.mulf %268, %266 : vector<2x32xf32>
    %270 = math.exp %269 : vector<2x32xf32>
    %271 = arith.mulf %267, %270 : vector<2x32xf32>
    %272 = arith.addf %265, %271 : vector<2x32xf32>
    %273 = arith.mulf %265, %265 : vector<2x32xf32>
    %274 = arith.subf %266, %273 : vector<2x32xf32>
    %275 = math.exp %266 : vector<2x32xf32>
    %276 = arith.subf %274, %275 : vector<2x32xf32>
    %cst_65 = arith.constant 1.000000e+00 : f32
    %277 = vector.broadcast %cst_65 : f32 to vector<2x32xf32>
    %278 = arith.addf %276, %277 : vector<2x32xf32>
    %279 = vector.shape_cast %278 : vector<2x32xf32> to vector<1x2x32xf32>
    %cst_66 = arith.constant dense<0.000000e+00> : vector<1xf32>
    %280 = vector.multi_reduction <add>, %279, %cst_66 [1, 2] : vector<1x2x32xf32> to vector<1xf32>
    %281 = vector.shape_cast %280 : vector<1xf32> to vector<1x1x1xf32>
    %282 = vector.extract %281[0, 0, 0] : f32 from vector<1x1x1xf32>
    %283 = vector.broadcast %282 : f32 to vector<1x1xf32>
    %cst_67 = arith.constant -5.000000e-01 : f32
    %284 = vector.broadcast %cst_67 : f32 to vector<1x1xf32>
    %285 = arith.mulf %284, %283 : vector<1x1xf32>
    %c0_68 = arith.constant 0 : index
    %c0_69 = arith.constant 0 : index
    %286 = vector.load %arg21[%c0_68, %c0_69] : memref<1x1xf32, #tpu.memory_space<vmem>>, vector<1x1xf32>
    tpu.vector_store %arg21[%c0_68, %c0_69], %285 {strides = array<i32>} : memref<1x1xf32, #tpu.memory_space<vmem>>, vector<1x1xf32>,
    %c0_70 = arith.constant 0 : index
    %c0_71 = arith.constant 0 : index
    %287 = vector.load %arg10[%c0_70, %c0_71] : memref<1x256xf32, #tpu.memory_space<vmem>>, vector<1x256xf32>
    %288 = vector.extract_strided_slice %272 {offsets = [0, 0], sizes = [1, 32], strides = [1, 1]} : vector<2x32xf32> to vector<1x32xf32>
    %c0_72 = arith.constant 0 : index
    %c0_73 = arith.constant 0 : index
    %c0_74 = arith.constant 0 : index
    %289 = vector.load %arg9[%c0_72, %c0_73, %c0_74] : memref<2x32x256xf32, #tpu.memory_space<vmem>>, vector<1x32x256xf32>
    %290 = vector.shape_cast %289 : vector<1x32x256xf32> to vector<32x256xf32>
    %cst_75 = arith.constant dense<0.000000e+00> : vector<1x256xf32>
    %291 = tpu.matmul %288, %290, %cst_75 {dimension_numbers = #tpu.dot_dimension_numbers<[1], [0], [0], [1], [0, 0, 1, 1], [], []>} : vector<1x32xf32>, vector<32x256xf32>, vector<1x256xf32> -> vector<1x256xf32>
    %292 = arith.addf %287, %291 : vector<1x256xf32>
    %293 = vector.extract_strided_slice %272 {offsets = [1, 0], sizes = [1, 32], strides = [1, 1]} : vector<2x32xf32> to vector<1x32xf32>
    %c1 = arith.constant 1 : index
    %c0_76 = arith.constant 0 : index
    %c0_77 = arith.constant 0 : index
    %294 = vector.load %arg9[%c1, %c0_76, %c0_77] : memref<2x32x256xf32, #tpu.memory_space<vmem>>, vector<1x32x256xf32>
    %295 = vector.shape_cast %294 : vector<1x32x256xf32> to vector<32x256xf32>
    %cst_78 = arith.constant dense<0.000000e+00> : vector<1x256xf32>
    %296 = tpu.matmul %293, %295, %cst_78 {dimension_numbers = #tpu.dot_dimension_numbers<[1], [0], [0], [1], [0, 0, 1, 1], [], []>} : vector<1x32xf32>, vector<32x256xf32>, vector<1x256xf32> -> vector<1x256xf32>
    %297 = arith.addf %292, %296 : vector<1x256xf32>
    %cst_79 = arith.constant 0.000000e+00 : f32
    %298 = vector.broadcast %cst_79 : f32 to vector<1x256xf32>
    %299 = arith.maximumf %297, %298 : vector<1x256xf32>
    %300 = tpu.iota {dimensions = array<i32: 1>} : vector<8x256xi32>
    %cst_80 = arith.constant 0.000000e+00 : f32
    %301 = vector.broadcast %cst_80 : f32 to vector<8x256xf32>
    %c0_81 = arith.constant 0 : index
    %c0_82 = arith.constant 0 : index
    %302 = vector.load %arg2[%c0_81, %c0_82] : memref<8x2xi32, #tpu.memory_space<vmem>>, vector<8x1xi32>
    %303 = vector.broadcast %302 : vector<8x1xi32> to vector<8x256xi32>
    %304 = arith.cmpi eq, %303, %300 : vector<8x256xi32>
    %305 = arith.extui %304 : vector<8x256xi1> to vector<8x256xi32>
    %306 = arith.sitofp %305 : vector<8x256xi32> to vector<8x256xf32>
    %307 = arith.addf %301, %306 : vector<8x256xf32>
    %c0_83 = arith.constant 0 : index
    %c1_84 = arith.constant 1 : index
    %308 = vector.load %arg2[%c0_83, %c1_84] : memref<8x2xi32, #tpu.memory_space<vmem>>, vector<8x1xi32>
    %309 = vector.broadcast %308 : vector<8x1xi32> to vector<8x256xi32>
    %310 = arith.cmpi eq, %309, %300 : vector<8x256xi32>
    %311 = arith.extui %310 : vector<8x256xi1> to vector<8x256xi32>
    %312 = arith.sitofp %311 : vector<8x256xi32> to vector<8x256xf32>
    %313 = arith.addf %307, %312 : vector<8x256xf32>
    %c0_85 = arith.constant 0 : index
    %c0_86 = arith.constant 0 : index
    %314 = vector.load %arg11[%c0_85, %c0_86] : memref<256x256xf32, #tpu.memory_space<vmem>>, vector<256x256xf32>
    %cst_87 = arith.constant dense<0.000000e+00> : vector<8x256xf32>
    %315 = tpu.matmul %313, %314, %cst_87 {dimension_numbers = #tpu.dot_dimension_numbers<[1], [0], [0], [1], [0, 0, 1, 1], [], []>} : vector<8x256xf32>, vector<256x256xf32>, vector<8x256xf32> -> vector<8x256xf32>
    %316 = vector.shape_cast %299 : vector<1x256xf32> to vector<1x256xf32>
    %317 = vector.broadcast %316 : vector<1x256xf32> to vector<8x256xf32>
    %318 = arith.addf %315, %317 : vector<8x256xf32>
    %cst_88 = arith.constant 0.000000e+00 : f32
    %319 = vector.broadcast %cst_88 : f32 to vector<8x128xf32>
    %c0_89 = arith.constant 0 : index
    %c0_90 = arith.constant 0 : index
    %320 = vector.load %arg23[%c0_89, %c0_90] : memref<16x128xf32, #tpu.memory_space<vmem>>, vector<8x128xf32>
    tpu.vector_store %arg23[%c0_89, %c0_90], %319 {strides = array<i32>} : memref<16x128xf32, #tpu.memory_space<vmem>>, vector<8x128xf32>,
    %c0_91 = arith.constant 0 : index
    %c0_92 = arith.constant 0 : index
    %c0_93 = arith.constant 0 : index
    %321 = vector.load %arg12[%c0_91, %c0_92, %c0_93] : memref<4x256x128xf32, #tpu.memory_space<vmem>>, vector<1x256x128xf32>
    %322 = vector.shape_cast %321 : vector<1x256x128xf32> to vector<256x128xf32>
    %cst_94 = arith.constant dense<0.000000e+00> : vector<8x128xf32>
    %323 = tpu.matmul %318, %322, %cst_94 {dimension_numbers = #tpu.dot_dimension_numbers<[1], [0], [0], [1], [0, 0, 1, 1], [], []>} : vector<8x256xf32>, vector<256x128xf32>, vector<8x128xf32> -> vector<8x128xf32>
    %c0_95 = arith.constant 0 : index
    %c0_96 = arith.constant 0 : index
    %c0_97 = arith.constant 0 : index
    %324 = vector.load %arg13[%c0_95, %c0_96, %c0_97] : memref<4x1x128xf32, #tpu.memory_space<vmem>>, vector<1x1x128xf32>
    %325 = vector.shape_cast %324 : vector<1x1x128xf32> to vector<1x128xf32>
    %326 = vector.broadcast %325 : vector<1x128xf32> to vector<8x128xf32>
    %327 = arith.addf %323, %326 : vector<8x128xf32>
    %cst_98 = arith.constant 0.000000e+00 : f32
    %328 = vector.broadcast %cst_98 : f32 to vector<8x128xf32>
    %329 = arith.maximumf %327, %328 : vector<8x128xf32>
    %c8_99 = arith.constant 8 : index
    %c0_100 = arith.constant 0 : index
    %330 = vector.load %arg23[%c8_99, %c0_100] : memref<16x128xf32, #tpu.memory_space<vmem>>, vector<8x128xf32>
    tpu.vector_store %arg23[%c8_99, %c0_100], %329 {strides = array<i32>} : memref<16x128xf32, #tpu.memory_space<vmem>>, vector<8x128xf32>,
    %c6 = arith.constant 6 : index
    %c0_101 = arith.constant 0 : index
    %331 = vector.load %arg23[%c6, %c0_101] : memref<16x128xf32, #tpu.memory_space<vmem>>, vector<8x128xf32>
    %c7 = arith.constant 7 : index
    %c0_102 = arith.constant 0 : index
    %332 = vector.load %arg23[%c7, %c0_102] : memref<16x128xf32, #tpu.memory_space<vmem>>, vector<8x128xf32>
    %c8_103 = arith.constant 8 : index
    %c0_104 = arith.constant 0 : index
    %333 = vector.load %arg23[%c8_103, %c0_104] : memref<16x128xf32, #tpu.memory_space<vmem>>, vector<8x128xf32>
    %334 = tpu.concatenate %331, %332, %333 in 1 : vector<8x128xf32>, vector<8x128xf32>, vector<8x128xf32> -> vector<8x384xf32>
    %c0_105 = arith.constant 0 : index
    %c0_106 = arith.constant 0 : index
    %c0_107 = arith.constant 0 : index
    %335 = vector.load %arg14[%c0_105, %c0_106, %c0_107] : memref<4x384x128xf32, #tpu.memory_space<vmem>>, vector<1x384x128xf32>
    %336 = vector.shape_cast %335 : vector<1x384x128xf32> to vector<384x128xf32>
    %cst_108 = arith.constant dense<0.000000e+00> : vector<8x128xf32>
    %337 = tpu.matmul %334, %336, %cst_108 {dimension_numbers = #tpu.dot_dimension_numbers<[1], [0], [0], [1], [0, 0, 1, 1], [], []>} : vector<8x384xf32>, vector<384x128xf32>, vector<8x128xf32> -> vector<8x128xf32>
    %c0_109 = arith.constant 0 : index
    %c0_110 = arith.constant 0 : index
    %c0_111 = arith.constant 0 : index
    %338 = vector.load %arg15[%c0_109, %c0_110, %c0_111] : memref<4x1x128xf32, #tpu.memory_space<vmem>>, vector<1x1x128xf32>
    %339 = vector.shape_cast %338 : vector<1x1x128xf32> to vector<1x128xf32>
    %340 = vector.broadcast %339 : vector<1x128xf32> to vector<8x128xf32>
    %341 = arith.addf %337, %340 : vector<8x128xf32>
    %cst_112 = arith.constant 0.000000e+00 : f32
    %342 = vector.broadcast %cst_112 : f32 to vector<8x128xf32>
    %343 = arith.maximumf %341, %342 : vector<8x128xf32>
    %c0_113 = arith.constant 0 : index
    %c0_114 = arith.constant 0 : index
    %c0_115 = arith.constant 0 : index
    %344 = vector.load %arg16[%c0_113, %c0_114, %c0_115] : memref<4x128x256xf32, #tpu.memory_space<vmem>>, vector<1x128x256xf32>
    %345 = vector.shape_cast %344 : vector<1x128x256xf32> to vector<128x256xf32>
    %cst_116 = arith.constant dense<0.000000e+00> : vector<8x256xf32>
    %346 = tpu.matmul %343, %345, %cst_116 {dimension_numbers = #tpu.dot_dimension_numbers<[1], [0], [0], [1], [0, 0, 1, 1], [], []>} : vector<8x128xf32>, vector<128x256xf32>, vector<8x256xf32> -> vector<8x256xf32>
    %c0_117 = arith.constant 0 : index
    %c0_118 = arith.constant 0 : index
    %c0_119 = arith.constant 0 : index
    %347 = vector.load %arg17[%c0_117, %c0_118, %c0_119] : memref<4x1x256xf32, #tpu.memory_space<vmem>>, vector<1x1x256xf32>
    %348 = vector.shape_cast %347 : vector<1x1x256xf32> to vector<1x256xf32>
    %349 = vector.broadcast %348 : vector<1x256xf32> to vector<8x256xf32>
    %350 = arith.addf %346, %349 : vector<8x256xf32>
    %cst_120 = arith.constant 0.000000e+00 : f32
    %351 = vector.broadcast %cst_120 : f32 to vector<8x256xf32>
    %352 = arith.maximumf %350, %351 : vector<8x256xf32>
    %353 = arith.addf %352, %318 : vector<8x256xf32>
    %cst_121 = arith.constant 0.000000e+00 : f32
    %354 = vector.broadcast %cst_121 : f32 to vector<8x256xf32>
    %355 = arith.maximumf %353, %354 : vector<8x256xf32>
    %c1_122 = arith.constant 1 : index
    %c0_123 = arith.constant 0 : index
    %c0_124 = arith.constant 0 : index
    %356 = vector.load %arg12[%c1_122, %c0_123, %c0_124] : memref<4x256x128xf32, #tpu.memory_space<vmem>>, vector<1x256x128xf32>
    %357 = vector.shape_cast %356 : vector<1x256x128xf32> to vector<256x128xf32>
    %cst_125 = arith.constant dense<0.000000e+00> : vector<8x128xf32>
    %358 = tpu.matmul %355, %357, %cst_125 {dimension_numbers = #tpu.dot_dimension_numbers<[1], [0], [0], [1], [0, 0, 1, 1], [], []>} : vector<8x256xf32>, vector<256x128xf32>, vector<8x128xf32> -> vector<8x128xf32>
    %c1_126 = arith.constant 1 : index
    %c0_127 = arith.constant 0 : index
    %c0_128 = arith.constant 0 : index
    %359 = vector.load %arg13[%c1_126, %c0_127, %c0_128] : memref<4x1x128xf32, #tpu.memory_space<vmem>>, vector<1x1x128xf32>
    %360 = vector.shape_cast %359 : vector<1x1x128xf32> to vector<1x128xf32>
    %361 = vector.broadcast %360 : vector<1x128xf32> to vector<8x128xf32>
    %362 = arith.addf %358, %361 : vector<8x128xf32>
    %cst_129 = arith.constant 0.000000e+00 : f32
    %363 = vector.broadcast %cst_129 : f32 to vector<8x128xf32>
    %364 = arith.maximumf %362, %363 : vector<8x128xf32>
    %c8_130 = arith.constant 8 : index
    %c0_131 = arith.constant 0 : index
    %365 = vector.load %arg23[%c8_130, %c0_131] : memref<16x128xf32, #tpu.memory_space<vmem>>, vector<8x128xf32>
    tpu.vector_store %arg23[%c8_130, %c0_131], %364 {strides = array<i32>} : memref<16x128xf32, #tpu.memory_space<vmem>>, vector<8x128xf32>,
    %c4 = arith.constant 4 : index
    %c0_132 = arith.constant 0 : index
    %366 = vector.load %arg23[%c4, %c0_132] : memref<16x128xf32, #tpu.memory_space<vmem>>, vector<8x128xf32>
    %c6_133 = arith.constant 6 : index
    %c0_134 = arith.constant 0 : index
    %367 = vector.load %arg23[%c6_133, %c0_134] : memref<16x128xf32, #tpu.memory_space<vmem>>, vector<8x128xf32>
    %c8_135 = arith.constant 8 : index
    %c0_136 = arith.constant 0 : index
    %368 = vector.load %arg23[%c8_135, %c0_136] : memref<16x128xf32, #tpu.memory_space<vmem>>, vector<8x128xf32>
    %369 = tpu.concatenate %366, %367, %368 in 1 : vector<8x128xf32>, vector<8x128xf32>, vector<8x128xf32> -> vector<8x384xf32>
    %c1_137 = arith.constant 1 : index
    %c0_138 = arith.constant 0 : index
    %c0_139 = arith.constant 0 : index
    %370 = vector.load %arg14[%c1_137, %c0_138, %c0_139] : memref<4x384x128xf32, #tpu.memory_space<vmem>>, vector<1x384x128xf32>
    %371 = vector.shape_cast %370 : vector<1x384x128xf32> to vector<384x128xf32>
    %cst_140 = arith.constant dense<0.000000e+00> : vector<8x128xf32>
    %372 = tpu.matmul %369, %371, %cst_140 {dimension_numbers = #tpu.dot_dimension_numbers<[1], [0], [0], [1], [0, 0, 1, 1], [], []>} : vector<8x384xf32>, vector<384x128xf32>, vector<8x128xf32> -> vector<8x128xf32>
    %c1_141 = arith.constant 1 : index
    %c0_142 = arith.constant 0 : index
    %c0_143 = arith.constant 0 : index
    %373 = vector.load %arg15[%c1_141, %c0_142, %c0_143] : memref<4x1x128xf32, #tpu.memory_space<vmem>>, vector<1x1x128xf32>
    %374 = vector.shape_cast %373 : vector<1x1x128xf32> to vector<1x128xf32>
    %375 = vector.broadcast %374 : vector<1x128xf32> to vector<8x128xf32>
    %376 = arith.addf %372, %375 : vector<8x128xf32>
    %cst_144 = arith.constant 0.000000e+00 : f32
    %377 = vector.broadcast %cst_144 : f32 to vector<8x128xf32>
    %378 = arith.maximumf %376, %377 : vector<8x128xf32>
    %c1_145 = arith.constant 1 : index
    %c0_146 = arith.constant 0 : index
    %c0_147 = arith.constant 0 : index
    %379 = vector.load %arg16[%c1_145, %c0_146, %c0_147] : memref<4x128x256xf32, #tpu.memory_space<vmem>>, vector<1x128x256xf32>
    %380 = vector.shape_cast %379 : vector<1x128x256xf32> to vector<128x256xf32>
    %cst_148 = arith.constant dense<0.000000e+00> : vector<8x256xf32>
    %381 = tpu.matmul %378, %380, %cst_148 {dimension_numbers = #tpu.dot_dimension_numbers<[1], [0], [0], [1], [0, 0, 1, 1], [], []>} : vector<8x128xf32>, vector<128x256xf32>, vector<8x256xf32> -> vector<8x256xf32>
    %c1_149 = arith.constant 1 : index
    %c0_150 = arith.constant 0 : index
    %c0_151 = arith.constant 0 : index
    %382 = vector.load %arg17[%c1_149, %c0_150, %c0_151] : memref<4x1x256xf32, #tpu.memory_space<vmem>>, vector<1x1x256xf32>
    %383 = vector.shape_cast %382 : vector<1x1x256xf32> to vector<1x256xf32>
    %384 = vector.broadcast %383 : vector<1x256xf32> to vector<8x256xf32>
    %385 = arith.addf %381, %384 : vector<8x256xf32>
    %cst_152 = arith.constant 0.000000e+00 : f32
    %386 = vector.broadcast %cst_152 : f32 to vector<8x256xf32>
    %387 = arith.maximumf %385, %386 : vector<8x256xf32>
    %388 = arith.addf %387, %355 : vector<8x256xf32>
    %cst_153 = arith.constant 0.000000e+00 : f32
    %389 = vector.broadcast %cst_153 : f32 to vector<8x256xf32>
    %390 = arith.maximumf %388, %389 : vector<8x256xf32>
    %c2 = arith.constant 2 : index
    %c0_154 = arith.constant 0 : index
    %c0_155 = arith.constant 0 : index
    %391 = vector.load %arg12[%c2, %c0_154, %c0_155] : memref<4x256x128xf32, #tpu.memory_space<vmem>>, vector<1x256x128xf32>
    %392 = vector.shape_cast %391 : vector<1x256x128xf32> to vector<256x128xf32>
    %cst_156 = arith.constant dense<0.000000e+00> : vector<8x128xf32>
    %393 = tpu.matmul %390, %392, %cst_156 {dimension_numbers = #tpu.dot_dimension_numbers<[1], [0], [0], [1], [0, 0, 1, 1], [], []>} : vector<8x256xf32>, vector<256x128xf32>, vector<8x128xf32> -> vector<8x128xf32>
    %c2_157 = arith.constant 2 : index
    %c0_158 = arith.constant 0 : index
    %c0_159 = arith.constant 0 : index
    %394 = vector.load %arg13[%c2_157, %c0_158, %c0_159] : memref<4x1x128xf32, #tpu.memory_space<vmem>>, vector<1x1x128xf32>
    %395 = vector.shape_cast %394 : vector<1x1x128xf32> to vector<1x128xf32>
    %396 = vector.broadcast %395 : vector<1x128xf32> to vector<8x128xf32>
    %397 = arith.addf %393, %396 : vector<8x128xf32>
    %cst_160 = arith.constant 0.000000e+00 : f32
    %398 = vector.broadcast %cst_160 : f32 to vector<8x128xf32>
    %399 = arith.maximumf %397, %398 : vector<8x128xf32>
    %c8_161 = arith.constant 8 : index
    %c0_162 = arith.constant 0 : index
    %400 = vector.load %arg23[%c8_161, %c0_162] : memref<16x128xf32, #tpu.memory_space<vmem>>, vector<8x128xf32>
    tpu.vector_store %arg23[%c8_161, %c0_162], %399 {strides = array<i32>} : memref<16x128xf32, #tpu.memory_space<vmem>>, vector<8x128xf32>,
    %c6_163 = arith.constant 6 : index
    %c0_164 = arith.constant 0 : index
    %401 = vector.load %arg23[%c6_163, %c0_164] : memref<16x128xf32, #tpu.memory_space<vmem>>, vector<8x128xf32>
    %c7_165 = arith.constant 7 : index
    %c0_166 = arith.constant 0 : index
    %402 = vector.load %arg23[%c7_165, %c0_166] : memref<16x128xf32, #tpu.memory_space<vmem>>, vector<8x128xf32>
    %c8_167 = arith.constant 8 : index
    %c0_168 = arith.constant 0 : index
    %403 = vector.load %arg23[%c8_167, %c0_168] : memref<16x128xf32, #tpu.memory_space<vmem>>, vector<8x128xf32>
    %404 = tpu.concatenate %401, %402, %403 in 1 : vector<8x128xf32>, vector<8x128xf32>, vector<8x128xf32> -> vector<8x384xf32>
    %c2_169 = arith.constant 2 : index
    %c0_170 = arith.constant 0 : index
    %c0_171 = arith.constant 0 : index
    %405 = vector.load %arg14[%c2_169, %c0_170, %c0_171] : memref<4x384x128xf32, #tpu.memory_space<vmem>>, vector<1x384x128xf32>
    %406 = vector.shape_cast %405 : vector<1x384x128xf32> to vector<384x128xf32>
    %cst_172 = arith.constant dense<0.000000e+00> : vector<8x128xf32>
    %407 = tpu.matmul %404, %406, %cst_172 {dimension_numbers = #tpu.dot_dimension_numbers<[1], [0], [0], [1], [0, 0, 1, 1], [], []>} : vector<8x384xf32>, vector<384x128xf32>, vector<8x128xf32> -> vector<8x128xf32>
    %c2_173 = arith.constant 2 : index
    %c0_174 = arith.constant 0 : index
    %c0_175 = arith.constant 0 : index
    %408 = vector.load %arg15[%c2_173, %c0_174, %c0_175] : memref<4x1x128xf32, #tpu.memory_space<vmem>>, vector<1x1x128xf32>
    %409 = vector.shape_cast %408 : vector<1x1x128xf32> to vector<1x128xf32>
    %410 = vector.broadcast %409 : vector<1x128xf32> to vector<8x128xf32>
    %411 = arith.addf %407, %410 : vector<8x128xf32>
    %cst_176 = arith.constant 0.000000e+00 : f32
    %412 = vector.broadcast %cst_176 : f32 to vector<8x128xf32>
    %413 = arith.maximumf %411, %412 : vector<8x128xf32>
    %c2_177 = arith.constant 2 : index
    %c0_178 = arith.constant 0 : index
    %c0_179 = arith.constant 0 : index
    %414 = vector.load %arg16[%c2_177, %c0_178, %c0_179] : memref<4x128x256xf32, #tpu.memory_space<vmem>>, vector<1x128x256xf32>
    %415 = vector.shape_cast %414 : vector<1x128x256xf32> to vector<128x256xf32>
    %cst_180 = arith.constant dense<0.000000e+00> : vector<8x256xf32>
    %416 = tpu.matmul %413, %415, %cst_180 {dimension_numbers = #tpu.dot_dimension_numbers<[1], [0], [0], [1], [0, 0, 1, 1], [], []>} : vector<8x128xf32>, vector<128x256xf32>, vector<8x256xf32> -> vector<8x256xf32>
    %c2_181 = arith.constant 2 : index
    %c0_182 = arith.constant 0 : index
    %c0_183 = arith.constant 0 : index
    %417 = vector.load %arg17[%c2_181, %c0_182, %c0_183] : memref<4x1x256xf32, #tpu.memory_space<vmem>>, vector<1x1x256xf32>
    %418 = vector.shape_cast %417 : vector<1x1x256xf32> to vector<1x256xf32>
    %419 = vector.broadcast %418 : vector<1x256xf32> to vector<8x256xf32>
    %420 = arith.addf %416, %419 : vector<8x256xf32>
    %cst_184 = arith.constant 0.000000e+00 : f32
    %421 = vector.broadcast %cst_184 : f32 to vector<8x256xf32>
    %422 = arith.maximumf %420, %421 : vector<8x256xf32>
    %423 = arith.addf %422, %390 : vector<8x256xf32>
    %cst_185 = arith.constant 0.000000e+00 : f32
    %424 = vector.broadcast %cst_185 : f32 to vector<8x256xf32>
    %425 = arith.maximumf %423, %424 : vector<8x256xf32>
    %c3 = arith.constant 3 : index
    %c0_186 = arith.constant 0 : index
    %c0_187 = arith.constant 0 : index
    %426 = vector.load %arg12[%c3, %c0_186, %c0_187] : memref<4x256x128xf32, #tpu.memory_space<vmem>>, vector<1x256x128xf32>
    %427 = vector.shape_cast %426 : vector<1x256x128xf32> to vector<256x128xf32>
    %cst_188 = arith.constant dense<0.000000e+00> : vector<8x128xf32>
    %428 = tpu.matmul %425, %427, %cst_188 {dimension_numbers = #tpu.dot_dimension_numbers<[1], [0], [0], [1], [0, 0, 1, 1], [], []>} : vector<8x256xf32>, vector<256x128xf32>, vector<8x128xf32> -> vector<8x128xf32>
    %c3_189 = arith.constant 3 : index
    %c0_190 = arith.constant 0 : index
    %c0_191 = arith.constant 0 : index
    %429 = vector.load %arg13[%c3_189, %c0_190, %c0_191] : memref<4x1x128xf32, #tpu.memory_space<vmem>>, vector<1x1x128xf32>
    %430 = vector.shape_cast %429 : vector<1x1x128xf32> to vector<1x128xf32>
    %431 = vector.broadcast %430 : vector<1x128xf32> to vector<8x128xf32>
    %432 = arith.addf %428, %431 : vector<8x128xf32>
    %cst_192 = arith.constant 0.000000e+00 : f32
    %433 = vector.broadcast %cst_192 : f32 to vector<8x128xf32>
    %434 = arith.maximumf %432, %433 : vector<8x128xf32>
    %c8_193 = arith.constant 8 : index
    %c0_194 = arith.constant 0 : index
    %435 = vector.load %arg23[%c8_193, %c0_194] : memref<16x128xf32, #tpu.memory_space<vmem>>, vector<8x128xf32>
    tpu.vector_store %arg23[%c8_193, %c0_194], %434 {strides = array<i32>} : memref<16x128xf32, #tpu.memory_space<vmem>>, vector<8x128xf32>,
    %c4_195 = arith.constant 4 : index
    %c0_196 = arith.constant 0 : index
    %436 = vector.load %arg23[%c4_195, %c0_196] : memref<16x128xf32, #tpu.memory_space<vmem>>, vector<8x128xf32>
    %c6_197 = arith.constant 6 : index
    %c0_198 = arith.constant 0 : index
    %437 = vector.load %arg23[%c6_197, %c0_198] : memref<16x128xf32, #tpu.memory_space<vmem>>, vector<8x128xf32>
    %c8_199 = arith.constant 8 : index
    %c0_200 = arith.constant 0 : index
    %438 = vector.load %arg23[%c8_199, %c0_200] : memref<16x128xf32, #tpu.memory_space<vmem>>, vector<8x128xf32>
    %439 = tpu.concatenate %436, %437, %438 in 1 : vector<8x128xf32>, vector<8x128xf32>, vector<8x128xf32> -> vector<8x384xf32>
    %c3_201 = arith.constant 3 : index
    %c0_202 = arith.constant 0 : index
    %c0_203 = arith.constant 0 : index
    %440 = vector.load %arg14[%c3_201, %c0_202, %c0_203] : memref<4x384x128xf32, #tpu.memory_space<vmem>>, vector<1x384x128xf32>
    %441 = vector.shape_cast %440 : vector<1x384x128xf32> to vector<384x128xf32>
    %cst_204 = arith.constant dense<0.000000e+00> : vector<8x128xf32>
    %442 = tpu.matmul %439, %441, %cst_204 {dimension_numbers = #tpu.dot_dimension_numbers<[1], [0], [0], [1], [0, 0, 1, 1], [], []>} : vector<8x384xf32>, vector<384x128xf32>, vector<8x128xf32> -> vector<8x128xf32>
    %c3_205 = arith.constant 3 : index
    %c0_206 = arith.constant 0 : index
    %c0_207 = arith.constant 0 : index
    %443 = vector.load %arg15[%c3_205, %c0_206, %c0_207] : memref<4x1x128xf32, #tpu.memory_space<vmem>>, vector<1x1x128xf32>
    %444 = vector.shape_cast %443 : vector<1x1x128xf32> to vector<1x128xf32>
    %445 = vector.broadcast %444 : vector<1x128xf32> to vector<8x128xf32>
    %446 = arith.addf %442, %445 : vector<8x128xf32>
    %cst_208 = arith.constant 0.000000e+00 : f32
    %447 = vector.broadcast %cst_208 : f32 to vector<8x128xf32>
    %448 = arith.maximumf %446, %447 : vector<8x128xf32>
    %c3_209 = arith.constant 3 : index
    %c0_210 = arith.constant 0 : index
    %c0_211 = arith.constant 0 : index
    %449 = vector.load %arg16[%c3_209, %c0_210, %c0_211] : memref<4x128x256xf32, #tpu.memory_space<vmem>>, vector<1x128x256xf32>
    %450 = vector.shape_cast %449 : vector<1x128x256xf32> to vector<128x256xf32>
    %cst_212 = arith.constant dense<0.000000e+00> : vector<8x256xf32>
    %451 = tpu.matmul %448, %450, %cst_212 {dimension_numbers = #tpu.dot_dimension_numbers<[1], [0], [0], [1], [0, 0, 1, 1], [], []>} : vector<8x128xf32>, vector<128x256xf32>, vector<8x256xf32> -> vector<8x256xf32>
    %c3_213 = arith.constant 3 : index
    %c0_214 = arith.constant 0 : index
    %c0_215 = arith.constant 0 : index
    %452 = vector.load %arg17[%c3_213, %c0_214, %c0_215] : memref<4x1x256xf32, #tpu.memory_space<vmem>>, vector<1x1x256xf32>
    %453 = vector.shape_cast %452 : vector<1x1x256xf32> to vector<1x256xf32>
    %454 = vector.broadcast %453 : vector<1x256xf32> to vector<8x256xf32>
    %455 = arith.addf %451, %454 : vector<8x256xf32>
    %cst_216 = arith.constant 0.000000e+00 : f32
    %456 = vector.broadcast %cst_216 : f32 to vector<8x256xf32>
    %457 = arith.maximumf %455, %456 : vector<8x256xf32>
    %458 = arith.addf %457, %425 : vector<8x256xf32>
    %cst_217 = arith.constant 0.000000e+00 : f32
    %459 = vector.broadcast %cst_217 : f32 to vector<8x256xf32>
    %460 = arith.maximumf %458, %459 : vector<8x256xf32>
    %461 = vector.extract_strided_slice %460 {offsets = [0, 0], sizes = [8, 128], strides = [1, 1]} : vector<8x256xf32> to vector<8x128xf32>
    %c0_218 = arith.constant 0 : index
    %c0_219 = arith.constant 0 : index
    %462 = vector.load %arg18[%c0_218, %c0_219] : memref<128x128xf32, #tpu.memory_space<vmem>>, vector<128x128xf32>
    %cst_220 = arith.constant dense<0.000000e+00> : vector<8x128xf32>
    %463 = tpu.matmul %461, %462, %cst_220 {dimension_numbers = #tpu.dot_dimension_numbers<[1], [0], [0], [1], [0, 0, 1, 1], [], []>} : vector<8x128xf32>, vector<128x128xf32>, vector<8x128xf32> -> vector<8x128xf32>
    %c0_221 = arith.constant 0 : index
    %c0_222 = arith.constant 0 : index
    %464 = vector.load %arg19[%c0_221, %c0_222] : memref<1x128xf32, #tpu.memory_space<vmem>>, vector<1x128xf32>
    %465 = vector.broadcast %464 : vector<1x128xf32> to vector<8x128xf32>
    %466 = arith.addf %463, %465 : vector<8x128xf32>
    %c0_223 = arith.constant 0 : index
    %c0_224 = arith.constant 0 : index
    %467 = vector.load %arg20[%c0_223, %c0_224] : memref<16x128xf32, #tpu.memory_space<vmem>>, vector<8x128xf32>
    tpu.vector_store %arg20[%c0_223, %c0_224], %466 {strides = array<i32>} : memref<16x128xf32, #tpu.memory_space<vmem>>, vector<8x128xf32>,
    %468 = vector.extract_strided_slice %460 {offsets = [0, 128], sizes = [8, 128], strides = [1, 1]} : vector<8x256xf32> to vector<8x128xf32>
    %c0_225 = arith.constant 0 : index
    %c0_226 = arith.constant 0 : index
    %469 = vector.load %arg18[%c0_225, %c0_226] : memref<128x128xf32, #tpu.memory_space<vmem>>, vector<128x128xf32>
    %cst_227 = arith.constant dense<0.000000e+00> : vector<8x128xf32>
    %470 = tpu.matmul %468, %469, %cst_227 {dimension_numbers = #tpu.dot_dimension_numbers<[1], [0], [0], [1], [0, 0, 1, 1], [], []>} : vector<8x128xf32>, vector<128x128xf32>, vector<8x128xf32> -> vector<8x128xf32>
    %c0_228 = arith.constant 0 : index
    %c0_229 = arith.constant 0 : index
    %471 = vector.load %arg19[%c0_228, %c0_229] : memref<1x128xf32, #tpu.memory_space<vmem>>, vector<1x128xf32>
    %472 = vector.broadcast %471 : vector<1x128xf32> to vector<8x128xf32>
    %473 = arith.addf %470, %472 : vector<8x128xf32>
    %c8_230 = arith.constant 8 : index
    %c0_231 = arith.constant 0 : index
    %474 = vector.load %arg20[%c8_230, %c0_231] : memref<16x128xf32, #tpu.memory_space<vmem>>, vector<8x128xf32>
    tpu.vector_store %arg20[%c8_230, %c0_231], %473 {strides = array<i32>} : memref<16x128xf32, #tpu.memory_space<vmem>>, vector<8x128xf32>,
    return
  }
  func.func @transform_0(%arg0: i32) -> (i32, i32) {
    %c0_i32 = arith.constant 0 : i32
    %c0_i32_0 = arith.constant 0 : i32
    %c0_i32_1 = arith.constant 0 : i32
    return %c0_i32, %c0_i32_0 : i32, i32
  }
  func.func @transform_1(%arg0: i32) -> (i32, i32) {
    %c0_i32 = arith.constant 0 : i32
    %c0_i32_0 = arith.constant 0 : i32
    %c0_i32_1 = arith.constant 0 : i32
    return %c0_i32, %c0_i32_0 : i32, i32
  }
  func.func @transform_2(%arg0: i32) -> (i32, i32) {
    %c0_i32 = arith.constant 0 : i32
    %c0_i32_0 = arith.constant 0 : i32
    %c0_i32_1 = arith.constant 0 : i32
    return %c0_i32, %c0_i32_0 : i32, i32
  }
  func.func @transform_3(%arg0: i32) -> (i32, i32) {
    %c0_i32 = arith.constant 0 : i32
    %c0_i32_0 = arith.constant 0 : i32
    %c0_i32_1 = arith.constant 0 : i32
    return %c0_i32, %c0_i32_0 : i32, i32
  }
  func.func @transform_4(%arg0: i32) -> (i32, i32) {
    %c0_i32 = arith.constant 0 : i32
    %c0_i32_0 = arith.constant 0 : i32
    %c0_i32_1 = arith.constant 0 : i32
    return %c0_i32, %c0_i32_0 : i32, i32
  }
  func.func @transform_5(%arg0: i32) -> (i32, i32) {
    %c0_i32 = arith.constant 0 : i32
    %c0_i32_0 = arith.constant 0 : i32
    %c0_i32_1 = arith.constant 0 : i32
    return %c0_i32, %c0_i32_0 : i32, i32
  }
  func.func @transform_6(%arg0: i32) -> (i32, i32) {
    %c0_i32 = arith.constant 0 : i32
    %c0_i32_0 = arith.constant 0 : i32
    %c0_i32_1 = arith.constant 0 : i32
    return %c0_i32, %c0_i32_0 : i32, i32
  }
  func.func @transform_7(%arg0: i32) -> (i32, i32) {
    %c0_i32 = arith.constant 0 : i32
    %c0_i32_0 = arith.constant 0 : i32
    %c0_i32_1 = arith.constant 0 : i32
    return %c0_i32, %c0_i32_0 : i32, i32
  }
  func.func @transform_8(%arg0: i32) -> (i32, i32, i32) {
    %c0_i32 = arith.constant 0 : i32
    %c0_i32_0 = arith.constant 0 : i32
    %c0_i32_1 = arith.constant 0 : i32
    %c0_i32_2 = arith.constant 0 : i32
    return %c0_i32, %c0_i32_0, %c0_i32_1 : i32, i32, i32
  }
  func.func @transform_9(%arg0: i32) -> (i32, i32) {
    %c0_i32 = arith.constant 0 : i32
    %c0_i32_0 = arith.constant 0 : i32
    %c0_i32_1 = arith.constant 0 : i32
    return %c0_i32, %c0_i32_0 : i32, i32
  }
  func.func @transform_10(%arg0: i32) -> (i32, i32) {
    %c0_i32 = arith.constant 0 : i32
    %c0_i32_0 = arith.constant 0 : i32
    %c0_i32_1 = arith.constant 0 : i32
    return %c0_i32, %c0_i32_0 : i32, i32
  }
  func.func @transform_11(%arg0: i32) -> (i32, i32, i32) {
    %c0_i32 = arith.constant 0 : i32
    %c0_i32_0 = arith.constant 0 : i32
    %c0_i32_1 = arith.constant 0 : i32
    %c0_i32_2 = arith.constant 0 : i32
    return %c0_i32, %c0_i32_0, %c0_i32_1 : i32, i32, i32
  }
  func.func @transform_12(%arg0: i32) -> (i32, i32, i32) {
    %c0_i32 = arith.constant 0 : i32
    %c0_i32_0 = arith.constant 0 : i32
    %c0_i32_1 = arith.constant 0 : i32
    %c0_i32_2 = arith.constant 0 : i32
    return %c0_i32, %c0_i32_0, %c0_i32_1 : i32, i32, i32
  }
  func.func @transform_13(%arg0: i32) -> (i32, i32, i32) {
    %c0_i32 = arith.constant 0 : i32
    %c0_i32_0 = arith.constant 0 : i32
    %c0_i32_1 = arith.constant 0 : i32
    %c0_i32_2 = arith.constant 0 : i32
    return %c0_i32, %c0_i32_0, %c0_i32_1 : i32, i32, i32
  }
  func.func @transform_14(%arg0: i32) -> (i32, i32, i32) {
    %c0_i32 = arith.constant 0 : i32
    %c0_i32_0 = arith.constant 0 : i32
    %c0_i32_1 = arith.constant 0 : i32
    %c0_i32_2 = arith.constant 0 : i32
    return %c0_i32, %c0_i32_0, %c0_i32_1 : i32, i32, i32
  }
  func.func @transform_15(%arg0: i32) -> (i32, i32, i32) {
    %c0_i32 = arith.constant 0 : i32
    %c0_i32_0 = arith.constant 0 : i32
    %c0_i32_1 = arith.constant 0 : i32
    %c0_i32_2 = arith.constant 0 : i32
    return %c0_i32, %c0_i32_0, %c0_i32_1 : i32, i32, i32
  }
  func.func @transform_16(%arg0: i32) -> (i32, i32, i32) {
    %c0_i32 = arith.constant 0 : i32
    %c0_i32_0 = arith.constant 0 : i32
    %c0_i32_1 = arith.constant 0 : i32
    %c0_i32_2 = arith.constant 0 : i32
    return %c0_i32, %c0_i32_0, %c0_i32_1 : i32, i32, i32
  }
  func.func @transform_17(%arg0: i32) -> (i32, i32) {
    %c0_i32 = arith.constant 0 : i32
    %c0_i32_0 = arith.constant 0 : i32
    %c0_i32_1 = arith.constant 0 : i32
    return %c0_i32, %c0_i32_0 : i32, i32
  }
  func.func @transform_18(%arg0: i32) -> (i32, i32) {
    %c0_i32 = arith.constant 0 : i32
    %c0_i32_0 = arith.constant 0 : i32
    %c0_i32_1 = arith.constant 0 : i32
    return %c0_i32, %c0_i32_0 : i32, i32
  }
  func.func @transform_19(%arg0: i32) -> (i32, i32) {
    %c0_i32 = arith.constant 0 : i32
    %c0_i32_0 = arith.constant 0 : i32
    %c0_i32_1 = arith.constant 0 : i32
    return %c0_i32, %c0_i32_0 : i32, i32
  }
  func.func @transform_20(%arg0: i32) -> (i32, i32) {
    %c0_i32 = arith.constant 0 : i32
    %c0_i32_0 = arith.constant 0 : i32
    %c0_i32_1 = arith.constant 0 : i32
    return %c0_i32, %c0_i32_0 : i32, i32
  }
}

</mosaic_0001>

<bundles_post_ra>
// kernel: _lambda_.1
= control target key start
LH: loop header
LB: loop body
LE: loop exit
PB: predicated region body
PF: predicated region fallthrough
CT: control target
= control target key end

     0   :  { %s4157_s0 = inlined_call_operand.vmem [shape: s32[64,1], index: 0, kind: input, shape index: {}]   ;;  %s4158_s1 = inlined_call_operand.vmem [shape: s32[8,2], index: 1, kind: input, shape index: {}]   ;;  %s4159_s2 = inlined_call_operand.vmem [shape: f32[2,32], index: 2, kind: input, shape index: {}]   ;;  %s4160_s3 = inlined_call_operand.hbm [shape: f32[128,512], index: 3, kind: input, shape index: {}]   ;;  %s4161_s4 = inlined_call_operand.vmem [shape: f32[1,512], index: 4, kind: input, shape index: {}]   ;;  %s4162_s5 = inlined_call_operand.hbm [shape: f32[64,256], index: 5, kind: input, shape index: {}]   ;;  %s4163_s6 = inlined_call_operand.hbm [shape: f32[128,64], index: 6, kind: input, shape index: {}]   ;;  %s4164_s7 = inlined_call_operand.vmem [shape: f32[1,64], index: 7, kind: input, shape index: {}]   ;;  %s4165_s8 = inlined_call_operand.hbm [shape: f32[2,32,256], index: 8, kind: input, shape index: {}]   ;;  %s4166_s9 = inlined_call_operand.vmem [shape: f32[1,256], index: 9, kind: input, shape index: {}]   ;;  %s4167_s10 = inlined_call_operand.hbm [shape: f32[256,256], index: 10, kind: input, shape index: {}]   ;;  %s4168_s11 = inlined_call_operand.hbm [shape: f32[4,256,128], index: 11, kind: input, shape index: {}]   ;;  %s4169_s12 = inlined_call_operand.vmem [shape: f32[4,1,128], index: 12, kind: input, shape index: {}]   ;;  %s4170_s13 = inlined_call_operand.hbm [shape: f32[4,384,128], index: 13, kind: input, shape index: {}]   ;;  %s4171_s14 = inlined_call_operand.vmem [shape: f32[4,1,128], index: 14, kind: input, shape index: {}]   ;;  %s4172_s15 = inlined_call_operand.hbm [shape: f32[4,128,256], index: 15, kind: input, shape index: {}]   ;;  %s4173_s16 = inlined_call_operand.vmem [shape: f32[4,1,256], index: 16, kind: input, shape index: {}]   ;;  %s4174_s17 = inlined_call_operand.hbm [shape: f32[128,128], index: 17, kind: input, shape index: {}]   ;;  %s4175_s18 = inlined_call_operand.vmem [shape: f32[1,128], index: 18, kind: input, shape index: {}]   ;;  %s4176_s19 = inlined_call_operand.hbm [shape: f32[16,128], index: 19, kind: output, shape index: {0}]   ;;  %s4177_s20 = inlined_call_operand.hbm [shape: f32[1,1], index: 20, kind: output, shape index: {1}]  }
   0x1   :  { %4179 = sst [smem:[#allocation29_spill]] %s4157_s0 }
   0x2   :  { %4180 = sst [smem:[#allocation30_spill]] %s4158_s1 }
   0x3   :  { %4181 = sst [smem:[#allocation31_spill]] %s4159_s2 }
   0x4   :  { %4182 = sst [smem:[#allocation32_spill]] %s4160_s3 }
   0x5   :  { %4183 = sst [smem:[#allocation33_spill]] %s4161_s4 }
   0x6   :  { %26 = vsyncpa [#allocation5], 0 }
   0x7   :  { %27 = vsyncpa [#allocation8], 0 }
   0x8   :  { %28 = vsyncpa [#allocation11], 0 }
   0x9   :  { %29 = vsyncpa [#allocation14], 0 }
   0xa   :  { %30 = vsyncpa [#allocation17], 0 }
   0xb   :  { %31 = vsyncpa [#allocation6], 0  ;;  %s58_s23 = sshll.u32 %s4162_s5, 4  ;;  %s59_s23 = int_to_ptr.hbm [resolvable:$true] %s58_s23 }
   0xc   :  { %32 = vsyncpa [#allocation21], 0  ;;  %s3550_s24 = smov [#allocation7]   ;;  %s86_s26 = sshll.u32 %s4165_s8, 4  ;;  %s87_s26 = int_to_ptr.hbm [resolvable:$true] %s86_s26 }
   0xd   :  { %s60_s2 = sshll.u32 %s3550_s24, 4  ;;  %s3551_s27 = smov 256   ;;  %s61_s2 = int_to_ptr.vmem [resolvable:$true] %s60_s2 }
   0xe   :  { %s3552_s28 = smov 16   ;;  %s3553_s4 = smov [#allocation10]  }
   0xf   :  { %66 = dma.hbm_to_vmem [thread:$0]  %s59_s23, 2048, %s61_s2, [#allocation8], %s3551_s27, %s3551_s27, %s3552_s28  }
  0x10   :  { %s88_s29 = sshll.u32 %s3553_s4, 4  ;;  %s114_s0 = sshll.u32 %s4168_s11, 4  ;;  %s89_s29 = int_to_ptr.vmem [resolvable:$true] %s88_s29  ;;  %s115_s0 = int_to_ptr.hbm [resolvable:$true] %s114_s0 }
  0x11   :  { %94 = dma.hbm_to_vmem [thread:$0]  %s87_s26, 2048, %s89_s29, [#allocation11], %s3551_s27, %s3551_s27, %s3552_s28  }
  0x12   :  { %s3554_s8 = smov [#allocation13]   ;;  %s144_s23 = sshll.u32 %s4172_s15, 4  ;;  %s145_s23 = int_to_ptr.hbm [resolvable:$true] %s144_s23 }
  0x13   :  { %s116_s21 = sshll.u32 %s3554_s8, 4  ;;  %s3555_s24 = smov 128   ;;  %s117_s21 = int_to_ptr.vmem [resolvable:$true] %s116_s21 }
  0x14   :  { %s3556_s2 = smov 8   ;;  %s3557_s25 = smov [#allocation16]  }
  0x15   :  { %122 = dma.hbm_to_vmem [thread:$0]  %s115_s0, 16384, %s117_s21, [#allocation14], %s3555_s24, %s3555_s24, %s3556_s2  }
  0x16   :  { %s146_s3 = sshll.u32 %s3557_s25, 4  ;;  %s4184_s11 = sld [smem:[#allocation32_spill]]  ;;  %s147_s3 = int_to_ptr.vmem [resolvable:$true] %s146_s3 }
  0x17   :  { %152 = dma.hbm_to_vmem [thread:$0]  %s145_s23, 16384, %s147_s3, [#allocation17], %s3551_s27, %s3551_s27, %s3552_s28  }
  0x18   :  { %s3558_s15 = smov [#allocation4]   ;;  %s71_s0 = sshll.u32 %s4163_s6, 4  ;;  %s72_s0 = int_to_ptr.hbm [resolvable:$true] %s71_s0 }
  0x19   :  { %s45_s5 = sshll.u32 %s3558_s15, 4  ;;  %s3559_s21 = smov 512   ;;  %s46_s5 = int_to_ptr.vmem [resolvable:$true] %s45_s5 }
  0x1a   :  { %s3560_s1 = smov 32   ;;  %s3561_s22 = smov [#allocation9]  }
  0x1b   :  { %s73_s25 = sshll.u32 %s3561_s22, 4  ;;  %s129_s6 = sshll.u32 %s4170_s13, 4  ;;  %s74_s25 = int_to_ptr.vmem [resolvable:$true] %s73_s25  ;;  %s130_s6 = int_to_ptr.hbm [resolvable:$true] %s129_s6 }
  0x1c   :  { %s43_s29 = sshll.u32 %s4184_s11, 4  ;;  %s101_s11 = sshll.u32 %s4167_s10, 4  ;;  %s44_s29 = int_to_ptr.hbm [resolvable:$true] %s43_s29  ;;  %s102_s11 = int_to_ptr.hbm [resolvable:$true] %s101_s11 }
  0x1d   :  { %51 = dma.hbm_to_vmem [thread:$0]  %s44_s29, 8192, %s46_s5, [#allocation5], %s3559_s21, %s3559_s21, %s3560_s1  }
  0x1e   :  { %79 = dma.hbm_to_vmem [thread:$0]  %s72_s0, 2048, %s74_s25, [#allocation8], %s3555_s24, %s3555_s24, %s3556_s2  }
  0x1f   :  { %s3562_s15 = smov [#allocation12]   ;;  %s3563_s29 = smov [#allocation15]  }
  0x20   :  { %s103_s30 = sshll.u32 %s3562_s15, 4  ;;  %s131_s10 = sshll.u32 %s3563_s29, 4  ;;  %s104_s30 = int_to_ptr.vmem [resolvable:$true] %s103_s30  ;;  %s132_s10 = int_to_ptr.vmem [resolvable:$true] %s131_s10 }
  0x21   :  { %109 = dma.hbm_to_vmem [thread:$0]  %s102_s11, 8192, %s104_s30, [#allocation11], %s3551_s27, %s3551_s27, %s3552_s28  }
  0x22   :  { %s159_s21 = sshll.u32 %s4174_s17, 4  ;;  %s3564_s13 = smov [#allocation18]   ;;  %s160_s21 = int_to_ptr.hbm [resolvable:$true] %s159_s21 }
  0x23   :  { %137 = dma.hbm_to_vmem [thread:$0]  %s130_s6, 24576, %s132_s10, [#allocation14], %s3555_s24, %s3555_s24, %s3556_s2  }
  0x24   :  { %s161_s0 = sshll.u32 %s3564_s13, 4  ;;  %s162_s0 = int_to_ptr.vmem [resolvable:$true] %s161_s0 }
  0x25   :  { %167 = dma.hbm_to_vmem [thread:$0]  %s160_s21, 2048, %s162_s0, [#allocation17], %s3555_s24, %s3555_s24, %s3556_s2  }
  0x26   :  { %3536 = dma.done.wait [#allocation5], 8192  }
  0x27   :  { %3537 = vsyncadd [#allocation5], 4294959104 }
  0x28   :  { %3538 = dma.done.wait [#allocation8], 4096  }
  0x29   :  { %3539 = vsyncadd [#allocation8], 4294963200 }
  0x2a   :  { %3540 = dma.done.wait [#allocation11], 10240  }
  0x2b   :  { %3541 = vsyncadd [#allocation11], 4294957056 }
  0x2c   :  { %3542 = dma.done.wait [#allocation14], 40960  }
  0x2d   :  { %3543 = vsyncadd [#allocation14], 4294926336 }
  0x2e   :  { %3544 = dma.done.wait [#allocation17], 18432  }
  0x2f   :  { %3545 = vsyncadd [#allocation17], 4294948864  ;;  %v3565_v0 = vmov 0   ;;  %s4185_s28 = sld [smem:[#allocation29_spill]]  ;;  %v324_v4 = vld [vmem:[#allocation4 + $0x1e0] sm:$0xff]  ;;  %v325_v5 = vld [vmem:[#allocation4 + $0x1e8] sm:$0xff] }
  0x30   :  { %3144 = vset.pattern.permute.xlu1 %v3565_v0  ;;  %3143 = vset.pattern.permute.xlu0 %v3565_v0  ;;  %v326_v6 = vld [vmem:[#allocation4 + $0x1f0] sm:$0xff]  ;;  %v327_v7 = vld [vmem:[#allocation4 + $0x1f8] sm:$0xff]  ;;  %v320_v8 = vld [vmem:[#allocation4 + $0x1c0] sm:$0xff]  ;;  %s4186_s0 = sld [smem:[#allocation33_spill]]  ;;  %s3568_s17 = smov 64  }
  0x31   :  { %3145 = vset.pattern.permute.xlu2 %v3565_v0  ;;  %338 = vmatpush.msra.mxu0 %v324_v4  ;;  %v321_v9 = vld [vmem:[#allocation4 + $0x1c8] sm:$0xff]  ;;  %v322_v10 = vld [vmem:[#allocation4 + $0x1d0] sm:$0xff]  ;;  %v323_v11 = vld [vmem:[#allocation4 + $0x1d8] sm:$0xff]  ;;  %s4187_s22 = sld [smem:[#allocation30_spill]]  ;;  %s3570_s4 = smov 96  }
  0x32   :  { %379 = vmatpush.msra.mxu1 %v325_v5  ;;  %420 = vmatpush.msra.mxu2 %v326_v6  ;;  %v316_v12 = vld [vmem:[#allocation4 + $0x1a0] sm:$0xff]  ;;  %v317_v13 = vld [vmem:[#allocation4 + $0x1a8] sm:$0xff]  ;;  %v318_v16 = vld [vmem:[#allocation4 + $0x1b0] sm:$0xff]  ;;  %s4188_s23 = sld [smem:[#allocation31_spill]]  ;;  %s3008_s30 = sshll.u32 %s4177_s20, 4  ;;  %s3009_s30 = int_to_ptr.hbm [resolvable:$true] %s3008_s30 }
  0x33   :  { %461 = vmatpush.msra.mxu3 %v327_v7  ;;  %339 = vmatpush.msra.mxu0 %v320_v8  ;;  %v319_v17 = vld [vmem:[#allocation4 + $0x1b8] sm:$0xff]  ;;  %v312_v18 = vld [vmem:[#allocation4 + $0x180] sm:$0xff]  ;;  %v313_v20 = vld [vmem:[#allocation4 + $0x188] sm:$0xff]  ;;  %s3572_s21 = smov [#allocation19]   ;;  %s2994_s27 = sshll.u32 %s4176_s19, 4  ;;  %s2995_s27 = int_to_ptr.hbm [resolvable:$true] %s2994_s27 }
  0x34   :  { %380 = vmatpush.msra.mxu1 %v321_v9  ;;  %421 = vmatpush.msra.mxu2 %v322_v10  ;;  %v314_v21 = vld [vmem:[#allocation4 + $0x190] sm:$0xff]  ;;  %v315_v22 = vld [vmem:[#allocation4 + $0x198] sm:$0xff]  ;;  %v308_v23 = vld [vmem:[#allocation4 + $0x160] sm:$0xff]  ;;  %s2992_s13 = sshll.u32 %s3572_s21, 4  ;;  %s2993_s13 = int_to_ptr.vmem [resolvable:$true] %s2992_s13 }
  0x35   :  { %v210_v1 = vld [vmem:[%s4185_s28 + $0x10] sm:$0xff]  ;;  %v208_v2 = vld [vmem:[%s4185_s28] sm:$0xff]  ;;  %v211_v14 = vld [vmem:[%s4185_s28 + $0x18] sm:$0xff]  ;;  %462 = vmatpush.msra.mxu3 %v323_v11  ;;  %340 = vmatpush.msra.mxu0 %v316_v12 }
  0x36   :  { %223 = vperm.xlu1 %3144, %v210_v1   ;;  %217 = vperm.xlu0 %3143, %v208_v2   ;;  %v212_v3 = vld [vmem:[%s4185_s28 + $0x20] sm:$0xff]  ;;  %v209_v15 = vld [vmem:[%s4185_s28 + $0x8] sm:$0xff]  ;;  %v309_v24 = vld [vmem:[#allocation4 + $0x168] sm:$0xff] }
  0x37   :  { %229 = vperm.xlu2 %3145, %v212_v3   ;;  %v213_v19 = vld [vmem:[%s4185_s28 + $0x28] sm:$0xff]  ;;  %381 = vmatpush.msra.mxu1 %v317_v13  ;;  %v310_v25 = vld [vmem:[#allocation4 + $0x170] sm:$0xff]  ;;  %v304_v27 = vld [vmem:[#allocation4 + $0x140] sm:$0xff]  ;;  %v206_v13 = vlaneseq }
  0x38   :  { %422 = vmatpush.msra.mxu2 %v318_v16  ;;  %463 = vmatpush.msra.mxu3 %v319_v17  ;;  %v311_v26 = vld [vmem:[#allocation4 + $0x178] sm:$0xff]  ;;  %v305_v28 = vld [vmem:[#allocation4 + $0x148] sm:$0xff]  ;;  %v306_v29 = vld [vmem:[#allocation4 + $0x150] sm:$0xff] }
  0x39   :  { %341 = vmatpush.msra.mxu0 %v312_v18  ;;  %382 = vmatpush.msra.mxu1 %v313_v20  ;;  %v307_v30 = vld [vmem:[#allocation4 + $0x158] sm:$0xff]  ;;  %v215_v31 = vld [vmem:[%s4185_s28 + $0x38] sm:$0xff]  ;;  %v214_v32 = vld [vmem:[%s4185_s28 + $0x30] sm:$0xff]  ;;  %v3776_v16 = vand.u32 127, %v206_v13  ;;  %v3566_v18 = vmov 1.0  }
  0x3a   :  { %423 = vmatpush.msra.mxu2 %v314_v21  ;;  %464 = vmatpush.msra.mxu3 %v315_v22  ;;  %v300_v33 = vld [vmem:[#allocation4 + $0x120] sm:$0xff]  ;;  %v301_v34 = vld [vmem:[#allocation4 + $0x128] sm:$0xff]  ;;  %v302_v35 = vld [vmem:[#allocation4 + $0x130] sm:$0xff] }
  0x3b   :  { %342 = vmatpush.msra.mxu0 %v308_v23  ;;  %383 = vmatpush.msra.mxu1 %v309_v24  ;;  %v303_v36 = vld [vmem:[#allocation4 + $0x138] sm:$0xff]  ;;  %v296_v37 = vld [vmem:[#allocation4 + $0x100] sm:$0xff]  ;;  %v297_v38 = vld [vmem:[#allocation4 + $0x108] sm:$0xff] }
  0x3c   :  { %424 = vmatpush.msra.mxu2 %v310_v25  ;;  %465 = vmatpush.msra.mxu3 %v311_v26  ;;  %v298_v39 = vld [vmem:[#allocation4 + $0x110] sm:$0xff]  ;;  %v299_v40 = vld [vmem:[#allocation4 + $0x118] sm:$0xff]  ;;  %v292_v41 = vld [vmem:[#allocation4 + $0xe0] sm:$0xff] }
  0x3d   :  { %343 = vmatpush.msra.mxu0 %v304_v27  ;;  %384 = vmatpush.msra.mxu1 %v305_v28  ;;  %v293_v42 = vld [vmem:[#allocation4 + $0xe8] sm:$0xff]  ;;  %v294_v43 = vld [vmem:[#allocation4 + $0xf0] sm:$0xff]  ;;  %v295_v44 = vld [vmem:[#allocation4 + $0xf8] sm:$0xff] }
  0x3e   :  { %226 = vperm.xlu1 %3144, %v211_v14   ;;  %220 = vperm.xlu0 %3143, %v209_v15   ;;  %v288_v45 = vld [vmem:[#allocation4 + $0xc0] sm:$0xff]  ;;  %v289_v46 = vld [vmem:[#allocation4 + $0xc8] sm:$0xff]  ;;  %v290_v47 = vld [vmem:[#allocation4 + $0xd0] sm:$0xff] }
  0x3f   :  { %232 = vperm.xlu2 %3145, %v213_v19   ;;  %425 = vmatpush.msra.mxu2 %v306_v29  ;;  %v291_v48 = vld [vmem:[#allocation4 + $0xd8] sm:$0xff]  ;;  %v284_v49 = vld [vmem:[#allocation4 + $0xa0] sm:$0xff]  ;;  %v285_v50 = vld [vmem:[#allocation4 + $0xa8] sm:$0xff] }
  0x40   :  { %466 = vmatpush.msra.mxu3 %v307_v30  ;;  %344 = vmatpush.msra.mxu0 %v300_v33  ;;  %v286_v51 = vld [vmem:[#allocation4 + $0xb0] sm:$0xff]  ;;  %v287_v52 = vld [vmem:[#allocation4 + $0xb8] sm:$0xff]  ;;  %v280_v53 = vld [vmem:[#allocation4 + $0x80] sm:$0xff] }
  0x41   :  { %385 = vmatpush.msra.mxu1 %v301_v34  ;;  %426 = vmatpush.msra.mxu2 %v302_v35  ;;  %v281_v54 = vld [vmem:[#allocation4 + $0x88] sm:$0xff]  ;;  %v282_v55 = vld [vmem:[#allocation4 + $0x90] sm:$0xff]  ;;  %v283_v56 = vld [vmem:[#allocation4 + $0x98] sm:$0xff] }
  0x42   :  { %467 = vmatpush.msra.mxu3 %v303_v36  ;;  %345 = vmatpush.msra.mxu0 %v296_v37  ;;  %v276_v57 = vld [vmem:[#allocation4 + $0x60] sm:$0xff]  ;;  %v277_v58 = vld [vmem:[#allocation4 + $0x68] sm:$0xff]  ;;  %v278_v59 = vld [vmem:[#allocation4 + $0x70] sm:$0xff] }
  0x43   :  { %386 = vmatpush.msra.mxu1 %v297_v38  ;;  %427 = vmatpush.msra.mxu2 %v298_v39  ;;  %v279_v60 = vld [vmem:[#allocation4 + $0x78] sm:$0xff]  ;;  %v272_v61 = vld [vmem:[#allocation4 + $0x40] sm:$0xff]  ;;  %v273_v62 = vld [vmem:[#allocation4 + $0x48] sm:$0xff] }
  0x44   :  { %468 = vmatpush.msra.mxu3 %v299_v40  ;;  %346 = vmatpush.msra.mxu0 %v292_v41  ;;  %v274_v63 = vld [vmem:[#allocation4 + $0x50] sm:$0xff]  ;;  %v275_v0 = vld [vmem:[#allocation4 + $0x58] sm:$0xff]  ;;  %v268_v1 = vld [vmem:[#allocation4 + $0x20] sm:$0xff] }
  0x45   :  { %387 = vmatpush.msra.mxu1 %v293_v42  ;;  %428 = vmatpush.msra.mxu2 %v294_v43  ;;  %v269_v2 = vld [vmem:[#allocation4 + $0x28] sm:$0xff]  ;;  %v270_v3 = vld [vmem:[#allocation4 + $0x30] sm:$0xff]  ;;  %v271_v4 = vld [vmem:[#allocation4 + $0x38] sm:$0xff] }
  0x46   :  { %238 = vperm.xlu1 %3144, %v215_v31   ;;  %235 = vperm.xlu0 %3143, %v214_v32   ;;  %v264_v5 = vld [vmem:[#allocation4] sm:$0xff]  ;;  %v265_v6 = vld [vmem:[#allocation4 + $0x8] sm:$0xff]  ;;  %v266_v7 = vld [vmem:[#allocation4 + $0x10] sm:$0xff]  ;;  %v3567_v32 = vmov 0.0  }
  0x47   :  { %469 = vmatpush.msra.mxu3 %v295_v44  ;;  %347 = vmatpush.msra.mxu0 %v288_v45  ;;  %v267_v8 = vld [vmem:[#allocation4 + $0x18] sm:$0xff]  ;;  %v3754_v9 = vld [vmem:[#allocation7 + $0x70] sm:$0xff]  ;;  %v3758_v10 = vld [vmem:[#allocation7 + $0x60] sm:$0xff]  ;;  %1775 = vst [vmem:[#allocation3] sm:$0xff] %v3567_v32 }
  0x48   :  { %388 = vmatpush.msra.mxu1 %v289_v46  ;;  %429 = vmatpush.msra.mxu2 %v290_v47  ;;  %v3762_v11 = vld [vmem:[#allocation7 + $0x50] sm:$0xff]  ;;  %v3764_v12 = vld [vmem:[#allocation7 + $0x78] sm:$0xff]  ;;  %v3770_v14 = vld [vmem:[#allocation7 + $0x40] sm:$0xff] }
  0x49   :  { %470 = vmatpush.msra.mxu3 %v291_v48  ;;  %348 = vmatpush.msra.mxu0 %v284_v49  ;;  %v3772_v15 = vld [vmem:[#allocation7 + $0x68] sm:$0xff]  ;;  %v3785_v19 = vld [vmem:[#allocation7 + $0x30] sm:$0xff]  ;;  %v3787_v20 = vld [vmem:[#allocation7 + $0x58] sm:$0xff] }
  0x4a   :  { %389 = vmatpush.msra.mxu1 %v285_v50  ;;  %430 = vmatpush.msra.mxu2 %v286_v51  ;;  %v3798_v22 = vld [vmem:[#allocation7 + $0x20] sm:$0xff]  ;;  %v3800_v23 = vld [vmem:[#allocation7 + $0x48] sm:$0xff]  ;;  %v3811_v25 = vld [vmem:[#allocation7 + $0x10] sm:$0xff] }
  0x4b   :  { %471 = vmatpush.msra.mxu3 %v287_v52  ;;  %349 = vmatpush.msra.mxu0 %v280_v53  ;;  %v3813_v26 = vld [vmem:[#allocation7 + $0x38] sm:$0xff]  ;;  %v3824_v28 = vld [vmem:[#allocation7] sm:$0xff]  ;;  %v3826_v29 = vld [vmem:[#allocation7 + $0x28] sm:$0xff] }
  0x4c   :  { %390 = vmatpush.msra.mxu1 %v281_v54  ;;  %431 = vmatpush.msra.mxu2 %v282_v55  ;;  %v3828_v30 = vld [vmem:[#allocation7 + $0x18] sm:$0xff]  ;;  %v3833_v33 = vld [vmem:[#allocation7 + $0x8] sm:$0xff]  ;;  %v3914_v37 = vld [vmem:[%s4186_s0] sm:$0xf] }
  0x4d   :  { %472 = vmatpush.msra.mxu3 %v283_v56  ;;  %350 = vmatpush.msra.mxu0 %v276_v57  ;;  %v330_v38 = vperm.slane %v3914_v37, 0  ;;  %v331_v39 = vperm.slane %v3914_v37, 1  ;;  %v332_v44 = vperm.slane %v3914_v37, 2  ;;  %v333_v45 = vperm.slane %v3914_v37, 3 }
  0x4e   :  { %391 = vmatpush.msra.mxu1 %v277_v58  ;;  %432 = vmatpush.msra.mxu2 %v278_v59 }
  0x4f   :  { %473 = vmatpush.msra.mxu3 %v279_v60  ;;  %351 = vmatpush.msra.mxu0 %v272_v61 }
  0x50   :  { %392 = vmatpush.msra.mxu1 %v273_v62  ;;  %433 = vmatpush.msra.mxu2 %v274_v63 }
  0x51   :  { %474 = vmatpush.msra.mxu3 %v275_v0  ;;  %352 = vmatpush.msra.mxu0 %v268_v1 }
  0x52   :  { %393 = vmatpush.msra.mxu1 %v269_v2  ;;  %434 = vmatpush.msra.mxu2 %v270_v3 }
  0x53   :  { %475 = vmatpush.msra.mxu3 %v271_v4  ;;  %353 = vmatpush.msra.mxu0 %v264_v5 }
  0x54   :  { %394 = vmatpush.msra.mxu1 %v265_v6  ;;  %435 = vmatpush.msra.mxu2 %v266_v7 }
  0x55   :  { %476 = vmatpush.msra.mxu3 %v267_v8  ;;  %758 = vmatpush.msrb.mxu0 %v3754_v9 }
  0x56   :  { %564 = vmatpush.msrb.mxu2 %v3754_v9  ;;  %778 = vmatpush.msrb.mxu1 %v3764_v12 }
  0x57   :  { %759 = vmatpush.msrb.mxu0 %v3758_v10  ;;  %584 = vmatpush.msrb.mxu3 %v3764_v12 }
  0x58   :  { %565 = vmatpush.msrb.mxu2 %v3758_v10  ;;  %779 = vmatpush.msrb.mxu1 %v3772_v15 }
  0x59   :  { %760 = vmatpush.msrb.mxu0 %v3762_v11  ;;  %585 = vmatpush.msrb.mxu3 %v3772_v15 }
  0x5a   :  { %566 = vmatpush.msrb.mxu2 %v3762_v11  ;;  %780 = vmatpush.msrb.mxu1 %v3787_v20 }
  0x5b   :  { %761 = vmatpush.msrb.mxu0 %v3770_v14  ;;  %586 = vmatpush.msrb.mxu3 %v3787_v20 }
  0x5c   :  { %567 = vmatpush.msrb.mxu2 %v3770_v14  ;;  %781 = vmatpush.msrb.mxu1 %v3800_v23 }
  0x5d   :  { %762 = vmatpush.msrb.mxu0 %v3785_v19  ;;  %587 = vmatpush.msrb.mxu3 %v3800_v23 }
  0x5e   :  { %568 = vmatpush.msrb.mxu2 %v3785_v19  ;;  %782 = vmatpush.msrb.mxu1 %v3813_v26 }
  0x5f   :  { %763 = vmatpush.msrb.mxu0 %v3798_v22  ;;  %588 = vmatpush.msrb.mxu3 %v3813_v26 }
  0x60   :  { %569 = vmatpush.msrb.mxu2 %v3798_v22  ;;  %783 = vmatpush.msrb.mxu1 %v3826_v29 }
  0x61   :  { %764 = vmatpush.msrb.mxu0 %v3811_v25  ;;  %589 = vmatpush.msrb.mxu3 %v3826_v29 }
  0x62   :  { %570 = vmatpush.msrb.mxu2 %v3811_v25  ;;  %784 = vmatpush.msrb.mxu1 %v3828_v30 }
  0x63   :  { %765 = vmatpush.msrb.mxu0 %v3824_v28  ;;  %590 = vmatpush.msrb.mxu3 %v3828_v30 }
  0x64   :  { %571 = vmatpush.msrb.mxu2 %v3824_v28  ;;  %785 = vmatpush.msrb.mxu1 %v3833_v33 }
  0x65   :  { %591 = vmatpush.msrb.mxu3 %v3833_v33 }
  0x91   :  { %v230_v31 = vpop.permute.xlu2 %229 }
  0x92   :  { %vm244_vm4 = vcmp.eq.s32.totalorder %v230_v31, %v3776_v16 }
  0x99   :  { %v233_v34 = vpop.permute.xlu2 %232 }
  0x9a   :  { %vm245_vm5 = vcmp.eq.s32.totalorder %v233_v34, %v3776_v16 }
  0xa8   :  { %v218_v17 = vpop.permute.xlu0 %217  ;;  %v224_v24 = vpop.permute.xlu1 %223 }
  0xa9   :  { %vm240_vm0 = vcmp.eq.s32.totalorder %v218_v17, %v3776_v16  ;;  %vm242_vm2 = vcmp.eq.s32.totalorder %v224_v24, %v3776_v16 }
  0xaa   :  { %3035 = vmatmul.msk.f32.vlgmr.msra.gmra.mxu0 %vm240_vm0, %v3566_v18  ;;  %3043 = vmatmul.msk.f32.vlgmr.msra.gmra.mxu1 %vm240_vm0, %v3566_v18 }
  0xab   :  { %3051 = vmatmul.msk.f32.vlgmr.msra.gmra.mxu2 %vm240_vm0, %v3566_v18  ;;  %3059 = vmatmul.msk.f32.vlgmr.msra.gmra.mxu3 %vm240_vm0, %v3566_v18  ;;  %vm552_vm0 = vcmask 523264  }
  0xac   :  { %661 = vmatpush.msra.mxu2 %v3754_v9  ;;  %952 = vmatpush.msra.mxu0 %v3754_v9 }
  0xad   :  { %681 = vmatpush.msra.mxu3 %v3764_v12  ;;  %972 = vmatpush.msra.mxu1 %v3764_v12 }
  0xae   :  { %662 = vmatpush.msra.mxu2 %v3758_v10  ;;  %953 = vmatpush.msra.mxu0 %v3758_v10 }
  0xaf   :  { %682 = vmatpush.msra.mxu3 %v3772_v15  ;;  %973 = vmatpush.msra.mxu1 %v3772_v15 }
  0xb0   :  { %v221_v21 = vpop.permute.xlu0 %220  ;;  %v227_v27 = vpop.permute.xlu1 %226  ;;  %663 = vmatpush.msra.mxu2 %v3762_v11  ;;  %954 = vmatpush.msra.mxu0 %v3762_v11 }
  0xb1   :  { %vm241_vm1 = vcmp.eq.s32.totalorder %v221_v21, %v3776_v16  ;;  %vm243_vm3 = vcmp.eq.s32.totalorder %v227_v27, %v3776_v16  ;;  %683 = vmatpush.msra.mxu3 %v3787_v20  ;;  %974 = vmatpush.msra.mxu1 %v3787_v20 }
  0xb2   :  { %3036 = vmatmul.msk.f32.gmra.mxu0 %vm241_vm1, %v3566_v18  ;;  %3044 = vmatmul.msk.f32.gmra.mxu1 %vm241_vm1, %v3566_v18 }
  0xb3   :  { %3052 = vmatmul.msk.f32.gmra.mxu2 %vm241_vm1, %v3566_v18  ;;  %3060 = vmatmul.msk.f32.gmra.mxu3 %vm241_vm1, %v3566_v18 }
  0xb4   :  { %664 = vmatpush.msra.mxu2 %v3770_v14  ;;  %684 = vmatpush.msra.mxu3 %v3800_v23 }
  0xb5   :  { %955 = vmatpush.msra.mxu0 %v3770_v14  ;;  %975 = vmatpush.msra.mxu1 %v3800_v23 }
  0xb6   :  { %665 = vmatpush.msra.mxu2 %v3785_v19  ;;  %685 = vmatpush.msra.mxu3 %v3813_v26 }
  0xb7   :  { %956 = vmatpush.msra.mxu0 %v3785_v19  ;;  %976 = vmatpush.msra.mxu1 %v3813_v26 }
  0xb8   :  { %666 = vmatpush.msra.mxu2 %v3798_v22  ;;  %v236_v35 = vpop.permute.xlu0 %235  ;;  %686 = vmatpush.msra.mxu3 %v3826_v29  ;;  %v239_v36 = vpop.permute.xlu1 %238 }
  0xb9   :  { %957 = vmatpush.msra.mxu0 %v3798_v22  ;;  %vm246_vm6 = vcmp.eq.s32.totalorder %v236_v35, %v3776_v16  ;;  %977 = vmatpush.msra.mxu1 %v3826_v29  ;;  %vm247_vm7 = vcmp.eq.s32.totalorder %v239_v36, %v3776_v16 }
  0xba   :  { %3037 = vmatmul.msk.f32.gmra.mxu0 %vm242_vm2, %v3566_v18  ;;  %3045 = vmatmul.msk.f32.gmra.mxu1 %vm242_vm2, %v3566_v18 }
  0xbb   :  { %3053 = vmatmul.msk.f32.gmra.mxu2 %vm242_vm2, %v3566_v18  ;;  %3061 = vmatmul.msk.f32.gmra.mxu3 %vm242_vm2, %v3566_v18 }
  0xbc   :  { %667 = vmatpush.msra.mxu2 %v3811_v25  ;;  %687 = vmatpush.msra.mxu3 %v3828_v30 }
  0xbd   :  { %958 = vmatpush.msra.mxu0 %v3811_v25  ;;  %978 = vmatpush.msra.mxu1 %v3828_v30 }
  0xbe   :  { %668 = vmatpush.msra.mxu2 %v3824_v28  ;;  %688 = vmatpush.msra.mxu3 %v3833_v33 }
  0xbf   :  { %959 = vmatpush.msra.mxu0 %v3824_v28  ;;  %979 = vmatpush.msra.mxu1 %v3833_v33 }
  0xc2   :  { %3038 = vmatmul.msk.f32.gmra.mxu0 %vm243_vm3, %v3566_v18  ;;  %3046 = vmatmul.msk.f32.gmra.mxu1 %vm243_vm3, %v3566_v18 }
  0xc3   :  { %3054 = vmatmul.msk.f32.gmra.mxu2 %vm243_vm3, %v3566_v18  ;;  %3062 = vmatmul.msk.f32.gmra.mxu3 %vm243_vm3, %v3566_v18 }
  0xca   :  { %3039 = vmatmul.msk.f32.gmra.mxu0 %vm244_vm4, %v3566_v18  ;;  %3047 = vmatmul.msk.f32.gmra.mxu1 %vm244_vm4, %v3566_v18 }
  0xcb   :  { %3055 = vmatmul.msk.f32.gmra.mxu2 %vm244_vm4, %v3566_v18  ;;  %3063 = vmatmul.msk.f32.gmra.mxu3 %vm244_vm4, %v3566_v18 }
  0xd2   :  { %3040 = vmatmul.msk.f32.gmra.mxu0 %vm245_vm5, %v3566_v18  ;;  %3048 = vmatmul.msk.f32.gmra.mxu1 %vm245_vm5, %v3566_v18 }
  0xd3   :  { %3056 = vmatmul.msk.f32.gmra.mxu2 %vm245_vm5, %v3566_v18  ;;  %3064 = vmatmul.msk.f32.gmra.mxu3 %vm245_vm5, %v3566_v18 }
  0xda   :  { %3041 = vmatmul.msk.f32.gmra.mxu0 %vm246_vm6, %v3566_v18  ;;  %3049 = vmatmul.msk.f32.gmra.mxu1 %vm246_vm6, %v3566_v18 }
  0xdb   :  { %3057 = vmatmul.msk.f32.gmra.mxu2 %vm246_vm6, %v3566_v18  ;;  %3065 = vmatmul.msk.f32.gmra.mxu3 %vm246_vm6, %v3566_v18 }
  0xe2   :  { %3042 = vmatmul.msk.f32.gmra.mxu0 %vm247_vm7, %v3566_v18  ;;  %3050 = vmatmul.msk.f32.gmra.mxu1 %vm247_vm7, %v3566_v18 }
  0xe3   :  { %3058 = vmatmul.msk.f32.gmra.mxu2 %vm247_vm7, %v3566_v18  ;;  %3066 = vmatmul.msk.f32.gmra.mxu3 %vm247_vm7, %v3566_v18 }
  0xeb   :  { %572 = vmatmul.f32.vlgmr.msrb.gmra.mxu2 %v3567_v32  ;;  %592 = vmatmul.f32.vlgmr.msrb.gmra.mxu3 %v3567_v32 }
  0xec   :  { %855 = vmatpush.msrb.mxu2 %v3754_v9  ;;  %875 = vmatpush.msrb.mxu3 %v3764_v12 }
  0xee   :  { %856 = vmatpush.msrb.mxu2 %v3758_v10  ;;  %876 = vmatpush.msrb.mxu3 %v3772_v15 }
  0xf0   :  { %857 = vmatpush.msrb.mxu2 %v3762_v11  ;;  %877 = vmatpush.msrb.mxu3 %v3787_v20 }
  0xf2   :  { %858 = vmatpush.msrb.mxu2 %v3770_v14  ;;  %878 = vmatpush.msrb.mxu3 %v3800_v23 }
  0xf4   :  { %859 = vmatpush.msrb.mxu2 %v3785_v19  ;;  %879 = vmatpush.msrb.mxu3 %v3813_v26 }
  0xf6   :  { %860 = vmatpush.msrb.mxu2 %v3798_v22  ;;  %880 = vmatpush.msrb.mxu3 %v3826_v29 }
  0xf8   :  { %861 = vmatpush.msrb.mxu2 %v3811_v25  ;;  %881 = vmatpush.msrb.mxu3 %v3828_v30 }
  0xfa   :  { %862 = vmatpush.msrb.mxu2 %v3824_v28  ;;  %882 = vmatpush.msrb.mxu3 %v3833_v33 }
 0x127   :  { %v355_v40 = vpop.f32.mrf.mxu0  ;;  %v396_v41 = vpop.f32.mrf.mxu1 }
 0x128   :  { %v356_v42 = vadd.f32 %v355_v40, %v330_v38  ;;  %v397_v43 = vadd.f32 %v396_v41, %v331_v39 }
 0x12a   :  { %502 = vst [vmem:[#allocation2 + $0xb0] sm:$0xff] %v356_v42 }
 0x12b   :  { %503 = vst [vmem:[#allocation2] sm:$0xff] %v397_v43 }
 0x12e   :  { %v437_v46 = vpop.f32.mrf.mxu2  ;;  %v478_v47 = vpop.f32.mrf.mxu3 }
 0x12f   :  { %v358_v48 = vpop.f32.mrf.mxu0  ;;  %v399_v49 = vpop.f32.mrf.mxu1 }
 0x130   :  { %v359_v50 = vadd.f32 %v358_v48, %v330_v38  ;;  %v400_v51 = vadd.f32 %v399_v49, %v331_v39 }
 0x131   :  { %v550_v49 = vld [vmem:[#allocation2 + $0xb0] sm:$0x3] }
 0x132   :  { %506 = vst [vmem:[#allocation2 + $0x50] sm:$0xff] %v359_v50 }
 0x133   :  { %507 = vst [vmem:[#allocation2 + $0x68] sm:$0xff] %v400_v51 }
 0x136   :  { %v440_v52 = vpop.f32.mrf.mxu2  ;;  %v481_v53 = vpop.f32.mrf.mxu3 }
 0x137   :  { %v361_v54 = vpop.f32.mrf.mxu0  ;;  %v402_v55 = vpop.f32.mrf.mxu1 }
 0x138   :  { %v362_v56 = vadd.f32 %v361_v54, %v330_v38  ;;  %v403_v57 = vadd.f32 %v402_v55, %v331_v39 }
 0x13a   :  { %510 = vst [vmem:[#allocation2 + $0x80] sm:$0xff] %v362_v56  ;;  %v551_v56 = vld [vmem:[#allocation2] sm:$0x3] }
 0x13b   :  { %511 = vst [vmem:[#allocation2 + $0x88] sm:$0xff] %v403_v57 }
 0x13e   :  { %v443_v58 = vpop.f32.mrf.mxu2  ;;  %v484_v59 = vpop.f32.mrf.mxu3 }
 0x13f   :  { %v364_v60 = vpop.f32.mrf.mxu0  ;;  %v405_v61 = vpop.f32.mrf.mxu1 }
 0x140   :  { %v365_v62 = vadd.f32 %v364_v60, %v330_v38  ;;  %v406_v63 = vadd.f32 %v405_v61, %v331_v39 }
 0x142   :  { %514 = vst [vmem:[#allocation2 + $0x60] sm:$0xff] %v365_v62 }
 0x143   :  { %515 = vst [vmem:[#allocation2 + $0xf0] sm:$0xff] %v406_v63 }
 0x146   :  { %v446_v0 = vpop.f32.mrf.mxu2  ;;  %v487_v1 = vpop.f32.mrf.mxu3 }
 0x147   :  { %v367_v2 = vpop.f32.mrf.mxu0  ;;  %v408_v3 = vpop.f32.mrf.mxu1 }
 0x148   :  { %v368_v4 = vadd.f32 %v367_v2, %v330_v38  ;;  %v409_v5 = vadd.f32 %v408_v3, %v331_v39 }
 0x14a   :  { %518 = vst [vmem:[#allocation2 + $0x38] sm:$0xff] %v368_v4 }
 0x14b   :  { %519 = vst [vmem:[#allocation2 + $0x58] sm:$0xff] %v409_v5 }
 0x14e   :  { %v449_v6 = vpop.f32.mrf.mxu2  ;;  %v490_v7 = vpop.f32.mrf.mxu3 }
 0x14f   :  { %v370_v8 = vpop.f32.mrf.mxu0  ;;  %v411_v13 = vpop.f32.mrf.mxu1 }
 0x150   :  { %v371_v17 = vadd.f32 %v370_v8, %v330_v38  ;;  %v412_v18 = vadd.f32 %v411_v13, %v331_v39 }
 0x152   :  { %522 = vst [vmem:[#allocation2 + $0xe0] sm:$0xff] %v371_v17 }
 0x153   :  { %523 = vst [vmem:[#allocation2 + $0x90] sm:$0xff] %v412_v18 }
 0x156   :  { %v452_v21 = vpop.f32.mrf.mxu2  ;;  %v493_v24 = vpop.f32.mrf.mxu3 }
 0x157   :  { %v373_v27 = vpop.f32.mrf.mxu0  ;;  %v414_v31 = vpop.f32.mrf.mxu1 }
 0x158   :  { %v374_v32 = vadd.f32 %v373_v27, %v330_v38  ;;  %v415_v34 = vadd.f32 %v414_v31, %v331_v39 }
 0x15a   :  { %526 = vst [vmem:[#allocation2 + $0xa8] sm:$0xff] %v374_v32 }
 0x15b   :  { %527 = vst [vmem:[#allocation2 + $0xd0] sm:$0xff] %v415_v34 }
 0x15e   :  { %v455_v35 = vpop.f32.mrf.mxu2  ;;  %v496_v36 = vpop.f32.mrf.mxu3 }
 0x15f   :  { %v376_v37 = vpop.f32.mrf.mxu0  ;;  %v417_v40 = vpop.f32.mrf.mxu1 }
 0x160   :  { %v377_v41 = vadd.f32 %v376_v37, %v330_v38  ;;  %v418_v42 = vadd.f32 %v417_v40, %v331_v39  ;;  %v646_v40 = vld [vmem:[#allocation2 + $0x50] sm:$0x3] }
 0x162   :  { %530 = vst [vmem:[#allocation2 + $0xa0] sm:$0xff] %v377_v41 }
 0x163   :  { %531 = vst [vmem:[#allocation2 + $0xf8] sm:$0xff] %v418_v42 }
 0x166   :  { %v458_v43 = vpop.f32.mrf.mxu2  ;;  %v499_v46 = vpop.f32.mrf.mxu3 }
 0x167   :  { %v459_v47 = vadd.f32 %v458_v43, %v332_v44  ;;  %v500_v48 = vadd.f32 %v499_v46, %v333_v45 }
 0x169   :  { %532 = vst [vmem:[#allocation2 + $0x20] sm:$0xff] %v459_v47 }
 0x16a   :  { %533 = vst [vmem:[#allocation2 + $0x98] sm:$0xff] %v500_v48 }
 0x16e   :  { %v573_v50 = vpop.f32.mrf.mxu2  ;;  %v593_v55 = vpop.f32.mrf.mxu3 }
 0x16f   :  { %v596_v51 = vadd.f32 %v573_v50, %v550_v49  ;;  %v597_v39 = vadd.f32 %v593_v55, %v551_v56  ;;  %v647_v49 = vld [vmem:[#allocation2 + $0x68] sm:$0x3] }
 0x171   :  { %v3067_v52 = vmul.f32 -1.442695, %v596_v51  ;;  %v3068_v2 = vmul.f32 -1.442695, %v597_v39 }
 0x173   :  { %3159 = vpow2.f32 %v3067_v52 }
 0x179   :  { %v3160_v53 = vpop.eup %3159 }
 0x17a   :  { %v601_v54 = vadd.f32 1.0, %v3160_v53 }
 0x17c   :  { %3161 = vrcp.f32 %v601_v54  ;;  %v613_v59 = vand.u32 2147483648, %v601_v54  ;;  %v611_v45 = vand.u32 2147483647, %v601_v54  ;;  %vm607_vm9 = vweird.f32 %v601_v54 }
 0x17d   :  { %3163 = vtanh.f32 %v597_v39 }
 0x17e   :  { %v614_v61 = vor.u32 1.1754944e-38, %v613_v59  ;;  %vm612_vm11 = vcmp.eq.f32.partialorder %v611_v45, 8.507059e+37  ;;  %3165 = vpow2.f32 %v3068_v2 }
 0x182   :  { %v3162_v38 = vpop.eup %3161 }
 0x183   :  { %v603_v57 = vmul.f32 %v3162_v38, %v601_v54  ;;  %vm608_vm8 = vweird.f32 %v3162_v38  ;;  %v3164_v63 = vpop.eup %3163 }
 0x184   :  { %vm609_vm10 = vmor %vm607_vm9, %vm608_vm8  ;;  %v3166_v3 = vpop.eup %3165 }
 0x185   :  { %v604_v58 = vsub.f32 1.0, %v603_v57  ;;  %v621_v4 = vadd.f32 1.0, %v3166_v3 }
 0x187   :  { %v605_v44 = vmul.f32 %v3162_v38, %v604_v58  ;;  %3167 = vrcp.f32 %v621_v4  ;;  %v633_v24 = vand.u32 2147483648, %v621_v4  ;;  %vm627_vm13 = vweird.f32 %v621_v4 }
 0x188   :  { %v631_v27 = vand.u32 2147483647, %v621_v4 }
 0x189   :  { %v606_v60 = vadd.f32 %v3162_v38, %v605_v44  ;;  %v634_v32 = vor.u32 1.1754944e-38, %v633_v24 }
 0x18a   :  { %vm632_vm15 = vcmp.eq.f32.partialorder %v631_v27, 8.507059e+37  ;;  %v743_v27 = vld [vmem:[#allocation2 + $0x80] sm:$0x3] }
 0x18b   :  { %v610_v62 = vsel %vm609_vm10, %v3162_v38, %v606_v60 }
 0x18c   :  { %v615_v0 = vsel %vm612_vm11, %v614_v61, %v610_v62 }
 0x18d   :  { %v638_v1 = vmul.f32 %v3164_v63, %v615_v0  ;;  %v3168_v5 = vpop.eup %3167  ;;  %v637_v13 = vmul.f32 0.0, %v615_v0 }
 0x18e   :  { %v623_v6 = vmul.f32 %v3168_v5, %v621_v4  ;;  %vm628_vm12 = vweird.f32 %v3168_v5 }
 0x18f   :  { %640 = vrot.lane.b32.xlu2 %v638_v1, %s3568_s17  ;;  %vm629_vm14 = vmor %vm627_vm13, %vm628_vm12 }
 0x190   :  { %v624_v7 = vsub.f32 1.0, %v623_v6 }
 0x192   :  { %v625_v8 = vmul.f32 %v3168_v5, %v624_v7 }
 0x194   :  { %v626_v21 = vadd.f32 %v3168_v5, %v625_v8 }
 0x196   :  { %v630_v31 = vsel %vm629_vm14, %v3168_v5, %v626_v21 }
 0x197   :  { %v635_v35 = vsel %vm632_vm15, %v634_v32, %v630_v31 }
 0x1e9   :  { %v641_v17 = vpop.permute.xlu2 %640 }
 0x1ea   :  { %v3921_v18 = vadd.f32 %v641_v17, %v637_v13 }
 0x1ec   :  { %3169 = vtanh.f32 %v3921_v18 }
 0x1f2   :  { %v3170_v34 = vpop.eup %3169 }
 0x1f3   :  { %v645_v36 = vmul.f32 %v3170_v34, %v635_v35 }
 0x1f5   :  { %649 = vrot.lane.b32.xlu0 %v645_v36, %s3568_s17 }
 0x267   :  { %v650_v37 = vpop.permute.xlu0 %649 }
 0x268   :  { %3069 = vmatmul.msk.f32.vlgmr.msra.gmra.mxu2 %vm552_vm0, %v650_v37  ;;  %3070 = vmatmul.msk.f32.vlgmr.msra.gmra.mxu3 %vm552_vm0, %v650_v37 }
 0x269   :  { %1049 = vmatpush.msra.mxu2 %v3754_v9  ;;  %1069 = vmatpush.msra.mxu3 %v3764_v12 }
 0x26b   :  { %1050 = vmatpush.msra.mxu2 %v3758_v10  ;;  %1070 = vmatpush.msra.mxu3 %v3772_v15 }
 0x26d   :  { %1051 = vmatpush.msra.mxu2 %v3762_v11  ;;  %1071 = vmatpush.msra.mxu3 %v3787_v20 }
 0x26f   :  { %1052 = vmatpush.msra.mxu2 %v3770_v14  ;;  %1072 = vmatpush.msra.mxu3 %v3800_v23 }
 0x271   :  { %1053 = vmatpush.msra.mxu2 %v3785_v19  ;;  %1073 = vmatpush.msra.mxu3 %v3813_v26 }
 0x273   :  { %1054 = vmatpush.msra.mxu2 %v3798_v22  ;;  %1074 = vmatpush.msra.mxu3 %v3826_v29 }
 0x275   :  { %1055 = vmatpush.msra.mxu2 %v3811_v25  ;;  %1075 = vmatpush.msra.mxu3 %v3828_v30 }
 0x277   :  { %1056 = vmatpush.msra.mxu2 %v3824_v28  ;;  %1076 = vmatpush.msra.mxu3 %v3833_v33 }
 0x2eb   :  { %v670_v41 = vpop.f32.mrf.mxu2  ;;  %v690_v48 = vpop.f32.mrf.mxu3 }
 0x2ec   :  { %v693_v42 = vadd.f32 %v670_v41, %v646_v40  ;;  %v694_v51 = vadd.f32 %v690_v48, %v647_v49  ;;  %v744_v40 = vld [vmem:[#allocation2 + $0x88] sm:$0x3] }
 0x2ee   :  { %v3071_v43 = vmul.f32 -1.442695, %v693_v42  ;;  %v3072_v45 = vmul.f32 -1.442695, %v694_v51 }
 0x2f0   :  { %3171 = vpow2.f32 %v3071_v43 }
 0x2f6   :  { %v3172_v46 = vpop.eup %3171 }
 0x2f7   :  { %v698_v47 = vadd.f32 1.0, %v3172_v46 }
 0x2f9   :  { %3173 = vrcp.f32 %v698_v47  ;;  %v710_v54 = vand.u32 2147483648, %v698_v47  ;;  %v708_v56 = vand.u32 2147483647, %v698_v47  ;;  %vm704_vm2 = vweird.f32 %v698_v47 }
 0x2fa   :  { %3175 = vtanh.f32 %v694_v51 }
 0x2fb   :  { %v711_v39 = vor.u32 1.1754944e-38, %v710_v54  ;;  %vm709_vm4 = vcmp.eq.f32.partialorder %v708_v56, 8.507059e+37  ;;  %3177 = vpow2.f32 %v3072_v45 }
 0x2ff   :  { %v3174_v50 = vpop.eup %3173 }
 0x300   :  { %v700_v52 = vmul.f32 %v3174_v50, %v698_v47  ;;  %vm705_vm1 = vweird.f32 %v3174_v50  ;;  %v3176_v58 = vpop.eup %3175 }
 0x301   :  { %vm706_vm3 = vmor %vm704_vm2, %vm705_vm1  ;;  %v3178_v60 = vpop.eup %3177 }
 0x302   :  { %v701_v53 = vsub.f32 1.0, %v700_v52  ;;  %v718_v61 = vadd.f32 1.0, %v3178_v60 }
 0x304   :  { %v702_v55 = vmul.f32 %v3174_v50, %v701_v53  ;;  %3179 = vrcp.f32 %v718_v61  ;;  %v730_v6 = vand.u32 2147483648, %v718_v61  ;;  %vm724_vm6 = vweird.f32 %v718_v61 }
 0x305   :  { %v728_v7 = vand.u32 2147483647, %v718_v61 }
 0x306   :  { %v703_v38 = vadd.f32 %v3174_v50, %v702_v55  ;;  %v731_v13 = vor.u32 1.1754944e-38, %v730_v6 }
 0x307   :  { %vm729_vm8 = vcmp.eq.f32.partialorder %v728_v7, 8.507059e+37 }
 0x308   :  { %v707_v57 = vsel %vm706_vm3, %v3174_v50, %v703_v38 }
 0x309   :  { %v712_v59 = vsel %vm709_vm4, %v711_v39, %v707_v57 }
 0x30a   :  { %v735_v44 = vmul.f32 %v3176_v58, %v712_v59  ;;  %v3180_v62 = vpop.eup %3179  ;;  %v734_v2 = vmul.f32 %v712_v59, %v3921_v18 }
 0x30b   :  { %v720_v63 = vmul.f32 %v3180_v62, %v718_v61  ;;  %vm725_vm5 = vweird.f32 %v3180_v62 }
 0x30c   :  { %737 = vrot.lane.b32.xlu1 %v735_v44, %s3568_s17  ;;  %vm726_vm7 = vmor %vm724_vm6, %vm725_vm5 }
 0x30d   :  { %v721_v0 = vsub.f32 1.0, %v720_v63 }
 0x30f   :  { %v722_v1 = vmul.f32 %v3180_v62, %v721_v0 }
 0x311   :  { %v723_v5 = vadd.f32 %v3180_v62, %v722_v1 }
 0x313   :  { %v727_v8 = vsel %vm726_vm7, %v3180_v62, %v723_v5 }
 0x314   :  { %v732_v21 = vsel %vm729_vm8, %v731_v13, %v727_v8 }
 0x37e   :  { %v738_v3 = vpop.permute.xlu1 %737 }
 0x37f   :  { %v3945_v4 = vadd.f32 %v738_v3, %v734_v2 }
 0x381   :  { %3181 = vtanh.f32 %v3945_v4 }
 0x387   :  { %v3182_v17 = vpop.eup %3181 }
 0x388   :  { %v742_v24 = vmul.f32 %v3182_v17, %v732_v21 }
 0x38a   :  { %746 = vrot.lane.b32.xlu2 %v742_v24, %s3568_s17 }
 0x3e4   :  { %v747_v18 = vpop.permute.xlu2 %746 }
 0x3e5   :  { %3073 = vmatmul.msk.f32.vlgmr.msrb.gmra.mxu0 %vm552_vm0, %v747_v18  ;;  %3074 = vmatmul.msk.f32.vlgmr.msrb.gmra.mxu1 %vm552_vm0, %v747_v18 }
 0x3e6   :  { %1146 = vmatpush.msrb.mxu0 %v3754_v9  ;;  %1166 = vmatpush.msrb.mxu1 %v3764_v12 }
 0x3e8   :  { %1147 = vmatpush.msrb.mxu0 %v3758_v10  ;;  %1167 = vmatpush.msrb.mxu1 %v3772_v15 }
 0x3ea   :  { %1148 = vmatpush.msrb.mxu0 %v3762_v11  ;;  %1168 = vmatpush.msrb.mxu1 %v3787_v20 }
 0x3ec   :  { %1149 = vmatpush.msrb.mxu0 %v3770_v14  ;;  %1169 = vmatpush.msrb.mxu1 %v3800_v23 }
 0x3ee   :  { %1150 = vmatpush.msrb.mxu0 %v3785_v19  ;;  %1170 = vmatpush.msrb.mxu1 %v3813_v26 }
 0x3f0   :  { %1151 = vmatpush.msrb.mxu0 %v3798_v22  ;;  %1171 = vmatpush.msrb.mxu1 %v3826_v29 }
 0x3f2   :  { %1152 = vmatpush.msrb.mxu0 %v3811_v25  ;;  %1172 = vmatpush.msrb.mxu1 %v3828_v30 }
 0x3f4   :  { %1153 = vmatpush.msrb.mxu0 %v3824_v28  ;;  %1173 = vmatpush.msrb.mxu1 %v3833_v33 }
 0x462   :  { %v767_v31 = vpop.f32.mrf.mxu0  ;;  %v787_v37 = vpop.f32.mrf.mxu1 }
 0x463   :  { %v790_v32 = vadd.f32 %v767_v31, %v743_v27  ;;  %v791_v42 = vadd.f32 %v787_v37, %v744_v40 }
 0x465   :  { %v3075_v34 = vmul.f32 -1.442695, %v790_v32  ;;  %v3076_v56 = vmul.f32 -1.442695, %v791_v42 }
 0x467   :  { %3183 = vpow2.f32 %v3075_v34 }
 0x46d   :  { %v3184_v35 = vpop.eup %3183 }
 0x46e   :  { %v795_v36 = vadd.f32 1.0, %v3184_v35 }
 0x470   :  { %3185 = vrcp.f32 %v795_v36  ;;  %v807_v47 = vand.u32 2147483648, %v795_v36  ;;  %v805_v49 = vand.u32 2147483647, %v795_v36  ;;  %vm801_vm10 = vweird.f32 %v795_v36 }
 0x471   :  { %3187 = vtanh.f32 %v791_v42 }
 0x472   :  { %v808_v51 = vor.u32 1.1754944e-38, %v807_v47  ;;  %vm806_vm12 = vcmp.eq.f32.partialorder %v805_v49, 8.507059e+37  ;;  %3189 = vpow2.f32 %v3076_v56 }
 0x476   :  { %v3186_v41 = vpop.eup %3185 }
 0x477   :  { %v797_v43 = vmul.f32 %v3186_v41, %v795_v36  ;;  %vm802_vm9 = vweird.f32 %v3186_v41  ;;  %v3188_v53 = vpop.eup %3187 }
 0x478   :  { %vm803_vm11 = vmor %vm801_vm10, %vm802_vm9  ;;  %v3190_v38 = vpop.eup %3189 }
 0x479   :  { %v798_v46 = vsub.f32 1.0, %v797_v43  ;;  %v815_v39 = vadd.f32 1.0, %v3190_v38 }
 0x47b   :  { %v799_v48 = vmul.f32 %v3186_v41, %v798_v46  ;;  %3191 = vrcp.f32 %v815_v39  ;;  %v827_v63 = vand.u32 2147483648, %v815_v39  ;;  %vm821_vm14 = vweird.f32 %v815_v39 }
 0x47c   :  { %v825_v0 = vand.u32 2147483647, %v815_v39 }
 0x47d   :  { %v800_v50 = vadd.f32 %v3186_v41, %v799_v48  ;;  %v828_v2 = vor.u32 1.1754944e-38, %v827_v63 }
 0x47e   :  { %vm826_vm1 = vcmp.eq.f32.partialorder %v825_v0, 8.507059e+37 }
 0x47f   :  { %v804_v52 = vsel %vm803_vm11, %v3186_v41, %v800_v50 }
 0x480   :  { %v809_v54 = vsel %vm806_vm12, %v808_v51, %v804_v52  ;;  %v937_v52 = vld [vmem:[#allocation2 + $0x38] sm:$0x3] }
 0x481   :  { %v832_v55 = vmul.f32 %v3188_v53, %v809_v54  ;;  %v3192_v57 = vpop.eup %3191  ;;  %v831_v45 = vmul.f32 %v809_v54, %v3945_v4 }
 0x482   :  { %v817_v58 = vmul.f32 %v3192_v57, %v815_v39  ;;  %vm822_vm13 = vweird.f32 %v3192_v57 }
 0x483   :  { %834 = vrot.lane.b32.xlu0 %v832_v55, %s3568_s17  ;;  %vm823_vm15 = vmor %vm821_vm14, %vm822_vm13 }
 0x484   :  { %v818_v59 = vsub.f32 1.0, %v817_v58 }
 0x486   :  { %v819_v44 = vmul.f32 %v3192_v57, %v818_v59 }
 0x488   :  { %v820_v62 = vadd.f32 %v3192_v57, %v819_v44 }
 0x48a   :  { %v824_v1 = vsel %vm823_vm15, %v3192_v57, %v820_v62  ;;  %v938_v57 = vld [vmem:[#allocation2 + $0x58] sm:$0x3] }
 0x48b   :  { %v829_v5 = vsel %vm826_vm1, %v828_v2, %v824_v1 }
 0x4f5   :  { %v835_v60 = vpop.permute.xlu0 %834 }
 0x4f6   :  { %v3969_v61 = vadd.f32 %v835_v60, %v831_v45 }
 0x4f8   :  { %3193 = vtanh.f32 %v3969_v61 }
 0x4fe   :  { %v3194_v3 = vpop.eup %3193 }
 0x4ff   :  { %v839_v6 = vmul.f32 %v3194_v3, %v829_v5 }
 0x501   :  { %843 = vrot.lane.b32.xlu1 %v839_v6, %s3568_s17 }
 0x573   :  { %v844_v4 = vpop.permute.xlu1 %843 }
 0x574   :  { %3077 = vmatmul.msk.f32.vlgmr.msrb.gmra.mxu2 %vm552_vm0, %v844_v4  ;;  %3078 = vmatmul.msk.f32.vlgmr.msrb.gmra.mxu3 %vm552_vm0, %v844_v4 }
 0x575   :  { %1243 = vmatpush.msrb.mxu2 %v3754_v9  ;;  %1263 = vmatpush.msrb.mxu3 %v3764_v12  ;;  %v840_v9 = vld [vmem:[#allocation2 + $0x60] sm:$0x3] }
 0x577   :  { %1244 = vmatpush.msrb.mxu2 %v3758_v10  ;;  %1264 = vmatpush.msrb.mxu3 %v3772_v15 }
 0x579   :  { %1245 = vmatpush.msrb.mxu2 %v3762_v11  ;;  %1265 = vmatpush.msrb.mxu3 %v3787_v20  ;;  %v841_v20 = vld [vmem:[#allocation2 + $0xf0] sm:$0x3] }
 0x57b   :  { %1246 = vmatpush.msrb.mxu2 %v3770_v14  ;;  %1266 = vmatpush.msrb.mxu3 %v3800_v23 }
 0x57d   :  { %1247 = vmatpush.msrb.mxu2 %v3785_v19  ;;  %1267 = vmatpush.msrb.mxu3 %v3813_v26 }
 0x57f   :  { %1248 = vmatpush.msrb.mxu2 %v3798_v22  ;;  %1268 = vmatpush.msrb.mxu3 %v3826_v29 }
 0x581   :  { %1249 = vmatpush.msrb.mxu2 %v3811_v25  ;;  %1269 = vmatpush.msrb.mxu3 %v3828_v30 }
 0x583   :  { %1250 = vmatpush.msrb.mxu2 %v3824_v28  ;;  %1270 = vmatpush.msrb.mxu3 %v3833_v33 }
 0x5f7   :  { %v864_v10 = vpop.f32.mrf.mxu2  ;;  %v884_v19 = vpop.f32.mrf.mxu3 }
 0x5f8   :  { %v887_v11 = vadd.f32 %v864_v10, %v840_v9  ;;  %v888_v23 = vadd.f32 %v884_v19, %v841_v20 }
 0x5fa   :  { %v3079_v12 = vmul.f32 -1.442695, %v887_v11  ;;  %v3080_v24 = vmul.f32 -1.442695, %v888_v23 }
 0x5fc   :  { %3195 = vpow2.f32 %v3079_v12 }
 0x602   :  { %v3196_v14 = vpop.eup %3195 }
 0x603   :  { %v892_v15 = vadd.f32 1.0, %v3196_v14 }
 0x605   :  { %3197 = vrcp.f32 %v892_v15  ;;  %v904_v29 = vand.u32 2147483648, %v892_v15  ;;  %v902_v28 = vand.u32 2147483647, %v892_v15  ;;  %vm898_vm3 = vweird.f32 %v892_v15 }
 0x606   :  { %3199 = vtanh.f32 %v888_v23 }
 0x607   :  { %v905_v7 = vor.u32 1.1754944e-38, %v904_v29  ;;  %vm903_vm5 = vcmp.eq.f32.partialorder %v902_v28, 8.507059e+37  ;;  %3201 = vpow2.f32 %v3080_v24 }
 0x60b   :  { %v3198_v22 = vpop.eup %3197 }
 0x60c   :  { %v894_v26 = vmul.f32 %v3198_v22, %v892_v15  ;;  %vm899_vm2 = vweird.f32 %v3198_v22  ;;  %v3200_v13 = vpop.eup %3199 }
 0x60d   :  { %vm900_vm4 = vmor %vm898_vm3, %vm899_vm2  ;;  %v3202_v18 = vpop.eup %3201 }
 0x60e   :  { %v895_v25 = vsub.f32 1.0, %v894_v26  ;;  %v912_v27 = vadd.f32 1.0, %v3202_v18 }
 0x610   :  { %v896_v30 = vmul.f32 %v3198_v22, %v895_v25  ;;  %3203 = vrcp.f32 %v912_v27  ;;  %v924_v42 = vand.u32 2147483648, %v912_v27  ;;  %vm918_vm7 = vweird.f32 %v912_v27 }
 0x611   :  { %v922_v43 = vand.u32 2147483647, %v912_v27 }
 0x612   :  { %v897_v33 = vadd.f32 %v3198_v22, %v896_v30  ;;  %v925_v47 = vor.u32 1.1754944e-38, %v924_v42 }
 0x613   :  { %vm923_vm9 = vcmp.eq.f32.partialorder %v922_v43, 8.507059e+37 }
 0x614   :  { %v901_v8 = vsel %vm900_vm4, %v3198_v22, %v897_v33 }
 0x615   :  { %v906_v17 = vsel %vm903_vm5, %v905_v7, %v901_v8  ;;  %v1034_v8 = vld [vmem:[#allocation2 + $0xe0] sm:$0x3] }
 0x616   :  { %v929_v21 = vmul.f32 %v3200_v13, %v906_v17  ;;  %v3204_v31 = vpop.eup %3203  ;;  %v928_v36 = vmul.f32 %v906_v17, %v3969_v61 }
 0x617   :  { %v914_v32 = vmul.f32 %v3204_v31, %v912_v27  ;;  %vm919_vm6 = vweird.f32 %v3204_v31 }
 0x618   :  { %931 = vrot.lane.b32.xlu2 %v929_v21, %s3568_s17  ;;  %vm920_vm8 = vmor %vm918_vm7, %vm919_vm6 }
 0x619   :  { %v915_v34 = vsub.f32 1.0, %v914_v32 }
 0x61b   :  { %v916_v35 = vmul.f32 %v3204_v31, %v915_v34 }
 0x61d   :  { %v917_v41 = vadd.f32 %v3204_v31, %v916_v35 }
 0x61f   :  { %v921_v46 = vsel %vm920_vm8, %v3204_v31, %v917_v41  ;;  %v1035_v31 = vld [vmem:[#allocation2 + $0x90] sm:$0x3] }
 0x620   :  { %v926_v49 = vsel %vm923_vm9, %v925_v47, %v921_v46 }
 0x672   :  { %v932_v37 = vpop.permute.xlu2 %931 }
 0x673   :  { %v934_v40 = vadd.f32 %v932_v37, %v928_v36 }
 0x675   :  { %3205 = vtanh.f32 %v934_v40 }
 0x67b   :  { %v3206_v48 = vpop.eup %3205 }
 0x67c   :  { %v936_v50 = vmul.f32 %v3206_v48, %v926_v49 }
 0x67e   :  { %940 = vrot.lane.b32.xlu0 %v936_v50, %s3568_s17 }
 0x6f0   :  { %v941_v51 = vpop.permute.xlu0 %940 }
 0x6f1   :  { %3081 = vmatmul.msk.f32.vlgmr.msra.gmra.mxu0 %vm552_vm0, %v941_v51  ;;  %3082 = vmatmul.msk.f32.vlgmr.msra.gmra.mxu1 %vm552_vm0, %v941_v51 }
 0x76e   :  { %v961_v53 = vpop.f32.mrf.mxu0  ;;  %v981_v39 = vpop.f32.mrf.mxu1 }
 0x76f   :  { %v984_v54 = vadd.f32 %v961_v53, %v937_v52  ;;  %v985_v59 = vadd.f32 %v981_v39, %v938_v57 }
 0x771   :  { %v3083_v55 = vmul.f32 -1.442695, %v984_v54  ;;  %v3084_v6 = vmul.f32 -1.442695, %v985_v59 }
 0x773   :  { %3207 = vpow2.f32 %v3083_v55 }
 0x779   :  { %v3208_v56 = vpop.eup %3207 }
 0x77a   :  { %v989_v38 = vadd.f32 1.0, %v3208_v56 }
 0x77c   :  { %3209 = vrcp.f32 %v989_v38  ;;  %v1001_v60 = vand.u32 2147483648, %v989_v38  ;;  %v999_v62 = vand.u32 2147483647, %v989_v38  ;;  %vm995_vm11 = vweird.f32 %v989_v38 }
 0x77d   :  { %3211 = vtanh.f32 %v985_v59 }
 0x77e   :  { %v1002_v0 = vor.u32 1.1754944e-38, %v1001_v60  ;;  %vm1000_vm13 = vcmp.eq.f32.partialorder %v999_v62, 8.507059e+37  ;;  %3213 = vpow2.f32 %v3084_v6  ;;  %v1131_v6 = vld [vmem:[#allocation2 + $0xa8] sm:$0x3] }
 0x782   :  { %v3210_v58 = vpop.eup %3209 }
 0x783   :  { %v991_v44 = vmul.f32 %v3210_v58, %v989_v38  ;;  %vm996_vm10 = vweird.f32 %v3210_v58  ;;  %v3212_v2 = vpop.eup %3211 }
 0x784   :  { %vm997_vm12 = vmor %vm995_vm11, %vm996_vm10  ;;  %v3214_v4 = vpop.eup %3213 }
 0x785   :  { %v992_v45 = vsub.f32 1.0, %v991_v44  ;;  %v1009_v9 = vadd.f32 1.0, %v3214_v4 }
 0x787   :  { %v993_v61 = vmul.f32 %v3210_v58, %v992_v45  ;;  %3215 = vrcp.f32 %v1009_v9  ;;  %v1021_v23 = vand.u32 2147483648, %v1009_v9  ;;  %vm1015_vm15 = vweird.f32 %v1009_v9 }
 0x788   :  { %v1019_v26 = vand.u32 2147483647, %v1009_v9 }
 0x789   :  { %v994_v63 = vadd.f32 %v3210_v58, %v993_v61  ;;  %v1022_v29 = vor.u32 1.1754944e-38, %v1021_v23  ;;  %v1132_v23 = vld [vmem:[#allocation2 + $0xd0] sm:$0x3] }
 0x78a   :  { %vm1020_vm2 = vcmp.eq.f32.partialorder %v1019_v26, 8.507059e+37 }
 0x78b   :  { %v998_v1 = vsel %vm997_vm12, %v3210_v58, %v994_v63 }
 0x78c   :  { %v1003_v3 = vsel %vm1000_vm13, %v1002_v0, %v998_v1  ;;  %v1325_v1 = vld [vmem:[#allocation2 + $0x20] sm:$0x3] }
 0x78d   :  { %v1026_v5 = vmul.f32 %v3212_v2, %v1003_v3  ;;  %v3216_v10 = vpop.eup %3215  ;;  %v1025_v15 = vmul.f32 %v1003_v3, %v934_v40  ;;  %v3097_v2 = vmul.f32 -1.442695, %v1325_v1 }
 0x78e   :  { %v1011_v11 = vmul.f32 %v3216_v10, %v1009_v9  ;;  %vm1016_vm14 = vweird.f32 %v3216_v10 }
 0x78f   :  { %1028 = vrot.lane.b32.xlu1 %v1026_v5, %s3568_s17  ;;  %vm1017_vm1 = vmor %vm1015_vm15, %vm1016_vm14 }
 0x790   :  { %v1012_v12 = vsub.f32 1.0, %v1011_v11 }
 0x792   :  { %v1013_v14 = vmul.f32 %v3216_v10, %v1012_v12 }
 0x794   :  { %v1014_v22 = vadd.f32 %v3216_v10, %v1013_v14 }
 0x796   :  { %v1018_v25 = vsel %vm1017_vm1, %v3216_v10, %v1014_v22 }
 0x797   :  { %v1023_v28 = vsel %vm1020_vm2, %v1022_v29, %v1018_v25  ;;  %v1326_v29 = vld [vmem:[#allocation2 + $0x98] sm:$0x3] }
 0x801   :  { %v1029_v19 = vpop.permute.xlu1 %1028 }
 0x802   :  { %v1031_v20 = vadd.f32 %v1029_v19, %v1025_v15 }
 0x804   :  { %3217 = vtanh.f32 %v1031_v20 }
 0x80a   :  { %v3218_v30 = vpop.eup %3217 }
 0x80b   :  { %v1033_v33 = vmul.f32 %v3218_v30, %v1023_v28 }
 0x80d   :  { %1037 = vrot.lane.b32.xlu2 %v1033_v33, %s3568_s17 }
 0x867   :  { %v1038_v7 = vpop.permute.xlu2 %1037 }
 0x868   :  { %3085 = vmatmul.msk.f32.vlgmr.msra.gmra.mxu2 %vm552_vm0, %v1038_v7  ;;  %3086 = vmatmul.msk.f32.vlgmr.msra.gmra.mxu3 %vm552_vm0, %v1038_v7 }
 0x8eb   :  { %v1058_v13 = vpop.f32.mrf.mxu2  ;;  %v1078_v27 = vpop.f32.mrf.mxu3 }
 0x8ec   :  { %v1081_v17 = vadd.f32 %v1058_v13, %v1034_v8  ;;  %v1082_v34 = vadd.f32 %v1078_v27, %v1035_v31 }
 0x8ee   :  { %v3087_v21 = vmul.f32 -1.442695, %v1081_v17  ;;  %v3088_v50 = vmul.f32 -1.442695, %v1082_v34 }
 0x8f0   :  { %3219 = vpow2.f32 %v3087_v21 }
 0x8f6   :  { %v3220_v24 = vpop.eup %3219 }
 0x8f7   :  { %v1086_v18 = vadd.f32 1.0, %v3220_v24 }
 0x8f9   :  { %3221 = vrcp.f32 %v1086_v18  ;;  %v1098_v37 = vand.u32 2147483648, %v1086_v18  ;;  %v1096_v41 = vand.u32 2147483647, %v1086_v18  ;;  %vm1092_vm4 = vweird.f32 %v1086_v18 }
 0x8fa   :  { %3223 = vtanh.f32 %v1082_v34 }
 0x8fb   :  { %v1099_v43 = vor.u32 1.1754944e-38, %v1098_v37  ;;  %vm1097_vm6 = vcmp.eq.f32.partialorder %v1096_v41, 8.507059e+37  ;;  %3225 = vpow2.f32 %v3088_v50 }
 0x8ff   :  { %v3222_v32 = vpop.eup %3221 }
 0x900   :  { %v1088_v35 = vmul.f32 %v3222_v32, %v1086_v18  ;;  %vm1093_vm3 = vweird.f32 %v3222_v32  ;;  %v3224_v47 = vpop.eup %3223 }
 0x901   :  { %vm1094_vm5 = vmor %vm1092_vm4, %vm1093_vm3  ;;  %v3226_v51 = vpop.eup %3225 }
 0x902   :  { %v1089_v36 = vsub.f32 1.0, %v1088_v35  ;;  %v1106_v52 = vadd.f32 1.0, %v3226_v51 }
 0x904   :  { %v1090_v40 = vmul.f32 %v3222_v32, %v1089_v36  ;;  %3227 = vrcp.f32 %v1106_v52  ;;  %v1118_v59 = vand.u32 2147483648, %v1106_v52  ;;  %vm1112_vm8 = vweird.f32 %v1106_v52 }
 0x905   :  { %v1116_v44 = vand.u32 2147483647, %v1106_v52 }
 0x906   :  { %v1091_v42 = vadd.f32 %v3222_v32, %v1090_v40  ;;  %v1119_v60 = vor.u32 1.1754944e-38, %v1118_v59 }
 0x907   :  { %vm1117_vm10 = vcmp.eq.f32.partialorder %v1116_v44, 8.507059e+37 }
 0x908   :  { %v1095_v46 = vsel %vm1094_vm5, %v3222_v32, %v1091_v42 }
 0x909   :  { %v1100_v48 = vsel %vm1097_vm6, %v1099_v43, %v1095_v46  ;;  %v3098_v46 = vmul.f32 -1.442695, %v1326_v29 }
 0x90a   :  { %v1123_v49 = vmul.f32 %v3224_v47, %v1100_v48  ;;  %v3228_v53 = vpop.eup %3227  ;;  %v1122_v38 = vmul.f32 %v1100_v48, %v1031_v20 }
 0x90b   :  { %v1108_v54 = vmul.f32 %v3228_v53, %v1106_v52  ;;  %vm1113_vm7 = vweird.f32 %v3228_v53 }
 0x90c   :  { %1125 = vrot.lane.b32.xlu0 %v1123_v49, %s3568_s17  ;;  %vm1114_vm9 = vmor %vm1112_vm8, %vm1113_vm7 }
 0x90d   :  { %v1109_v55 = vsub.f32 1.0, %v1108_v54 }
 0x90f   :  { %v1110_v56 = vmul.f32 %v3228_v53, %v1109_v55  ;;  %v1388_v55 = vld [vmem:[#allocation9 + $0x78] sm:$0xff] }
 0x910   :  { %1402 = vmatpush.msra.mxu0 %v1388_v55  ;;  %v1378_v55 = vld [vmem:[#allocation9 + $0x28] sm:$0xff] }
 0x911   :  { %v1111_v58 = vadd.f32 %v3228_v53, %v1110_v56  ;;  %v1387_v56 = vld [vmem:[#allocation9 + $0x70] sm:$0xff] }
 0x912   :  { %1403 = vmatpush.msra.mxu0 %v1387_v56  ;;  %v1656_v56 = vld [vmem:[#allocation12 + $0xf0] sm:$0xff] }
 0x913   :  { %v1115_v45 = vsel %vm1114_vm9, %v3228_v53, %v1111_v58  ;;  %v1386_v58 = vld [vmem:[#allocation9 + $0x68] sm:$0xff] }
 0x914   :  { %v1120_v62 = vsel %vm1117_vm10, %v1119_v60, %v1115_v45  ;;  %v1385_v45 = vld [vmem:[#allocation9 + $0x60] sm:$0xff]  ;;  %1404 = vmatpush.msra.mxu0 %v1386_v58  ;;  %v1652_v58 = vld [vmem:[#allocation12 + $0xd0] sm:$0xff] }
 0x916   :  { %1405 = vmatpush.msra.mxu0 %v1385_v45  ;;  %v1650_v45 = vld [vmem:[#allocation12 + $0xc0] sm:$0xff] }
 0x97e   :  { %v1126_v39 = vpop.permute.xlu0 %1125 }
 0x97f   :  { %v4001_v57 = vadd.f32 %v1126_v39, %v1122_v38 }
 0x981   :  { %3229 = vtanh.f32 %v4001_v57 }
 0x982   :  { %3231 = vpow2.f32 %v3097_v2 }
 0x987   :  { %v3230_v61 = vpop.eup %3229 }
 0x988   :  { %v1130_v63 = vmul.f32 %v3230_v61, %v1120_v62  ;;  %v3232_v3 = vpop.eup %3231 }
 0x989   :  { %v1330_v5 = vadd.f32 1.0, %v3232_v3 }
 0x98a   :  { %1134 = vrot.lane.b32.xlu1 %v1130_v63, %s3568_s17 }
 0x98b   :  { %3233 = vrcp.f32 %v1330_v5  ;;  %v1342_v33 = vand.u32 2147483648, %v1330_v5  ;;  %vm1336_vm12 = vweird.f32 %v1330_v5  ;;  %v1340_v7 = vand.u32 2147483647, %v1330_v5 }
 0x98d   :  { %v1343_v18 = vor.u32 1.1754944e-38, %v1342_v33  ;;  %vm1341_vm15 = vcmp.eq.f32.partialorder %v1340_v7, 8.507059e+37 }
 0x991   :  { %v3234_v11 = vpop.eup %3233 }
 0x992   :  { %v1332_v12 = vmul.f32 %v3234_v11, %v1330_v5  ;;  %vm1337_vm11 = vweird.f32 %v3234_v11 }
 0x993   :  { %vm1338_vm13 = vmor %vm1336_vm12, %vm1337_vm11 }
 0x994   :  { %v1333_v19 = vsub.f32 1.0, %v1332_v12 }
 0x996   :  { %v1334_v20 = vmul.f32 %v3234_v11, %v1333_v19 }
 0x998   :  { %v1335_v30 = vadd.f32 %v3234_v11, %v1334_v20  ;;  %v4018_v20 = vld [vmem:[%s4187_s22] sm:$0xff] }
 0x99a   :  { %v1339_v17 = vsel %vm1338_vm13, %v3234_v11, %v1335_v30 }
 0x99b   :  { %v1344_v31 = vsel %vm1341_vm15, %v1343_v18, %v1339_v17 }
 0x9fc   :  { %v1135_v0 = vpop.permute.xlu1 %1134 }
 0x9fd   :  { %3089 = vmatmul.msk.f32.vlgmr.msrb.gmra.mxu0 %vm552_vm0, %v1135_v0  ;;  %3090 = vmatmul.msk.f32.vlgmr.msrb.gmra.mxu1 %vm552_vm0, %v1135_v0 }
 0xa7a   :  { %v1155_v4 = vpop.f32.mrf.mxu0  ;;  %v1175_v22 = vpop.f32.mrf.mxu1 }
 0xa7b   :  { %v1178_v9 = vadd.f32 %v1155_v4, %v1131_v6  ;;  %v1179_v25 = vadd.f32 %v1175_v22, %v1132_v23  ;;  %v1384_v22 = vld [vmem:[#allocation9 + $0x58] sm:$0xff]  ;;  %v1383_v23 = vld [vmem:[#allocation9 + $0x50] sm:$0xff] }
 0xa7c   :  { %1406 = vmatpush.msra.mxu0 %v1384_v22  ;;  %v1638_v22 = vld [vmem:[#allocation12 + $0x60] sm:$0xff] }
 0xa7d   :  { %v3091_v10 = vmul.f32 -1.442695, %v1178_v9  ;;  %v3092_v43 = vmul.f32 -1.442695, %v1179_v25 }
 0xa7e   :  { %1407 = vmatpush.msra.mxu0 %v1383_v23 }
 0xa7f   :  { %3235 = vpow2.f32 %v3091_v10 }
 0xa85   :  { %v3236_v14 = vpop.eup %3235 }
 0xa86   :  { %v1183_v15 = vadd.f32 1.0, %v3236_v14 }
 0xa88   :  { %3237 = vrcp.f32 %v1183_v15  ;;  %v1195_v13 = vand.u32 2147483648, %v1183_v15  ;;  %v1193_v24 = vand.u32 2147483647, %v1183_v15  ;;  %vm1189_vm1 = vweird.f32 %v1183_v15 }
 0xa89   :  { %3239 = vtanh.f32 %v1326_v29 }
 0xa8a   :  { %3241 = vtanh.f32 %v1179_v25  ;;  %v1196_v32 = vor.u32 1.1754944e-38, %v1195_v13  ;;  %vm1194_vm3 = vcmp.eq.f32.partialorder %v1193_v24, 8.507059e+37  ;;  %v1381_v25 = vld [vmem:[#allocation9 + $0x40] sm:$0xff]  ;;  %v1229_v24 = vld [vmem:[#allocation2 + $0xf8] sm:$0x3] }
 0xa8e   :  { %v3238_v26 = vpop.eup %3237 }
 0xa8f   :  { %v1185_v28 = vmul.f32 %v3238_v26, %v1183_v15  ;;  %vm1190_vm14 = vweird.f32 %v3238_v26  ;;  %v3240_v34 = vpop.eup %3239 }
 0xa90   :  { %vm1191_vm2 = vmor %vm1189_vm1, %vm1190_vm14  ;;  %v3242_v36 = vpop.eup %3241  ;;  %v1366_v40 = vmul.f32 %v3240_v34, %v1344_v31 }
 0xa91   :  { %v1186_v8 = vsub.f32 1.0, %v1185_v28  ;;  %v1228_v28 = vld [vmem:[#allocation2 + $0xa0] sm:$0x3] }
 0xa92   :  { %3243 = vtanh.f32 %v1366_v40 }
 0xa93   :  { %v1187_v21 = vmul.f32 %v3238_v26, %v1186_v8  ;;  %3245 = vpow2.f32 %v3092_v43 }
 0xa94   :  { %3247 = vpow2.f32 %v3098_v46 }
 0xa95   :  { %v1188_v27 = vadd.f32 %v3238_v26, %v1187_v21 }
 0xa97   :  { %v1192_v35 = vsel %vm1191_vm2, %v3238_v26, %v1188_v27  ;;  %v1382_v26 = vld [vmem:[#allocation9 + $0x48] sm:$0xff] }
 0xa98   :  { %v1197_v37 = vsel %vm1194_vm3, %v1196_v32, %v1192_v35  ;;  %v3244_v42 = vpop.eup %3243  ;;  %1408 = vmatpush.msra.mxu0 %v1382_v26  ;;  %v1682_v26 = vld [vmem:[#allocation12 + $0x1c0] sm:$0xff] }
 0xa99   :  { %v1220_v41 = vmul.f32 %v3242_v36, %v1197_v37  ;;  %v3246_v47 = vpop.eup %3245  ;;  %v1219_v59 = vmul.f32 %v1197_v37, %v4001_v57 }
 0xa9a   :  { %v1203_v48 = vadd.f32 1.0, %v3246_v47  ;;  %v3248_v49 = vpop.eup %3247  ;;  %1409 = vmatpush.msra.mxu0 %v1381_v25 }
 0xa9b   :  { %1222 = vrot.lane.b32.xlu2 %v1220_v41, %s3568_s17  ;;  %v1350_v50 = vadd.f32 1.0, %v3248_v49 }
 0xa9c   :  { %3249 = vrcp.f32 %v1203_v48  ;;  %v1215_v63 = vand.u32 2147483648, %v1203_v48  ;;  %vm1209_vm5 = vweird.f32 %v1203_v48  ;;  %v1213_v0 = vand.u32 2147483647, %v1203_v48  ;;  %1695 = vmatpush.msrb.mxu0 %v1656_v56  ;;  %v1488_v56 = vld [vmem:[#allocation10 + $0x20] sm:$0xff] }
 0xa9d   :  { %3251 = vrcp.f32 %v1350_v50  ;;  %v1362_v9 = vand.u32 2147483648, %v1350_v50  ;;  %vm1356_vm9 = vweird.f32 %v1350_v50  ;;  %v1360_v10 = vand.u32 2147483647, %v1350_v50 }
 0xa9e   :  { %v1216_v3 = vor.u32 1.1754944e-38, %v1215_v63  ;;  %vm1214_vm7 = vcmp.eq.f32.partialorder %v1213_v0, 8.507059e+37  ;;  %v1374_v0 = vld [vmem:[#allocation9 + $0x8] sm:$0xff] }
 0xa9f   :  { %v1363_v12 = vor.u32 1.1754944e-38, %v1362_v9  ;;  %vm1361_vm11 = vcmp.eq.f32.partialorder %v1360_v10, 8.507059e+37  ;;  %v1642_v10 = vld [vmem:[#allocation12 + $0x80] sm:$0xff] }
 0xaa2   :  { %v3250_v51 = vpop.eup %3249 }
 0xaa3   :  { %1369 = vrot.lane.b32.xlu2 %v3244_v42, %s3568_s17  ;;  %v1205_v52 = vmul.f32 %v3250_v51, %v1203_v48  ;;  %v3252_v54 = vpop.eup %3251  ;;  %vm1210_vm4 = vweird.f32 %v3250_v51 }
 0xaa4   :  { %v1352_v38 = vmul.f32 %v3252_v54, %v1350_v50  ;;  %vm1211_vm6 = vmor %vm1209_vm5, %vm1210_vm4  ;;  %vm1357_vm8 = vweird.f32 %v3252_v54  ;;  %v3569_v50 = vmov 1  }
 0xaa5   :  { %v1206_v53 = vsub.f32 1.0, %v1205_v52  ;;  %vm1358_vm10 = vmor %vm1356_vm9, %vm1357_vm8  ;;  %3146 = vset.pattern.permute.xlu1 %v3569_v50  ;;  %v1380_v52 = vld [vmem:[#allocation9 + $0x38] sm:$0xff]  ;;  %vm1468_vm9 = vcmask 254976  }
 0xaa6   :  { %v1353_v61 = vsub.f32 1.0, %v1352_v38  ;;  %1427 = vmatpush.msra.mxu1 %v1380_v52  ;;  %v1654_v38 = vld [vmem:[#allocation12 + $0xe0] sm:$0xff] }
 0xaa7   :  { %v1207_v39 = vmul.f32 %v3250_v51, %v1206_v53  ;;  %v1379_v53 = vld [vmem:[#allocation9 + $0x30] sm:$0xff]  ;;  %1696 = vmatpush.msrb.mxu0 %v1654_v38 }
 0xaa8   :  { %v1354_v1 = vmul.f32 %v3252_v54, %v1353_v61  ;;  %1428 = vmatpush.msra.mxu1 %v1379_v53  ;;  %v1375_v61 = vld [vmem:[#allocation9 + $0x10] sm:$0xff] }
 0xaa9   :  { %v1208_v62 = vadd.f32 %v3250_v51, %v1207_v39  ;;  %v1377_v39 = vld [vmem:[#allocation9 + $0x20] sm:$0xff]  ;;  %1697 = vmatpush.msrb.mxu0 %v1652_v58  ;;  %v1486_v38 = vld [vmem:[#allocation10 + $0x10] sm:$0xff] }
 0xaaa   :  { %v1355_v6 = vadd.f32 %v3252_v54, %v1354_v1  ;;  %1429 = vmatpush.msra.mxu1 %v1378_v55  ;;  %v1646_v1 = vld [vmem:[#allocation12 + $0xa0] sm:$0xff]  ;;  %v1491_v55 = vld [vmem:[#allocation10 + $0x38] sm:$0xff] }
 0xaab   :  { %v1212_v2 = vsel %vm1211_vm6, %v3250_v51, %v1208_v62  ;;  %v1648_v62 = vld [vmem:[#allocation12 + $0xb0] sm:$0xff]  ;;  %1698 = vmatpush.msrb.mxu0 %v1650_v45  ;;  %1528 = vmatpush.msra.mxu3 %v1491_v55  ;;  %v1484_v58 = vld [vmem:[#allocation10] sm:$0xff]  ;;  %v1551_v45 = vld [vmem:[#allocation10 + $0x78] sm:$0xff] }
 0xaac   :  { %v1217_v5 = vsel %vm1214_vm7, %v1216_v3, %v1212_v2  ;;  %v1359_v11 = vsel %vm1358_vm10, %v3252_v54, %v1355_v6  ;;  %1430 = vmatpush.msra.mxu1 %v1377_v39  ;;  %v1487_v39 = vld [vmem:[#allocation10 + $0x18] sm:$0xff]  ;;  %vm1539_vm10 = vcmask 1040384  }
 0xaad   :  { %v1364_v15 = vsel %vm1361_vm11, %v1363_v12, %v1359_v11  ;;  %1699 = vmatpush.msrb.mxu0 %v1648_v62  ;;  %v1686_v12 = vld [vmem:[#allocation12 + $0x1e0] sm:$0xff]  ;;  %v1665_v55 = vld [vmem:[#allocation12 + $0x138] sm:$0xff]  ;;  %vm1481_vm11 = vcmask 0  }
 0xaae   :  { %v1548_v62 = vld [vmem:[#allocation10 + $0x60] sm:$0xff] }
 0xaaf   :  { %1700 = vmatpush.msrb.mxu0 %v1646_v1 }
 0xaf5   :  { %v1223_v44 = vpop.permute.xlu2 %1222 }
 0xaf6   :  { %v4010_v60 = vadd.f32 %v1223_v44, %v1219_v59  ;;  %v1376_v44 = vld [vmem:[#allocation9 + $0x18] sm:$0xff] }
 0xaf7   :  { %1431 = vmatpush.msra.mxu1 %v1376_v44  ;;  %v1550_v44 = vld [vmem:[#allocation10 + $0x70] sm:$0xff] }
 0xaf8   :  { %3253 = vtanh.f32 %v4010_v60 }
 0xaf9   :  { %1432 = vmatpush.msra.mxu1 %v1375_v61  ;;  %v3148_v61 = vld [vmem:[%s4164_s7] ss:$0 sm:$0xff] }
 0xafb   :  { %1433 = vmatpush.msra.mxu1 %v1374_v0 }
 0xafd   :  { %v1370_v14 = vpop.permute.xlu2 %1369 }
 0xafe   :  { %v3254_v57 = vpop.eup %3253  ;;  %v1372_v19 = vmul.f32 %v1370_v14, %v1364_v15  ;;  %v1684_v15 = vld [vmem:[#allocation12 + $0x1d0] sm:$0xff] }
 0xaff   :  { %v1227_v4 = vmul.f32 %v3254_v57, %v1217_v5  ;;  %v1373_v57 = vld [vmem:[#allocation9] sm:$0xff]  ;;  %v1644_v5 = vld [vmem:[#allocation12 + $0x90] sm:$0xff] }
 0xb00   :  { %1434 = vmatpush.msra.mxu1 %v1373_v57  ;;  %1701 = vmatpush.msrb.mxu0 %v1644_v5 }
 0xb01   :  { %1231 = vrot.lane.b32.xlu0 %v1227_v4, %s3568_s17  ;;  %v1688_v4 = vld [vmem:[#allocation12 + $0x1f0] sm:$0xff] }
 0xb02   :  { %1715 = vmatpush.msrb.mxu1 %v1688_v4  ;;  %1702 = vmatpush.msrb.mxu0 %v1642_v10  ;;  %v1547_v10 = vld [vmem:[#allocation10 + $0x58] sm:$0xff] }
 0xb04   :  { %1716 = vmatpush.msrb.mxu1 %v1686_v12  ;;  %v1545_v12 = vld [vmem:[#allocation10 + $0x48] sm:$0xff] }
 0xb06   :  { %1717 = vmatpush.msrb.mxu1 %v1684_v15 }
 0xb08   :  { %1718 = vmatpush.msrb.mxu1 %v1682_v26  ;;  %v1689_v26 = vld [vmem:[#allocation12 + $0x1f8] sm:$0xff] }
 0xb09   :  { %1390 = vrot.lane.b32.xlu0 %v1372_v19, %s3568_s17 }
 0xb11   :  { %1605 = vperm.xlu0 %3143, %v4018_v20  }
 0xb19   :  { %3147 = vset.pattern.permute.xlu0 %v3569_v50 }
 0xb73   :  { %v1232_v29 = vpop.permute.xlu0 %1231 }
 0xb74   :  { %3093 = vmatmul.msk.f32.vlgmr.msrb.gmra.mxu2 %vm552_vm0, %v1232_v29  ;;  %3094 = vmatmul.msk.f32.vlgmr.msrb.gmra.mxu3 %vm552_vm0, %v1232_v29 }
 0xb7b   :  { %v1391_v30 = vpop.permute.xlu0 %1390 }
 0xb7c   :  { %3099 = vmatmul.msk.f32.vlgmr.msra.gmra.mxu0 %vm552_vm0, %v1391_v30  ;;  %v1680_v30 = vld [vmem:[#allocation12 + $0x1b0] sm:$0xff] }
 0xb7d   :  { %1719 = vmatpush.msrb.mxu1 %v1680_v30  ;;  %v1791_v30 = vld [vmem:[#allocation13 + $0x78] sm:$0xff] }
 0xbf7   :  { %v1252_v33 = vpop.f32.mrf.mxu2  ;;  %v1272_v21 = vpop.f32.mrf.mxu3 }
 0xbf8   :  { %v1275_v7 = vadd.f32 %v1252_v33, %v1228_v28  ;;  %v1276_v27 = vadd.f32 %v1272_v21, %v1229_v24  ;;  %v1678_v33 = vld [vmem:[#allocation12 + $0x1a0] sm:$0xff]  ;;  %v1636_v21 = vld [vmem:[#allocation12 + $0x50] sm:$0xff] }
 0xbf9   :  { %1720 = vmatpush.msrb.mxu1 %v1678_v33  ;;  %v1668_v24 = vld [vmem:[#allocation12 + $0x150] sm:$0xff]  ;;  %v1411_v0 = vpop.f32.mrf.mxu0  ;;  %v1653_v33 = vld [vmem:[#allocation12 + $0xd8] sm:$0xff] }
 0xbfa   :  { %v3095_v8 = vmul.f32 -1.442695, %v1275_v7  ;;  %v3096_v47 = vmul.f32 -1.442695, %v1276_v27  ;;  %v1676_v7 = vld [vmem:[#allocation12 + $0x190] sm:$0xff] }
 0xbfb   :  { %1721 = vmatpush.msrb.mxu1 %v1676_v7  ;;  %v1685_v7 = vld [vmem:[#allocation12 + $0x1d8] sm:$0xff] }
 0xbfc   :  { %3255 = vpow2.f32 %v3095_v8  ;;  %v1674_v8 = vld [vmem:[#allocation12 + $0x180] sm:$0xff] }
 0xbfd   :  { %1722 = vmatpush.msrb.mxu1 %v1674_v8 }
 0xc02   :  { %v3256_v13 = vpop.eup %3255 }
 0xc03   :  { %v1280_v17 = vadd.f32 1.0, %v3256_v13  ;;  %v1672_v13 = vld [vmem:[#allocation12 + $0x170] sm:$0xff] }
 0xc04   :  { %1723 = vmatpush.msrb.mxu1 %v1672_v13 }
 0xc05   :  { %3257 = vrcp.f32 %v1280_v17  ;;  %v1292_v34 = vand.u32 2147483648, %v1280_v17  ;;  %v1290_v36 = vand.u32 2147483647, %v1280_v17  ;;  %vm1286_vm13 = vweird.f32 %v1280_v17 }
 0xc06   :  { %3259 = vtanh.f32 %v1276_v27  ;;  %v1666_v27 = vld [vmem:[#allocation12 + $0x140] sm:$0xff] }
 0xc07   :  { %v1293_v40 = vor.u32 1.1754944e-38, %v1292_v34  ;;  %vm1291_vm15 = vcmp.eq.f32.partialorder %v1290_v36, 8.507059e+37  ;;  %3261 = vpow2.f32 %v3096_v47  ;;  %v1630_v34 = vld [vmem:[#allocation12 + $0x20] sm:$0xff]  ;;  %v1628_v36 = vld [vmem:[#allocation12 + $0x10] sm:$0xff] }
 0xc08   :  { %v3271_v47 = vld [vmem:[#allocation3] sm:$0xff] }
 0xc0b   :  { %v3258_v18 = vpop.eup %3257 }
 0xc0c   :  { %v1282_v31 = vmul.f32 %v3258_v18, %v1280_v17  ;;  %vm1287_vm12 = vweird.f32 %v3258_v18  ;;  %v3260_v42 = vpop.eup %3259  ;;  %v1670_v17 = vld [vmem:[#allocation12 + $0x160] sm:$0xff] }
 0xc0d   :  { %vm1288_vm14 = vmor %vm1286_vm13, %vm1287_vm12  ;;  %v3262_v48 = vpop.eup %3261  ;;  %1724 = vmatpush.msrb.mxu1 %v1670_v17  ;;  %v1651_v17 = vld [vmem:[#allocation12 + $0xc8] sm:$0xff] }
 0xc0e   :  { %v1283_v32 = vsub.f32 1.0, %v1282_v31  ;;  %v1300_v49 = vadd.f32 1.0, %v3262_v48  ;;  %v1632_v31 = vld [vmem:[#allocation12 + $0x30] sm:$0xff] }
 0xc0f   :  { %1725 = vmatpush.msrb.mxu1 %v1668_v24 }
 0xc10   :  { %v1284_v35 = vmul.f32 %v3258_v18, %v1283_v32  ;;  %3263 = vrcp.f32 %v1300_v49  ;;  %v1312_v11 = vand.u32 2147483648, %v1300_v49  ;;  %vm1306_vm2 = vweird.f32 %v1300_v49  ;;  %v1664_v32 = vld [vmem:[#allocation12 + $0x130] sm:$0xff] }
 0xc11   :  { %v1310_v14 = vand.u32 2147483647, %v1300_v49  ;;  %1726 = vmatpush.msrb.mxu1 %v1666_v27 }
 0xc12   :  { %v1285_v37 = vadd.f32 %v3258_v18, %v1284_v35  ;;  %v1313_v23 = vor.u32 1.1754944e-38, %v1312_v11  ;;  %v1662_v35 = vld [vmem:[#allocation12 + $0x120] sm:$0xff] }
 0xc13   :  { %vm1311_vm4 = vcmp.eq.f32.partialorder %v1310_v14, 8.507059e+37  ;;  %1727 = vmatpush.msrb.mxu1 %v1664_v32  ;;  %v1544_v11 = vld [vmem:[#allocation10 + $0x40] sm:$0xff]  ;;  %v1444_v14 = vld [vmem:[%s4188_s23] sm:$0x3]  ;;  %v1681_v32 = vld [vmem:[#allocation12 + $0x1b8] sm:$0xff] }
 0xc14   :  { %v1289_v41 = vsel %vm1288_vm14, %v3258_v18, %v1285_v37  ;;  %v1634_v18 = vld [vmem:[#allocation12 + $0x40] sm:$0xff] }
 0xc15   :  { %v1294_v43 = vsel %vm1291_vm15, %v1293_v40, %v1289_v41  ;;  %1728 = vmatpush.msrb.mxu1 %v1662_v35  ;;  %v1626_v37 = vld [vmem:[#allocation12] sm:$0xff]  ;;  %v1647_v35 = vld [vmem:[#allocation12 + $0xa8] sm:$0xff] }
 0xc16   :  { %v1317_v46 = vmul.f32 %v3260_v42, %v1294_v43  ;;  %v3264_v51 = vpop.eup %3263  ;;  %v1316_v2 = vmul.f32 %v1294_v43, %v4010_v60  ;;  %v1640_v60 = vld [vmem:[#allocation12 + $0x70] sm:$0xff]  ;;  %v1658_v40 = vld [vmem:[#allocation12 + $0x100] sm:$0xff]  ;;  %v1602_v42 = vadd.s32 128, %v3776_v16  ;;  %v1606_v43 = vpop.permute.xlu0 %1605 }
 0xc17   :  { %v1302_v54 = vmul.f32 %v3264_v51, %v1300_v49  ;;  %vm1307_vm1 = vweird.f32 %v3264_v51  ;;  %1703 = vmatpush.msrb.mxu0 %v1640_v60  ;;  %vm1607_vm5 = vcmp.eq.s32.totalorder %v1606_v43, %v3776_v16 }
 0xc18   :  { %1319 = vrot.lane.b32.xlu1 %v1317_v46, %s3568_s17  ;;  %vm1308_vm3 = vmor %vm1306_vm2, %vm1307_vm1  ;;  %vm1608_vm6 = vcmp.eq.s32.totalorder %v1606_v43, %v1602_v42  ;;  %v3105_v48 = vsel %vm1607_vm5, 1.0, %v3271_v47  ;;  %v1673_v43 = vld [vmem:[#allocation12 + $0x178] sm:$0xff] }
 0xc19   :  { %v1303_v59 = vsub.f32 1.0, %v1302_v54  ;;  %1704 = vmatpush.msrb.mxu0 %v1638_v22  ;;  %v3106_v49 = vsel %vm1608_vm6, 1.0, %v3271_v47  ;;  %v1490_v54 = vld [vmem:[#allocation10 + $0x30] sm:$0xff] }
 0xc1a   :  { %1508 = vmatpush.msra.mxu2 %v1490_v54  ;;  %v1633_v54 = vld [vmem:[#allocation12 + $0x38] sm:$0xff] }
 0xc1b   :  { %v1304_v63 = vmul.f32 %v3264_v51, %v1303_v59  ;;  %1705 = vmatpush.msrb.mxu0 %v1636_v21  ;;  %v1485_v59 = vld [vmem:[#allocation10 + $0x8] sm:$0xff] }
 0xc1c   :  { %1509 = vmatpush.msra.mxu2 %v1488_v56  ;;  %v1683_v21 = vld [vmem:[#allocation12 + $0x1c8] sm:$0xff] }
 0xc1d   :  { %v1305_v9 = vadd.f32 %v3264_v51, %v1304_v63  ;;  %1706 = vmatpush.msrb.mxu0 %v1634_v18  ;;  %v1549_v63 = vld [vmem:[#allocation10 + $0x68] sm:$0xff] }
 0xc1e   :  { %1510 = vmatpush.msra.mxu2 %v1486_v38  ;;  %v1631_v56 = vld [vmem:[#allocation12 + $0x28] sm:$0xff]  ;;  %v1629_v38 = vld [vmem:[#allocation12 + $0x18] sm:$0xff] }
 0xc1f   :  { %v1309_v19 = vsel %vm1308_vm3, %v3264_v51, %v1305_v9  ;;  %1707 = vmatpush.msrb.mxu0 %v1632_v31  ;;  %v1546_v9 = vld [vmem:[#allocation10 + $0x50] sm:$0xff]  ;;  %v1649_v31 = vld [vmem:[#allocation12 + $0xb8] sm:$0xff] }
 0xc20   :  { %v1314_v29 = vsel %vm1311_vm4, %v1313_v23, %v1309_v19  ;;  %1511 = vmatpush.msra.mxu2 %v1484_v58  ;;  %v1657_v23 = vld [vmem:[#allocation12 + $0xf8] sm:$0xff]  ;;  %v1627_v58 = vld [vmem:[#allocation12 + $0x8] sm:$0xff] }
 0xc21   :  { %1708 = vmatpush.msrb.mxu0 %v1630_v34 }
 0xc22   :  { %1567 = vmatpush.msrb.mxu2 %v1550_v44  ;;  %v1789_v44 = vld [vmem:[#allocation13 + $0x68] sm:$0xff] }
 0xc23   :  { %1709 = vmatpush.msrb.mxu0 %v1628_v36  ;;  %v1679_v36 = vld [vmem:[#allocation12 + $0x1a8] sm:$0xff] }
 0xc24   :  { %1568 = vmatpush.msrb.mxu2 %v1548_v62  ;;  %v1786_v62 = vld [vmem:[#allocation13 + $0x50] sm:$0xff] }
 0xc25   :  { %1710 = vmatpush.msrb.mxu0 %v1626_v37  ;;  %v1677_v37 = vld [vmem:[#allocation12 + $0x198] sm:$0xff] }
 0xc26   :  { %1569 = vmatpush.msrb.mxu2 %v1546_v9  ;;  %v1779_v9 = vld [vmem:[#allocation13 + $0x18] sm:$0xff] }
 0xc27   :  { %1812 = vmatpush.msra.mxu0 %v1791_v30  ;;  %v1795_v30 = vld [vmem:[#allocation13 + $0x98] sm:$0xff] }
 0xc28   :  { %1570 = vmatpush.msrb.mxu2 %v1544_v11  ;;  %v1778_v11 = vld [vmem:[#allocation13 + $0x10] sm:$0xff] }
 0xc8a   :  { %v1320_v3 = vpop.permute.xlu1 %1319 }
 0xc8b   :  { %v1322_v6 = vadd.f32 %v1320_v3, %v1316_v2 }
 0xc8d   :  { %3265 = vtanh.f32 %v1322_v6 }
 0xc93   :  { %v3266_v25 = vpop.eup %3265 }
 0xc94   :  { %v1324_v28 = vmul.f32 %v3266_v25, %v1314_v29  ;;  %v1655_v25 = vld [vmem:[#allocation12 + $0xe8] sm:$0xff] }
 0xc95   :  { %v1687_v29 = vld [vmem:[#allocation12 + $0x1e8] sm:$0xff] }
 0xc96   :  { %1415 = vrot.lane.b32.xlu1 %v1324_v28, %s3568_s17  ;;  %v1790_v28 = vld [vmem:[#allocation13 + $0x70] sm:$0xff] }
 0xc97   :  { %1813 = vmatpush.msra.mxu0 %v1790_v28 }
 0xc99   :  { %1814 = vmatpush.msra.mxu0 %v1789_v44  ;;  %v1901_v44 = vld [vmem:[#allocation15 + $0x160] sm:$0xff] }
 0xc9e   :  { %1616 = vperm.xlu1 %3146, %v4018_v20   ;;  %v1660_v20 = vld [vmem:[#allocation12 + $0x110] sm:$0xff] }
 0xc9f   :  { %1729 = vmatpush.msrb.mxu1 %v1660_v20  ;;  %v1645_v20 = vld [vmem:[#allocation12 + $0x98] sm:$0xff] }
 0xca1   :  { %1730 = vmatpush.msrb.mxu1 %v1658_v40  ;;  %v1643_v40 = vld [vmem:[#allocation12 + $0x88] sm:$0xff] }
 0xd08   :  { %v1416_v41 = vpop.permute.xlu1 %1415 }
 0xd09   :  { %3100 = vmatmul.msk.f32.vlgmr.msra.gmra.mxu1 %vm552_vm0, %v1416_v41  ;;  %vm1492_vm0 = vcmask 261120   ;;  %v1675_v41 = vld [vmem:[#allocation12 + $0x188] sm:$0xff] }
 0xd10   :  { %v1617_v46 = vpop.permute.xlu1 %1616 }
 0xd11   :  { %vm1618_vm7 = vcmp.eq.s32.totalorder %v1617_v46, %v3776_v16  ;;  %vm1619_vm8 = vcmp.eq.s32.totalorder %v1617_v46, %v1602_v42  ;;  %v1489_v16 = vld [vmem:[#allocation10 + $0x28] sm:$0xff]  ;;  %v1641_v42 = vld [vmem:[#allocation12 + $0x78] sm:$0xff] }
 0xd12   :  { %v3107_v50 = vsel %vm1618_vm7, 1.0, %v3271_v47  ;;  %v3108_v51 = vsel %vm1619_vm8, 1.0, %v3271_v47  ;;  %1529 = vmatpush.msra.mxu3 %v1489_v16  ;;  %v1639_v46 = vld [vmem:[#allocation12 + $0x68] sm:$0xff] }
 0xd13   :  { %v4032_v52 = vadd.f32 %v3107_v50, %v3105_v48  ;;  %v4034_v53 = vadd.f32 %v3108_v51, %v3106_v49  ;;  %v1671_v47 = vld [vmem:[#allocation12 + $0x168] sm:$0xff]  ;;  %v1637_v48 = vld [vmem:[#allocation12 + $0x58] sm:$0xff] }
 0xd14   :  { %1530 = vmatpush.msra.mxu3 %v1487_v39  ;;  %v1669_v49 = vld [vmem:[#allocation12 + $0x158] sm:$0xff]  ;;  %v1635_v50 = vld [vmem:[#allocation12 + $0x48] sm:$0xff] }
 0xd15   :  { %1711 = vmatmul.f32.vlgmr.msrb.gmra.mxu0 %v4032_v52  ;;  %1731 = vmatmul.f32.vlgmr.msrb.gmra.mxu1 %v4034_v53  ;;  %v1667_v51 = vld [vmem:[#allocation12 + $0x148] sm:$0xff]  ;;  %v1661_v39 = vld [vmem:[#allocation12 + $0x118] sm:$0xff] }
 0xd16   :  { %1531 = vmatpush.msra.mxu3 %v1485_v59  ;;  %v1663_v16 = vld [vmem:[#allocation12 + $0x128] sm:$0xff] }
 0xd17   :  { %v1659_v59 = vld [vmem:[#allocation12 + $0x108] sm:$0xff] }
 0xd18   :  { %1587 = vmatpush.msrb.mxu3 %v1551_v45  ;;  %v1788_v45 = vld [vmem:[#allocation13 + $0x60] sm:$0xff] }
 0xd19   :  { %1815 = vmatpush.msra.mxu0 %v1788_v45 }
 0xd1a   :  { %1588 = vmatpush.msrb.mxu3 %v1549_v63  ;;  %v1785_v63 = vld [vmem:[#allocation13 + $0x48] sm:$0xff] }
 0xd1c   :  { %1589 = vmatpush.msrb.mxu3 %v1547_v10  ;;  %v1802_v10 = vld [vmem:[#allocation13 + $0xd0] sm:$0xff] }
 0xd1e   :  { %1590 = vmatpush.msrb.mxu3 %v1545_v12  ;;  %v1801_v12 = vld [vmem:[#allocation13 + $0xc8] sm:$0xff] }
 0xd86   :  { %v1436_v1 = vpop.f32.mrf.mxu1 }
 0xd87   :  { %v1437_v2 = vadd.f32 %v1436_v1, %v1411_v0  ;;  %v1807_v0 = vld [vmem:[#allocation13 + $0xf8] sm:$0xff]  ;;  %v1806_v1 = vld [vmem:[#allocation13 + $0xf0] sm:$0xff] }
 0xd88   :  { %1832 = vmatpush.msra.mxu1 %v1807_v0  ;;  %v1869_v0 = vld [vmem:[#allocation15 + $0x60] sm:$0xff] }
 0xd89   :  { %v1443_v3 = vadd.f32 %v3148_v61, %v1437_v2  ;;  %v1787_v61 = vld [vmem:[#allocation13 + $0x58] sm:$0xff]  ;;  %v1784_v2 = vld [vmem:[#allocation13 + $0x40] sm:$0xff] }
 0xd8a   :  { %1816 = vmatpush.msra.mxu0 %v1787_v61  ;;  %1833 = vmatpush.msra.mxu1 %v1806_v1  ;;  %v1900_v61 = vld [vmem:[#allocation15 + $0x158] sm:$0xff] }
 0xd8b   :  { %v1445_v57 = vmul.f32 0.5, %v1443_v3  ;;  %v1454_v4 = vmul.f32 %v1443_v3, %v1443_v3  ;;  %v1460_v15 = vmul.f32 1.442695, %v1443_v3 }
 0xd8c   :  { %1817 = vmatpush.msra.mxu0 %v1786_v62  ;;  %v1870_v62 = vld [vmem:[#allocation15 + $0x68] sm:$0xff] }
 0xd8d   :  { %v1446_v5 = vmul.f32 1.442695, %v1445_v57  ;;  %v1781_v57 = vld [vmem:[#allocation13 + $0x28] sm:$0xff] }
 0xd8e   :  { %1818 = vmatpush.msra.mxu0 %v1785_v63  ;;  %v1886_v63 = vld [vmem:[#allocation15 + $0xe8] sm:$0xff] }
 0xd8f   :  { %3267 = vpow2.f32 %v1446_v5  ;;  %v1804_v5 = vld [vmem:[#allocation13 + $0xe0] sm:$0xff] }
 0xd90   :  { %3269 = vpow2.f32 %v1460_v15  ;;  %1819 = vmatpush.msra.mxu0 %v1784_v2  ;;  %v1776_v15 = vld [vmem:[#allocation13] sm:$0xff] }
 0xd91   :  { %v1885_v2 = vld [vmem:[#allocation15 + $0xe0] sm:$0xff] }
 0xd95   :  { %v3268_v6 = vpop.eup %3267 }
 0xd96   :  { %1449 = vrot.lane.b32.xlu2 %v3268_v6, %s3570_s4  ;;  %v3270_v24 = vpop.eup %3269  ;;  %v1780_v6 = vld [vmem:[#allocation13 + $0x20] sm:$0xff] }
 0xd9e   :  { %1456 = vrot.lane.b32.xlu2 %v1454_v4, %s3560_s1  ;;  %v1803_v4 = vld [vmem:[#allocation13 + $0xd8] sm:$0xff] }
 0xdf0   :  { %v1450_v60 = vpop.permute.xlu2 %1449 }
 0xdf1   :  { %v1452_v19 = vmul.f32 %v1450_v60, %v1444_v14  ;;  %v1777_v14 = vld [vmem:[#allocation13 + $0x8] sm:$0xff]  ;;  %v1800_v60 = vld [vmem:[#allocation13 + $0xc0] sm:$0xff] }
 0xdf3   :  { %v1453_v22 = vadd.f32 %v1452_v19, %v1443_v3  ;;  %v1799_v19 = vld [vmem:[#allocation13 + $0xb8] sm:$0xff] }
 0xdf5   :  { %3101 = vmatmul.msk.f32.vlgmr.msra.gmra.mxu2 %vm1492_vm0, %v1453_v22  ;;  %3102 = vmatmul.msk.f32.vlgmr.msra.gmra.mxu3 %vm1492_vm0, %v1453_v22  ;;  %v1552_v18 = vrot.slane %v1453_v22, 1 }
 0xdf6   :  { %1735 = vmatpush.msra.mxu2 %v1657_v23  ;;  %1755 = vmatpush.msra.mxu3 %v1689_v26  ;;  %v1798_v23 = vld [vmem:[#allocation13 + $0xb0] sm:$0xff] }
 0xdf8   :  { %1736 = vmatpush.msra.mxu2 %v1655_v25  ;;  %1756 = vmatpush.msra.mxu3 %v1687_v29  ;;  %v1457_v8 = vpop.permute.xlu2 %1456  ;;  %v1797_v25 = vld [vmem:[#allocation13 + $0xa8] sm:$0xff]  ;;  %v1796_v29 = vld [vmem:[#allocation13 + $0xa0] sm:$0xff] }
 0xdf9   :  { %v1459_v13 = vsub.f32 %v1443_v3, %v1457_v8  ;;  %v1783_v3 = vld [vmem:[#allocation13 + $0x38] sm:$0xff]  ;;  %v1794_v8 = vld [vmem:[#allocation13 + $0x90] sm:$0xff] }
 0xdfa   :  { %1737 = vmatpush.msra.mxu2 %v1653_v33  ;;  %1757 = vmatpush.msra.mxu3 %v1685_v7 }
 0xdfb   :  { %v1462_v27 = vsub.f32 %v1459_v13, %v3270_v24  ;;  %1820 = vmatpush.msra.mxu0 %v1783_v3  ;;  %v1793_v13 = vld [vmem:[#allocation13 + $0x88] sm:$0xff]  ;;  %v1868_v3 = vld [vmem:[#allocation15 + $0x58] sm:$0xff] }
 0xdfc   :  { %1738 = vmatpush.msra.mxu2 %v1651_v17  ;;  %1758 = vmatpush.msra.mxu3 %v1683_v21  ;;  %v1792_v17 = vld [vmem:[#allocation13 + $0x80] sm:$0xff]  ;;  %v1483_v21 = vld [vmem:[%s4166_s9] sm:$0x3]  ;;  %s3571_s9 = smov [#allocation20]  }
 0xdfd   :  { %v1463_v34 = vadd.f32 1.0, %v1462_v27  ;;  %3103 = vmatmul.msk.f32.vlgmr.msrb.gmra.mxu2 %vm1492_vm0, %v1552_v18  ;;  %3104 = vmatmul.msk.f32.vlgmr.msrb.gmra.mxu3 %vm1492_vm0, %v1552_v18 }
 0xdfe   :  { %1739 = vmatpush.msra.mxu2 %v1649_v31  ;;  %1759 = vmatpush.msra.mxu3 %v1681_v32 }
 0xdff   :  { %1465 = vrot.lane.b32.xlu0 %v1463_v34, %s3570_s4 }
 0xe00   :  { %1740 = vmatpush.msra.mxu2 %v1647_v35  ;;  %1760 = vmatpush.msra.mxu3 %v1679_v36 }
 0xe02   :  { %1741 = vmatpush.msra.mxu2 %v1645_v20  ;;  %1761 = vmatpush.msra.mxu3 %v1677_v37  ;;  %v1712_v37 = vpop.f32.mrf.mxu0 }
 0xe04   :  { %1742 = vmatpush.msra.mxu2 %v1643_v40  ;;  %1762 = vmatpush.msra.mxu3 %v1675_v41  ;;  %v1732_v41 = vpop.f32.mrf.mxu1 }
 0xe06   :  { %1743 = vmatpush.msra.mxu2 %v1641_v42  ;;  %1763 = vmatpush.msra.mxu3 %v1673_v43 }
 0xe08   :  { %1744 = vmatpush.msra.mxu2 %v1639_v46  ;;  %1764 = vmatpush.msra.mxu3 %v1671_v47 }
 0xe0a   :  { %1745 = vmatpush.msra.mxu2 %v1637_v48  ;;  %1765 = vmatpush.msra.mxu3 %v1669_v49 }
 0xe0c   :  { %1746 = vmatpush.msra.mxu2 %v1635_v50  ;;  %1766 = vmatpush.msra.mxu3 %v1667_v51  ;;  %v1872_v50 = vld [vmem:[#allocation15 + $0x78] sm:$0xff] }
 0xe0d   :  { %v1888_v51 = vld [vmem:[#allocation15 + $0xf8] sm:$0xff] }
 0xe0e   :  { %1747 = vmatpush.msra.mxu2 %v1633_v54  ;;  %1767 = vmatpush.msra.mxu3 %v1665_v55  ;;  %v1904_v54 = vld [vmem:[#allocation15 + $0x178] sm:$0xff]  ;;  %v1871_v55 = vld [vmem:[#allocation15 + $0x70] sm:$0xff] }
 0xe10   :  { %1748 = vmatpush.msra.mxu2 %v1631_v56  ;;  %1768 = vmatpush.msra.mxu3 %v1663_v16  ;;  %v1887_v56 = vld [vmem:[#allocation15 + $0xf0] sm:$0xff] }
 0xe11   :  { %v1903_v16 = vld [vmem:[#allocation15 + $0x170] sm:$0xff] }
 0xe12   :  { %1749 = vmatpush.msra.mxu2 %v1629_v38  ;;  %1769 = vmatpush.msra.mxu3 %v1661_v39 }
 0xe14   :  { %1750 = vmatpush.msra.mxu2 %v1627_v58  ;;  %1770 = vmatpush.msra.mxu3 %v1659_v59  ;;  %v1902_v58 = vld [vmem:[#allocation15 + $0x168] sm:$0xff] }
 0xe15   :  { %1751 = vmatmul.f32.vlgmr.msra.gmra.mxu2 %v4032_v52  ;;  %1771 = vmatmul.f32.vlgmr.msra.gmra.mxu3 %v4034_v53  ;;  %v1782_v52 = vld [vmem:[#allocation13 + $0x30] sm:$0xff]  ;;  %v1805_v53 = vld [vmem:[#allocation13 + $0xe8] sm:$0xff] }
 0xe16   :  { %1821 = vmatpush.msra.mxu0 %v1782_v52  ;;  %1834 = vmatpush.msra.mxu1 %v1805_v53  ;;  %v1884_v52 = vld [vmem:[#allocation15 + $0xd8] sm:$0xff]  ;;  %v1899_v53 = vld [vmem:[#allocation15 + $0x150] sm:$0xff] }
 0xe17   :  { %1909 = vmatpush.msrb.mxu2 %v1872_v50  ;;  %1929 = vmatpush.msrb.mxu3 %v1888_v51  ;;  %v1995_v50 = vld [vmem:[#allocation16 + $0xc8] sm:$0xff]  ;;  %v1992_v51 = vld [vmem:[#allocation16 + $0xb0] sm:$0xff] }
 0xe18   :  { %1822 = vmatpush.msra.mxu0 %v1781_v57  ;;  %1835 = vmatpush.msra.mxu1 %v1804_v5  ;;  %v1898_v5 = vld [vmem:[#allocation15 + $0x148] sm:$0xff] }
 0xe19   :  { %1910 = vmatpush.msrb.mxu2 %v1871_v55  ;;  %1930 = vmatpush.msrb.mxu3 %v1887_v56  ;;  %v1990_v55 = vld [vmem:[#allocation16 + $0xa0] sm:$0xff]  ;;  %v1991_v56 = vld [vmem:[#allocation16 + $0xa8] sm:$0xff] }
 0xe1a   :  { %1823 = vmatpush.msra.mxu0 %v1780_v6  ;;  %1836 = vmatpush.msra.mxu1 %v1803_v4  ;;  %v1867_v6 = vld [vmem:[#allocation15 + $0x50] sm:$0xff] }
 0xe1b   :  { %1911 = vmatpush.msrb.mxu2 %v1870_v62  ;;  %1931 = vmatpush.msrb.mxu3 %v1886_v63  ;;  %v1883_v4 = vld [vmem:[#allocation15 + $0xd0] sm:$0xff] }
 0xe1c   :  { %1824 = vmatpush.msra.mxu0 %v1779_v9  ;;  %1837 = vmatpush.msra.mxu1 %v1802_v10  ;;  %v1897_v10 = vld [vmem:[#allocation15 + $0x140] sm:$0xff] }
 0xe1d   :  { %1912 = vmatpush.msrb.mxu2 %v1869_v0  ;;  %1932 = vmatpush.msrb.mxu3 %v1885_v2 }
 0xe1e   :  { %1825 = vmatpush.msra.mxu0 %v1778_v11  ;;  %1838 = vmatpush.msra.mxu1 %v1801_v12  ;;  %v1866_v11 = vld [vmem:[#allocation15 + $0x48] sm:$0xff] }
 0xe1f   :  { %1913 = vmatpush.msrb.mxu2 %v1868_v3  ;;  %1933 = vmatpush.msrb.mxu3 %v1884_v52  ;;  %v1882_v12 = vld [vmem:[#allocation15 + $0xc8] sm:$0xff]  ;;  %v1984_v52 = vld [vmem:[#allocation16 + $0x70] sm:$0xff] }
 0xe20   :  { %1826 = vmatpush.msra.mxu0 %v1777_v14  ;;  %1839 = vmatpush.msra.mxu1 %v1800_v60  ;;  %v1896_v14 = vld [vmem:[#allocation15 + $0x138] sm:$0xff]  ;;  %v1865_v60 = vld [vmem:[#allocation15 + $0x40] sm:$0xff] }
 0xe21   :  { %1914 = vmatpush.msrb.mxu2 %v1867_v6  ;;  %1934 = vmatpush.msrb.mxu3 %v1883_v4  ;;  %v1980_v6 = vld [vmem:[#allocation16 + $0x50] sm:$0xff]  ;;  %v1981_v4 = vld [vmem:[#allocation16 + $0x58] sm:$0xff] }
 0xe22   :  { %1827 = vmatpush.msra.mxu0 %v1776_v15  ;;  %1840 = vmatpush.msra.mxu1 %v1799_v19  ;;  %v1881_v15 = vld [vmem:[#allocation15 + $0xc0] sm:$0xff]  ;;  %v1895_v19 = vld [vmem:[#allocation15 + $0x130] sm:$0xff] }
 0xe23   :  { %1915 = vmatpush.msrb.mxu2 %v1866_v11  ;;  %1935 = vmatpush.msrb.mxu3 %v1882_v12  ;;  %v1976_v11 = vld [vmem:[#allocation16 + $0x30] sm:$0xff]  ;;  %v1977_v12 = vld [vmem:[#allocation16 + $0x38] sm:$0xff] }
 0xe24   :  { %1841 = vmatpush.msra.mxu1 %v1798_v23  ;;  %1949 = vmatpush.msrb.mxu0 %v1904_v54  ;;  %v1880_v23 = vld [vmem:[#allocation15 + $0xb8] sm:$0xff] }
 0xe25   :  { %1916 = vmatpush.msrb.mxu2 %v1865_v60  ;;  %1936 = vmatpush.msrb.mxu3 %v1881_v15  ;;  %v1993_v54 = vld [vmem:[#allocation16 + $0xb8] sm:$0xff]  ;;  %v1975_v60 = vld [vmem:[#allocation16 + $0x28] sm:$0xff]  ;;  %v1972_v15 = vld [vmem:[#allocation16 + $0x10] sm:$0xff] }
 0xe26   :  { %1842 = vmatpush.msra.mxu1 %v1797_v25  ;;  %1950 = vmatpush.msrb.mxu0 %v1903_v16  ;;  %v1893_v25 = vld [vmem:[#allocation15 + $0x120] sm:$0xff]  ;;  %v1988_v16 = vld [vmem:[#allocation16 + $0x90] sm:$0xff] }
 0xe27   :  { %1937 = vmatpush.msrb.mxu3 %v1880_v23  ;;  %v1971_v23 = vld [vmem:[#allocation16 + $0x8] sm:$0xff] }
 0xe28   :  { %1843 = vmatpush.msra.mxu1 %v1796_v29  ;;  %1951 = vmatpush.msrb.mxu0 %v1902_v58  ;;  %v1892_v29 = vld [vmem:[#allocation15 + $0x118] sm:$0xff]  ;;  %v3149_v58 = vld [vmem:[%s4169_s12] ss:$0 sm:$0xff] }
 0xe2a   :  { %1844 = vmatpush.msra.mxu1 %v1795_v30  ;;  %1952 = vmatpush.msrb.mxu0 %v1901_v44  ;;  %v1863_v30 = vld [vmem:[#allocation15 + $0x30] sm:$0xff]  ;;  %v1987_v44 = vld [vmem:[#allocation16 + $0x88] sm:$0xff] }
 0xe2c   :  { %1845 = vmatpush.msra.mxu1 %v1794_v8  ;;  %1953 = vmatpush.msrb.mxu0 %v1900_v61  ;;  %v1878_v8 = vld [vmem:[#allocation15 + $0xa8] sm:$0xff] }
 0xe2e   :  { %1846 = vmatpush.msra.mxu1 %v1793_v13  ;;  %1954 = vmatpush.msrb.mxu0 %v1899_v53  ;;  %v1861_v13 = vld [vmem:[#allocation15 + $0x20] sm:$0xff]  ;;  %v1985_v53 = vld [vmem:[#allocation16 + $0x78] sm:$0xff] }
 0xe30   :  { %1847 = vmatpush.msra.mxu1 %v1792_v17  ;;  %1955 = vmatpush.msrb.mxu0 %v1898_v5  ;;  %v1877_v17 = vld [vmem:[#allocation15 + $0xa0] sm:$0xff]  ;;  %v1983_v5 = vld [vmem:[#allocation16 + $0x68] sm:$0xff] }
 0xe32   :  { %1956 = vmatpush.msrb.mxu0 %v1897_v10  ;;  %v1979_v10 = vld [vmem:[#allocation16 + $0x48] sm:$0xff] }
 0xe34   :  { %1957 = vmatpush.msrb.mxu0 %v1896_v14  ;;  %v1974_v14 = vld [vmem:[#allocation16 + $0x20] sm:$0xff] }
 0xe36   :  { %1958 = vmatpush.msrb.mxu0 %v1895_v19  ;;  %v1973_v19 = vld [vmem:[#allocation16 + $0x18] sm:$0xff] }
 0xe71   :  { %v1466_v22 = vpop.permute.xlu0 %1465 }
 0xe72   :  { %v1469_v26 = vsel %vm1468_vm9, %v1466_v22, 0.0  ;;  %v1864_v22 = vld [vmem:[#allocation15 + $0x38] sm:$0xff] }
 0xe73   :  { %1470 = vadd.xlane.f32.xlu1 %v1469_v26  ;;  %v1894_v26 = vld [vmem:[#allocation15 + $0x128] sm:$0xff]  ;;  %1917 = vmatpush.msrb.mxu2 %v1864_v22  ;;  %v1970_v22 = vld [vmem:[#allocation16] sm:$0xff] }
 0xe74   :  { %1959 = vmatpush.msrb.mxu0 %v1894_v26  ;;  %v2070_v26 = vld [vmem:[#allocation13 + $0x178] sm:$0xff] }
 0xe75   :  { %1918 = vmatpush.msrb.mxu2 %v1863_v30  ;;  %v2085_v30 = vld [vmem:[#allocation13 + $0x1f0] sm:$0xff] }
 0xe76   :  { %1960 = vmatpush.msrb.mxu0 %v1893_v25  ;;  %v2069_v25 = vld [vmem:[#allocation13 + $0x170] sm:$0xff] }
 0xe78   :  { %v1513_v28 = vpop.f32.mrf.mxu2  ;;  %v1533_v33 = vpop.f32.mrf.mxu3  ;;  %1961 = vmatpush.msrb.mxu0 %v1892_v29  ;;  %v2086_v29 = vld [vmem:[#allocation13 + $0x1f8] sm:$0xff] }
 0xe79   :  { %v1538_v7 = vrot.slane %v1533_v33, 7  ;;  %v1891_v33 = vld [vmem:[#allocation15 + $0x110] sm:$0xff] }
 0xe7a   :  { %1962 = vmatpush.msrb.mxu0 %v1891_v33  ;;  %v2084_v33 = vld [vmem:[#allocation13 + $0x1e8] sm:$0xff] }
 0xe7b   :  { %v1540_v24 = vsel %vm1539_vm10, %v1513_v28, %v1538_v7  ;;  %v1879_v28 = vld [vmem:[#allocation15 + $0xb0] sm:$0xff]  ;;  %v1862_v7 = vld [vmem:[#allocation15 + $0x28] sm:$0xff] }
 0xe7c   :  { %v1542_v31 = vadd.f32 %v1540_v24, %v1483_v21  ;;  %1938 = vmatpush.msrb.mxu3 %v1879_v28  ;;  %1919 = vmatpush.msrb.mxu2 %v1862_v7  ;;  %v1860_v21 = vld [vmem:[#allocation15 + $0x18] sm:$0xff]  ;;  %v2068_v28 = vld [vmem:[#allocation13 + $0x168] sm:$0xff]  ;;  %v2067_v7 = vld [vmem:[#allocation13 + $0x160] sm:$0xff] }
 0xe7d   :  { %v1876_v24 = vld [vmem:[#allocation15 + $0x98] sm:$0xff] }
 0xe7e   :  { %1939 = vmatpush.msrb.mxu3 %v1878_v8  ;;  %1920 = vmatpush.msrb.mxu2 %v1861_v13  ;;  %v2083_v8 = vld [vmem:[#allocation13 + $0x1e0] sm:$0xff]  ;;  %v2066_v13 = vld [vmem:[#allocation13 + $0x158] sm:$0xff] }
 0xe80   :  { %v1592_v18 = vpop.f32.mrf.mxu3  ;;  %v1572_v32 = vpop.f32.mrf.mxu2  ;;  %1940 = vmatpush.msrb.mxu3 %v1877_v17  ;;  %1921 = vmatpush.msrb.mxu2 %v1860_v21  ;;  %v2082_v17 = vld [vmem:[#allocation13 + $0x1d8] sm:$0xff]  ;;  %v2065_v21 = vld [vmem:[#allocation13 + $0x150] sm:$0xff] }
 0xe81   :  { %v1597_v27 = vrot.slane %v1592_v18, 7  ;;  %v1890_v18 = vld [vmem:[#allocation15 + $0x108] sm:$0xff] }
 0xe82   :  { %1963 = vmatpush.msrb.mxu0 %v1890_v18  ;;  %1941 = vmatpush.msrb.mxu3 %v1876_v24  ;;  %v2081_v24 = vld [vmem:[#allocation13 + $0x1d0] sm:$0xff]  ;;  %v2064_v18 = vld [vmem:[#allocation13 + $0x148] sm:$0xff] }
 0xe83   :  { %v1598_v34 = vsel %vm1539_vm10, %v1572_v32, %v1597_v27  ;;  %v1889_v27 = vld [vmem:[#allocation15 + $0x100] sm:$0xff]  ;;  %v1875_v32 = vld [vmem:[#allocation15 + $0x90] sm:$0xff] }
 0xe84   :  { %v1600_v35 = vadd.f32 %v1598_v34, %v1542_v31  ;;  %v1859_v31 = vld [vmem:[#allocation15 + $0x10] sm:$0xff]  ;;  %v1858_v34 = vld [vmem:[#allocation15 + $0x8] sm:$0xff]  ;;  %1964 = vmatpush.msrb.mxu0 %v1889_v27  ;;  %1942 = vmatpush.msrb.mxu3 %v1875_v32  ;;  %v2079_v32 = vld [vmem:[#allocation13 + $0x1c0] sm:$0xff] }
 0xe85   :  { %1922 = vmatpush.msrb.mxu2 %v1859_v31  ;;  %v2080_v27 = vld [vmem:[#allocation13 + $0x1c8] sm:$0xff]  ;;  %v2063_v31 = vld [vmem:[#allocation13 + $0x140] sm:$0xff] }
 0xe86   :  { %v1601_v36 = vmax.f32 %v1600_v35, 0.0  ;;  %v1874_v35 = vld [vmem:[#allocation15 + $0x88] sm:$0xff] }
 0xe87   :  { %1923 = vmatpush.msrb.mxu2 %v1858_v34  ;;  %1943 = vmatpush.msrb.mxu3 %v1874_v35  ;;  %v2062_v34 = vld [vmem:[#allocation13 + $0x138] sm:$0xff]  ;;  %v2061_v35 = vld [vmem:[#allocation13 + $0x130] sm:$0xff] }
 0xe88   :  { %v1691_v20 = vperm.slane %v1601_v36, 0  ;;  %v1692_v43 = vperm.slane %v1601_v36, 1  ;;  %v1857_v36 = vld [vmem:[#allocation15] sm:$0xff] }
 0xe89   :  { %1924 = vmatpush.msrb.mxu2 %v1857_v36  ;;  %v2060_v36 = vld [vmem:[#allocation13 + $0x128] sm:$0xff] }
 0xe8a   :  { %v1713_v40 = vadd.f32 %v1712_v37, %v1691_v20  ;;  %v1873_v20 = vld [vmem:[#allocation15 + $0x80] sm:$0xff]  ;;  %v2000_v37 = vld [vmem:[#allocation16 + $0xf0] sm:$0xff] }
 0xe8b   :  { %2008 = vmatpush.msrb.mxu1 %v2000_v37  ;;  %1944 = vmatpush.msrb.mxu3 %v1873_v20  ;;  %v3150_v20 = vld [vmem:[%s4171_s14] ss:$0 sm:$0xff] }
 0xe8c   :  { %v4056_v42 = vadd.f32 %v1732_v41, %v1713_v40  ;;  %v2001_v40 = vld [vmem:[#allocation16 + $0xf8] sm:$0xff]  ;;  %v1998_v41 = vld [vmem:[#allocation16 + $0xe0] sm:$0xff] }
 0xe8d   :  { %2028 = vmatpush.msra.mxu2 %v2001_v40  ;;  %2009 = vmatpush.msrb.mxu1 %v1998_v41 }
 0xe8e   :  { %1828 = vmatmul.f32.vlgmr.msra.gmra.mxu0 %v4056_v42  ;;  %2092 = vmatpush.msra.mxu3 %v2070_v26  ;;  %v2146_v26 = vld [vmem:[#allocation15 + $0x1c0] sm:$0xff] }
 0xe8f   :  { %2112 = vmatpush.msra.mxu0 %v2086_v29  ;;  %v2178_v29 = vld [vmem:[#allocation15 + $0x2c0] sm:$0xff] }
 0xe90   :  { %2093 = vmatpush.msra.mxu3 %v2069_v25  ;;  %v2162_v25 = vld [vmem:[#allocation15 + $0x240] sm:$0xff] }
 0xe91   :  { %2113 = vmatpush.msra.mxu0 %v2085_v30 }
 0xe92   :  { %2094 = vmatpush.msra.mxu3 %v2068_v28 }
 0xe93   :  { %2114 = vmatpush.msra.mxu0 %v2084_v33 }
 0xe94   :  { %2095 = vmatpush.msra.mxu3 %v2067_v7 }
 0xe95   :  { %2115 = vmatpush.msra.mxu0 %v2083_v8 }
 0xe96   :  { %2096 = vmatpush.msra.mxu3 %v2066_v13 }
 0xe97   :  { %2116 = vmatpush.msra.mxu0 %v2082_v17 }
 0xe98   :  { %v1752_v46 = vpop.f32.mrf.mxu2  ;;  %v1772_v48 = vpop.f32.mrf.mxu3  ;;  %2097 = vmatpush.msra.mxu3 %v2065_v21 }
 0xe99   :  { %v1753_v47 = vadd.f32 %v1752_v46, %v1692_v43  ;;  %v1999_v43 = vld [vmem:[#allocation16 + $0xe8] sm:$0xff]  ;;  %v1996_v46 = vld [vmem:[#allocation16 + $0xd0] sm:$0xff]  ;;  %2117 = vmatpush.msra.mxu0 %v2081_v24 }
 0xe9a   :  { %2029 = vmatpush.msra.mxu2 %v1999_v43  ;;  %2010 = vmatpush.msrb.mxu1 %v1996_v46 }
 0xe9b   :  { %v4059_v49 = vadd.f32 %v1772_v48, %v1753_v47  ;;  %v1997_v47 = vld [vmem:[#allocation16 + $0xd8] sm:$0xff]  ;;  %v1994_v48 = vld [vmem:[#allocation16 + $0xc0] sm:$0xff]  ;;  %2098 = vmatpush.msra.mxu3 %v2064_v18  ;;  %2118 = vmatpush.msra.mxu0 %v2080_v27 }
 0xe9c   :  { %2030 = vmatpush.msra.mxu2 %v1997_v47  ;;  %2011 = vmatpush.msrb.mxu1 %v1994_v48 }
 0xe9d   :  { %1848 = vmatmul.f32.vlgmr.msra.gmra.mxu1 %v4059_v49  ;;  %2099 = vmatpush.msra.mxu3 %v2063_v31 }
 0xe9e   :  { %2031 = vmatpush.msra.mxu2 %v1995_v50  ;;  %2012 = vmatpush.msrb.mxu1 %v1992_v51  ;;  %v2059_v50 = vld [vmem:[#allocation13 + $0x120] sm:$0xff]  ;;  %v2078_v51 = vld [vmem:[#allocation13 + $0x1b8] sm:$0xff] }
 0xe9f   :  { %2119 = vmatpush.msra.mxu0 %v2079_v32  ;;  %2100 = vmatpush.msra.mxu3 %v2062_v34  ;;  %v2177_v32 = vld [vmem:[#allocation15 + $0x2b8] sm:$0xff]  ;;  %v2175_v34 = vld [vmem:[#allocation15 + $0x2a8] sm:$0xff] }
 0xea0   :  { %2032 = vmatpush.msra.mxu2 %v1993_v54  ;;  %2013 = vmatpush.msrb.mxu1 %v1990_v55  ;;  %v2058_v54 = vld [vmem:[#allocation13 + $0x118] sm:$0xff]  ;;  %v2077_v55 = vld [vmem:[#allocation13 + $0x1b0] sm:$0xff] }
 0xea1   :  { %2101 = vmatpush.msra.mxu3 %v2061_v35  ;;  %2120 = vmatpush.msra.mxu0 %v2078_v51  ;;  %v2174_v35 = vld [vmem:[#allocation15 + $0x2a0] sm:$0xff]  ;;  %v2157_v51 = vld [vmem:[#allocation15 + $0x218] sm:$0xff] }
 0xea2   :  { %2033 = vmatpush.msra.mxu2 %v1991_v56  ;;  %2014 = vmatpush.msrb.mxu1 %v1988_v16  ;;  %v2057_v56 = vld [vmem:[#allocation13 + $0x110] sm:$0xff]  ;;  %v2076_v16 = vld [vmem:[#allocation13 + $0x1a8] sm:$0xff] }
 0xea3   :  { %2102 = vmatpush.msra.mxu3 %v2060_v36  ;;  %2121 = vmatpush.msra.mxu0 %v2077_v55  ;;  %v2145_v36 = vld [vmem:[#allocation15 + $0x1b8] sm:$0xff]  ;;  %v2140_v55 = vld [vmem:[#allocation15 + $0x190] sm:$0xff] }
 0xea5   :  { %2103 = vmatpush.msra.mxu3 %v2059_v50  ;;  %2122 = vmatpush.msra.mxu0 %v2076_v16  ;;  %v2141_v50 = vld [vmem:[#allocation15 + $0x198] sm:$0xff]  ;;  %v2170_v16 = vld [vmem:[#allocation15 + $0x280] sm:$0xff] }
 0xea7   :  { %2104 = vmatpush.msra.mxu3 %v2058_v54  ;;  %v2171_v54 = vld [vmem:[#allocation15 + $0x288] sm:$0xff] }
 0xea9   :  { %2105 = vmatpush.msra.mxu3 %v2057_v56  ;;  %v2156_v56 = vld [vmem:[#allocation15 + $0x210] sm:$0xff] }
 0xee6   :  { %v1471_v38 = vpop.xlane.xlu1 %1470 }
 0xee7   :  { %v1472_v39 = vrot.slane %v1471_v38, 4 }
 0xee9   :  { %v1473_v59 = vadd.f32 %v1472_v39, %v1471_v38  ;;  %v1989_v38 = vld [vmem:[#allocation16 + $0x98] sm:$0xff]  ;;  %v1986_v39 = vld [vmem:[#allocation16 + $0x80] sm:$0xff] }
 0xeea   :  { %2034 = vmatpush.msra.mxu2 %v1989_v38  ;;  %2015 = vmatpush.msrb.mxu1 %v1986_v39  ;;  %v2056_v38 = vld [vmem:[#allocation13 + $0x108] sm:$0xff]  ;;  %v2075_v39 = vld [vmem:[#allocation13 + $0x1a0] sm:$0xff] }
 0xeeb   :  { %v1474_v45 = vrot.slane %v1473_v59, 2  ;;  %2106 = vmatpush.msra.mxu3 %v2056_v38  ;;  %2123 = vmatpush.msra.mxu0 %v2075_v39  ;;  %v2139_v38 = vld [vmem:[#allocation15 + $0x188] sm:$0xff] }
 0xeec   :  { %2035 = vmatpush.msra.mxu2 %v1987_v44  ;;  %2016 = vmatpush.msrb.mxu1 %v1984_v52  ;;  %v2073_v44 = vld [vmem:[#allocation13 + $0x190] sm:$0xff]  ;;  %v2151_v52 = vld [vmem:[#allocation15 + $0x1e8] sm:$0xff] }
 0xeed   :  { %v1475_v1 = vadd.f32 %v1474_v45, %v1473_v59  ;;  %v2155_v39 = vld [vmem:[#allocation15 + $0x208] sm:$0xff] }
 0xeee   :  { %2036 = vmatpush.msra.mxu2 %v1985_v53  ;;  %v2167_v53 = vld [vmem:[#allocation15 + $0x268] sm:$0xff] }
 0xeef   :  { %v1476_v57 = vrot.slane %v1475_v1, 1 }
 0xef0   :  { %2037 = vmatpush.msra.mxu2 %v1983_v5  ;;  %v2150_v5 = vld [vmem:[#allocation15 + $0x1e0] sm:$0xff] }
 0xef1   :  { %v1477_v9 = vadd.f32 %v1476_v57, %v1475_v1  ;;  %v1982_v57 = vld [vmem:[#allocation16 + $0x60] sm:$0xff] }
 0xef2   :  { %2017 = vmatpush.msrb.mxu1 %v1982_v57  ;;  %2038 = vmatpush.msra.mxu2 %v1981_v4  ;;  %v2183_v57 = vld [vmem:[#allocation15 + $0x2e8] sm:$0xff]  ;;  %v2182_v4 = vld [vmem:[#allocation15 + $0x2e0] sm:$0xff] }
 0xef3   :  { %3118 = vpush %v1477_v9  ;;  %v1978_v9 = vld [vmem:[#allocation16 + $0x40] sm:$0xff] }
 0xef4   :  { %2018 = vmatpush.msrb.mxu1 %v1980_v6  ;;  %2039 = vmatpush.msra.mxu2 %v1979_v10  ;;  %v2166_v6 = vld [vmem:[#allocation15 + $0x260] sm:$0xff]  ;;  %v2165_v10 = vld [vmem:[#allocation15 + $0x258] sm:$0xff] }
 0xef6   :  { %2019 = vmatpush.msrb.mxu1 %v1978_v9  ;;  %2040 = vmatpush.msra.mxu2 %v1977_v12  ;;  %v2149_v9 = vld [vmem:[#allocation15 + $0x1d8] sm:$0xff]  ;;  %v2148_v12 = vld [vmem:[#allocation15 + $0x1d0] sm:$0xff] }
 0xef8   :  { %2020 = vmatpush.msrb.mxu1 %v1976_v11  ;;  %2041 = vmatpush.msra.mxu2 %v1975_v60  ;;  %v2181_v11 = vld [vmem:[#allocation15 + $0x2d8] sm:$0xff]  ;;  %v2180_v60 = vld [vmem:[#allocation15 + $0x2d0] sm:$0xff] }
 0xefa   :  { %2021 = vmatpush.msrb.mxu1 %v1974_v14  ;;  %2042 = vmatpush.msra.mxu2 %v1973_v19  ;;  %v2164_v14 = vld [vmem:[#allocation15 + $0x250] sm:$0xff] }
 0xefb   :  { %v2002_v19 = vld [vmem:[%s4173_s16] sm:$0x3] }
 0xefc   :  { %2022 = vmatpush.msrb.mxu1 %v1972_v15  ;;  %2043 = vmatpush.msra.mxu2 %v1971_v23  ;;  %v2147_v15 = vld [vmem:[#allocation15 + $0x1c8] sm:$0xff]  ;;  %v2004_v30 = vperm.slane %v2002_v19, 0  ;;  %v2005_v8 = vperm.slane %v2002_v19, 1 }
 0xefd   :  { %v2179_v23 = vld [vmem:[#allocation15 + $0x2c8] sm:$0xff] }
 0xefe   :  { %2023 = vmatpush.msrb.mxu1 %v1970_v22  ;;  %v2163_v22 = vld [vmem:[#allocation15 + $0x248] sm:$0xff] }
 0xf0b   :  { %v1829_v59 = vpop.f32.mrf.mxu0 }
 0xf0c   :  { %v1830_v45 = vadd.f32 %v3149_v58, %v1829_v59  ;;  %v2055_v58 = vld [vmem:[#allocation13 + $0x100] sm:$0xff]  ;;  %v2074_v59 = vld [vmem:[#allocation13 + $0x198] sm:$0xff] }
 0xf0d   :  { %2107 = vmatpush.msra.mxu3 %v2055_v58  ;;  %2124 = vmatpush.msra.mxu0 %v2074_v59  ;;  %v2138_v58 = vld [vmem:[#allocation15 + $0x180] sm:$0xff] }
 0xf0e   :  { %v2154_v59 = vld [vmem:[#allocation15 + $0x200] sm:$0xff] }
 0xf0f   :  { %2125 = vmatpush.msra.mxu0 %v2073_v44  ;;  %v2283_v44 = vld [vmem:[#allocation16 + $0x1f0] sm:$0xff] }
 0xf1a   :  { %v1849_v61 = vpop.f32.mrf.mxu1 }
 0xf1b   :  { %v1850_v62 = vadd.f32 %v1849_v61, %v1830_v45  ;;  %v2072_v45 = vld [vmem:[#allocation13 + $0x188] sm:$0xff]  ;;  %v2071_v61 = vld [vmem:[#allocation13 + $0x180] sm:$0xff] }
 0xf1c   :  { %2126 = vmatpush.msra.mxu0 %v2072_v45  ;;  %v2284_v45 = vld [vmem:[#allocation16 + $0x1f8] sm:$0xff] }
 0xf1d   :  { %v1852_v63 = vmax.f32 %v1850_v62, 0.0  ;;  %v2153_v62 = vld [vmem:[#allocation15 + $0x1f8] sm:$0xff] }
 0xf1e   :  { %2191 = vmatpush.msra.mxu1 %v2153_v62  ;;  %2127 = vmatpush.msra.mxu0 %v2071_v61  ;;  %v2281_v61 = vld [vmem:[#allocation16 + $0x1e0] sm:$0xff]  ;;  %v2282_v62 = vld [vmem:[#allocation16 + $0x1e8] sm:$0xff] }
 0xf1f   :  { %1853 = vst [vmem:[#allocation3 + $0x8] sm:$0xff] %v1852_v63  ;;  %1965 = vmatmul.f32.vlgmr.msrb.gmra.mxu0 %v1852_v63  ;;  %v2169_v63 = vld [vmem:[#allocation15 + $0x278] sm:$0xff] }
 0xf20   :  { %2292 = vmatpush.msrb.mxu0 %v2283_v44  ;;  %v2344_v44 = vld [vmem:[#allocation13 + $0x228] sm:$0xff] }
 0xf22   :  { %2293 = vmatpush.msrb.mxu0 %v2281_v61  ;;  %v3152_v61 = vld [vmem:[%s4171_s14 + $0x1] ss:$0 sm:$0xff] }
 0xf24   :  { %s3119_s15 = spop %3118 }
 0xf25   :  { %v1479_v0 = vstv %s3119_s15 }
 0xf26   :  { %v1480_v1 = vmul.f32 -0.5, %v1479_v0  ;;  %v1854_v2 = vld [vmem:[#allocation3 + $0x6] sm:$0xff] }
 0xf27   :  { %v1855_v3 = vld [vmem:[#allocation3 + $0x7] sm:$0xff]  ;;  %1925 = vmatmul.f32.vlgmr.msrb.gmra.mxu2 %v1854_v2 }
 0xf28   :  { %1945 = vmatmul.f32.vlgmr.msrb.gmra.mxu3 %v1855_v3  ;;  %1482 = vst.msk [vmem:[#allocation20] sm:$0x1] %vm1481_vm11, %v1480_v1  ;;  %v2185_v0 = vld [vmem:[#allocation15 + $0x2f8] sm:$0xff]  ;;  %v2152_v1 = vld [vmem:[#allocation15 + $0x1f0] sm:$0xff]  ;;  %2211 = vmatpush.msrb.mxu2 %v2169_v63 }
 0xf29   :  { %v2168_v2 = vld [vmem:[#allocation15 + $0x270] sm:$0xff]  ;;  %2231 = vmatpush.msrb.mxu3 %v2185_v0  ;;  %2192 = vmatpush.msra.mxu1 %v2152_v1  ;;  %v2280_v0 = vld [vmem:[#allocation16 + $0x1d8] sm:$0xff]  ;;  %v2277_v1 = vld [vmem:[#allocation16 + $0x1c0] sm:$0xff] }
 0xf2a   :  { %v2184_v3 = vld [vmem:[#allocation15 + $0x2f0] sm:$0xff]  ;;  %2212 = vmatpush.msrb.mxu2 %v2168_v2  ;;  %v2278_v2 = vld [vmem:[#allocation16 + $0x1c8] sm:$0xff] }
 0xf2b   :  { %2232 = vmatpush.msrb.mxu3 %v2184_v3  ;;  %2193 = vmatpush.msra.mxu1 %v2151_v52  ;;  %v2279_v63 = vld [vmem:[#allocation16 + $0x1d0] sm:$0xff]  ;;  %v2276_v52 = vld [vmem:[#allocation16 + $0x1b8] sm:$0xff] }
 0xf2c   :  { %2213 = vmatpush.msrb.mxu2 %v2167_v53  ;;  %2294 = vmatpush.msrb.mxu0 %v2279_v63  ;;  %v2275_v3 = vld [vmem:[#allocation16 + $0x1b0] sm:$0xff]  ;;  %v2273_v53 = vld [vmem:[#allocation16 + $0x1a0] sm:$0xff] }
 0xf2d   :  { %2233 = vmatpush.msrb.mxu3 %v2183_v57  ;;  %2194 = vmatpush.msra.mxu1 %v2150_v5  ;;  %v2274_v57 = vld [vmem:[#allocation16 + $0x1a8] sm:$0xff]  ;;  %v2271_v5 = vld [vmem:[#allocation16 + $0x190] sm:$0xff] }
 0xf2e   :  { %2214 = vmatpush.msrb.mxu2 %v2166_v6  ;;  %2295 = vmatpush.msrb.mxu0 %v2277_v1  ;;  %v2272_v6 = vld [vmem:[#allocation16 + $0x198] sm:$0xff] }
 0xf2f   :  { %2234 = vmatpush.msrb.mxu3 %v2182_v4  ;;  %2195 = vmatpush.msra.mxu1 %v2149_v9  ;;  %v2269_v4 = vld [vmem:[#allocation16 + $0x180] sm:$0xff]  ;;  %v3151_v9 = vld [vmem:[%s4169_s12 + $0x1] ss:$0 sm:$0xff] }
 0xf30   :  { %2215 = vmatpush.msrb.mxu2 %v2165_v10  ;;  %2296 = vmatpush.msrb.mxu0 %v2275_v3  ;;  %v2270_v10 = vld [vmem:[#allocation16 + $0x188] sm:$0xff] }
 0xf31   :  { %2235 = vmatpush.msrb.mxu3 %v2181_v11  ;;  %2196 = vmatpush.msra.mxu1 %v2148_v12  ;;  %v2267_v11 = vld [vmem:[#allocation16 + $0x170] sm:$0xff] }
 0xf32   :  { %2216 = vmatpush.msrb.mxu2 %v2164_v14  ;;  %2297 = vmatpush.msrb.mxu0 %v2273_v53  ;;  %v2268_v14 = vld [vmem:[#allocation16 + $0x178] sm:$0xff]  ;;  %v2343_v53 = vld [vmem:[#allocation13 + $0x220] sm:$0xff] }
 0xf33   :  { %2236 = vmatpush.msrb.mxu3 %v2180_v60  ;;  %2197 = vmatpush.msra.mxu1 %v2147_v15 }
 0xf34   :  { %2217 = vmatpush.msrb.mxu2 %v2163_v22  ;;  %2298 = vmatpush.msrb.mxu0 %v2271_v5  ;;  %v2342_v5 = vld [vmem:[#allocation13 + $0x218] sm:$0xff] }
 0xf35   :  { %2237 = vmatpush.msrb.mxu3 %v2179_v23  ;;  %2198 = vmatpush.msra.mxu1 %v2146_v26 }
 0xf36   :  { %2218 = vmatpush.msrb.mxu2 %v2162_v25  ;;  %2299 = vmatpush.msrb.mxu0 %v2269_v4  ;;  %v2265_v25 = vld [vmem:[#allocation16 + $0x160] sm:$0xff]  ;;  %v2341_v4 = vld [vmem:[#allocation13 + $0x210] sm:$0xff] }
 0xf37   :  { %2238 = vmatpush.msrb.mxu3 %v2178_v29  ;;  %2199 = vmatpush.msra.mxu1 %v2145_v36  ;;  %v2266_v29 = vld [vmem:[#allocation16 + $0x168] sm:$0xff]  ;;  %v2354_v36 = vld [vmem:[#allocation13 + $0x278] sm:$0xff] }
 0xf38   :  { %2300 = vmatpush.msrb.mxu0 %v2267_v11  ;;  %v2356_v11 = vld [vmem:[#allocation13 + $0x288] sm:$0xff] }
 0xf39   :  { %2239 = vmatpush.msrb.mxu3 %v2177_v32  ;;  %v2255_v32 = vld [vmem:[#allocation16 + $0x110] sm:$0xff] }
 0xf3a   :  { %2301 = vmatpush.msrb.mxu0 %v2265_v25  ;;  %v2435_v25 = vld [vmem:[#allocation15 + $0x368] sm:$0xff] }
 0xf9c   :  { %v1966_v46 = vpop.f32.mrf.mxu0 }
 0xfaa   :  { %v1926_v37 = vpop.f32.mrf.mxu2 }
 0xfab   :  { %v1927_v40 = vadd.f32 %v3150_v20, %v1926_v37  ;;  %v1946_v41 = vpop.f32.mrf.mxu3  ;;  %v2161_v20 = vld [vmem:[#allocation15 + $0x238] sm:$0xff] }
 0xfac   :  { %v2173_v37 = vld [vmem:[#allocation15 + $0x298] sm:$0xff]  ;;  %2219 = vmatpush.msrb.mxu2 %v2161_v20 }
 0xfad   :  { %v1947_v43 = vadd.f32 %v1946_v41, %v1927_v40  ;;  %v2160_v40 = vld [vmem:[#allocation15 + $0x230] sm:$0xff]  ;;  %v2370_v20 = vld [vmem:[#allocation13 + $0x2f8] sm:$0xff] }
 0xfae   :  { %v2172_v41 = vld [vmem:[#allocation15 + $0x290] sm:$0xff]  ;;  %2220 = vmatpush.msrb.mxu2 %v2160_v40  ;;  %v2352_v40 = vld [vmem:[#allocation13 + $0x268] sm:$0xff] }
 0xfaf   :  { %v1967_v47 = vadd.f32 %v1966_v46, %v1947_v43  ;;  %v2143_v43 = vld [vmem:[#allocation15 + $0x1a8] sm:$0xff] }
 0xfb0   :  { %v2159_v46 = vld [vmem:[#allocation15 + $0x228] sm:$0xff] }
 0xfb1   :  { %v1969_v48 = vmax.f32 %v1967_v47, 0.0  ;;  %v2142_v47 = vld [vmem:[#allocation15 + $0x1a0] sm:$0xff]  ;;  %2221 = vmatpush.msrb.mxu2 %v2159_v46 }
 0xfb2   :  { %v2367_v46 = vld [vmem:[#allocation13 + $0x2e0] sm:$0xff] }
 0xfb3   :  { %2024 = vmatmul.f32.vlgmr.msrb.gmra.mxu1 %v1969_v48  ;;  %2044 = vmatmul.f32.vlgmr.msra.gmra.mxu2 %v1969_v48  ;;  %v2158_v48 = vld [vmem:[#allocation15 + $0x220] sm:$0xff] }
 0xfb4   :  { %2222 = vmatpush.msrb.mxu2 %v2158_v48  ;;  %v2366_v48 = vld [vmem:[#allocation13 + $0x2d8] sm:$0xff] }
 0xfb6   :  { %2223 = vmatpush.msrb.mxu2 %v2157_v51  ;;  %v2365_v51 = vld [vmem:[#allocation13 + $0x2d0] sm:$0xff] }
 0xfb8   :  { %2224 = vmatpush.msrb.mxu2 %v2156_v56  ;;  %v2347_v56 = vld [vmem:[#allocation13 + $0x240] sm:$0xff] }
 0xfba   :  { %2225 = vmatpush.msrb.mxu2 %v2155_v39  ;;  %v2362_v39 = vld [vmem:[#allocation13 + $0x2b8] sm:$0xff] }
 0xfbc   :  { %2226 = vmatpush.msrb.mxu2 %v2154_v59  ;;  %v2361_v59 = vld [vmem:[#allocation13 + $0x2b0] sm:$0xff] }
 0xfbe   :  { %2376 = vmatpush.msra.mxu2 %v2354_v36  ;;  %v2463_v36 = vld [vmem:[#allocation15 + $0x448] sm:$0xff] }
0x1030   :  { %v2025_v28 = vpop.f32.mrf.mxu1 }
0x1031   :  { %v2026_v33 = vadd.f32 %v2025_v28, %v2004_v30  ;;  %v2263_v30 = vld [vmem:[#allocation16 + $0x150] sm:$0xff]  ;;  %v2264_v28 = vld [vmem:[#allocation16 + $0x158] sm:$0xff] }
0x1032   :  { %2302 = vmatpush.msrb.mxu0 %v2263_v30  ;;  %v2467_v30 = vld [vmem:[#allocation15 + $0x468] sm:$0xff] }
0x1033   :  { %v2048_v7 = vmax.f32 %v2026_v33, 0.0  ;;  %v2261_v33 = vld [vmem:[#allocation16 + $0x140] sm:$0xff] }
0x1034   :  { %2303 = vmatpush.msrb.mxu0 %v2261_v33  ;;  %v2450_v33 = vld [vmem:[#allocation15 + $0x3e0] sm:$0xff] }
0x1035   :  { %v4072_v13 = vadd.f32 %v2048_v7, %v4056_v42  ;;  %v2176_v42 = vld [vmem:[#allocation15 + $0x2b0] sm:$0xff]  ;;  %v2262_v7 = vld [vmem:[#allocation16 + $0x148] sm:$0xff] }
0x1036   :  { %v2045_v17 = vpop.f32.mrf.mxu2  ;;  %2240 = vmatpush.msrb.mxu3 %v2176_v42  ;;  %v2256_v42 = vld [vmem:[#allocation16 + $0x118] sm:$0xff] }
0x1037   :  { %v2052_v21 = vmax.f32 %v4072_v13, 0.0  ;;  %v2046_v24 = vadd.f32 %v2045_v17, %v2005_v8  ;;  %v2259_v8 = vld [vmem:[#allocation16 + $0x130] sm:$0xff]  ;;  %v2260_v17 = vld [vmem:[#allocation16 + $0x138] sm:$0xff]  ;;  %v2459_v13 = vld [vmem:[#allocation15 + $0x428] sm:$0xff] }
0x1038   :  { %2241 = vmatpush.msrb.mxu3 %v2175_v34  ;;  %2304 = vmatpush.msrb.mxu0 %v2259_v8  ;;  %v2253_v34 = vld [vmem:[#allocation16 + $0x100] sm:$0xff]  ;;  %v2433_v8 = vld [vmem:[#allocation15 + $0x358] sm:$0xff] }
0x1039   :  { %v2049_v18 = vmax.f32 %v2046_v24, 0.0  ;;  %2108 = vmatmul.f32.vlgmr.msra.gmra.mxu3 %v2052_v21  ;;  %v2257_v24 = vld [vmem:[#allocation16 + $0x120] sm:$0xff] }
0x103a   :  { %2242 = vmatpush.msrb.mxu3 %v2174_v35  ;;  %2305 = vmatpush.msrb.mxu0 %v2257_v24  ;;  %v2254_v35 = vld [vmem:[#allocation16 + $0x108] sm:$0xff]  ;;  %v2465_v24 = vld [vmem:[#allocation15 + $0x458] sm:$0xff] }
0x103b   :  { %v4078_v27 = vadd.f32 %v2049_v18, %v4059_v49  ;;  %v2144_v49 = vld [vmem:[#allocation15 + $0x1b0] sm:$0xff]  ;;  %v2258_v18 = vld [vmem:[#allocation16 + $0x128] sm:$0xff] }
0x103c   :  { %2243 = vmatpush.msrb.mxu3 %v2173_v37  ;;  %2200 = vmatpush.msra.mxu1 %v2144_v49  ;;  %v2353_v37 = vld [vmem:[#allocation13 + $0x270] sm:$0xff] }
0x103d   :  { %v2053_v31 = vmax.f32 %v4078_v27, 0.0  ;;  %2306 = vmatpush.msrb.mxu0 %v2255_v32  ;;  %v2369_v49 = vld [vmem:[#allocation13 + $0x2f0] sm:$0xff]  ;;  %2377 = vmatpush.msra.mxu2 %v2353_v37  ;;  %v2446_v37 = vld [vmem:[#allocation15 + $0x3c0] sm:$0xff]  ;;  %v2429_v27 = vld [vmem:[#allocation15 + $0x338] sm:$0xff] }
0x103e   :  { %2244 = vmatpush.msrb.mxu3 %v2172_v41  ;;  %2201 = vmatpush.msra.mxu1 %v2143_v43  ;;  %v2368_v41 = vld [vmem:[#allocation13 + $0x2e8] sm:$0xff]  ;;  %v2351_v43 = vld [vmem:[#allocation13 + $0x260] sm:$0xff]  ;;  %v2448_v32 = vld [vmem:[#allocation15 + $0x3d0] sm:$0xff] }
0x103f   :  { %2128 = vmatmul.f32.vlgmr.msra.gmra.mxu0 %v2053_v31  ;;  %2378 = vmatpush.msra.mxu2 %v2352_v40  ;;  %v3111_v40 = vld [vmem:[%s4173_s16 + $0x2] sm:$0x3] }
0x1040   :  { %2202 = vmatpush.msra.mxu1 %v2142_v47  ;;  %2245 = vmatpush.msrb.mxu3 %v2171_v54  ;;  %v2350_v47 = vld [vmem:[#allocation13 + $0x258] sm:$0xff]  ;;  %v2348_v54 = vld [vmem:[#allocation13 + $0x248] sm:$0xff] }
0x1041   :  { %2307 = vmatpush.msrb.mxu0 %v2253_v34  ;;  %2379 = vmatpush.msra.mxu2 %v2351_v43  ;;  %v2431_v34 = vld [vmem:[#allocation15 + $0x348] sm:$0xff]  ;;  %v2289_v43 = vperm.slane %v3111_v40, 1 }
0x1042   :  { %2203 = vmatpush.msra.mxu1 %v2141_v50  ;;  %2246 = vmatpush.msrb.mxu3 %v2170_v16  ;;  %v2349_v50 = vld [vmem:[#allocation13 + $0x250] sm:$0xff]  ;;  %v2363_v16 = vld [vmem:[#allocation13 + $0x2c0] sm:$0xff] }
0x1043   :  { %2380 = vmatpush.msra.mxu2 %v2350_v47 }
0x1044   :  { %2204 = vmatpush.msra.mxu1 %v2140_v55  ;;  %2396 = vmatpush.msra.mxu3 %v2370_v20  ;;  %v2364_v55 = vld [vmem:[#allocation13 + $0x2c8] sm:$0xff]  ;;  %v2430_v20 = vld [vmem:[#allocation15 + $0x340] sm:$0xff] }
0x1045   :  { %2381 = vmatpush.msra.mxu2 %v2349_v50 }
0x1046   :  { %2205 = vmatpush.msra.mxu1 %v2139_v38  ;;  %2397 = vmatpush.msra.mxu3 %v2369_v49  ;;  %v2346_v38 = vld [vmem:[#allocation13 + $0x238] sm:$0xff]  ;;  %v2462_v49 = vld [vmem:[#allocation15 + $0x440] sm:$0xff] }
0x1047   :  { %2382 = vmatpush.msra.mxu2 %v2348_v54 }
0x1048   :  { %2206 = vmatpush.msra.mxu1 %v2138_v58  ;;  %2398 = vmatpush.msra.mxu3 %v2368_v41  ;;  %v2345_v58 = vld [vmem:[#allocation13 + $0x230] sm:$0xff]  ;;  %v2288_v41 = vperm.slane %v3111_v40, 0 }
0x1049   :  { %2383 = vmatpush.msra.mxu2 %v2347_v56 }
0x104a   :  { %2312 = vmatpush.msrb.mxu1 %v2284_v45  ;;  %2399 = vmatpush.msra.mxu3 %v2367_v46  ;;  %v2360_v45 = vld [vmem:[#allocation13 + $0x2a8] sm:$0xff] }
0x104b   :  { %2384 = vmatpush.msra.mxu2 %v2346_v38 }
0x104c   :  { %2313 = vmatpush.msrb.mxu1 %v2282_v62  ;;  %2400 = vmatpush.msra.mxu3 %v2366_v48 }
0x104d   :  { %2385 = vmatpush.msra.mxu2 %v2345_v58  ;;  %v2460_v58 = vld [vmem:[#allocation15 + $0x430] sm:$0xff] }
0x104e   :  { %2314 = vmatpush.msrb.mxu1 %v2280_v0  ;;  %2401 = vmatpush.msra.mxu3 %v2365_v51 }
0x104f   :  { %2386 = vmatpush.msra.mxu2 %v2344_v44  ;;  %v2428_v44 = vld [vmem:[#allocation15 + $0x330] sm:$0xff] }
0x1050   :  { %2315 = vmatpush.msrb.mxu1 %v2278_v2  ;;  %2402 = vmatpush.msra.mxu3 %v2364_v55 }
0x1051   :  { %2387 = vmatpush.msra.mxu2 %v2343_v53  ;;  %v2424_v53 = vld [vmem:[#allocation15 + $0x310] sm:$0xff] }
0x1052   :  { %2316 = vmatpush.msrb.mxu1 %v2276_v52  ;;  %2403 = vmatpush.msra.mxu3 %v2363_v16 }
0x1053   :  { %2388 = vmatpush.msra.mxu2 %v2342_v5  ;;  %v2454_v5 = vld [vmem:[#allocation15 + $0x400] sm:$0xff] }
0x1054   :  { %2317 = vmatpush.msrb.mxu1 %v2274_v57  ;;  %2404 = vmatpush.msra.mxu3 %v2362_v39  ;;  %v2359_v57 = vld [vmem:[#allocation13 + $0x2a0] sm:$0xff]  ;;  %v2461_v39 = vld [vmem:[#allocation15 + $0x438] sm:$0xff] }
0x1055   :  { %2389 = vmatpush.msra.mxu2 %v2341_v4  ;;  %v2439_v4 = vld [vmem:[#allocation15 + $0x388] sm:$0xff] }
0x1056   :  { %2318 = vmatpush.msrb.mxu1 %v2272_v6  ;;  %2405 = vmatpush.msra.mxu3 %v2361_v59  ;;  %v2358_v6 = vld [vmem:[#allocation13 + $0x298] sm:$0xff] }
0x1057   :  { %v2457_v59 = vld [vmem:[#allocation15 + $0x418] sm:$0xff] }
0x1058   :  { %2319 = vmatpush.msrb.mxu1 %v2270_v10  ;;  %2406 = vmatpush.msra.mxu3 %v2360_v45  ;;  %v2340_v10 = vld [vmem:[#allocation13 + $0x208] sm:$0xff]  ;;  %v2444_v45 = vld [vmem:[#allocation15 + $0x3b0] sm:$0xff] }
0x1059   :  { %2390 = vmatpush.msra.mxu2 %v2340_v10  ;;  %v2438_v10 = vld [vmem:[#allocation15 + $0x380] sm:$0xff] }
0x105a   :  { %2320 = vmatpush.msrb.mxu1 %v2268_v14  ;;  %2407 = vmatpush.msra.mxu3 %v2359_v57  ;;  %v2355_v14 = vld [vmem:[#allocation13 + $0x280] sm:$0xff]  ;;  %v2440_v57 = vld [vmem:[#allocation15 + $0x390] sm:$0xff] }
0x105c   :  { %2321 = vmatpush.msrb.mxu1 %v2266_v29  ;;  %2408 = vmatpush.msra.mxu3 %v2358_v6  ;;  %v2451_v29 = vld [vmem:[#allocation15 + $0x3e8] sm:$0xff] }
0x105d   :  { %v2423_v6 = vld [vmem:[#allocation15 + $0x308] sm:$0xff] }
0x105e   :  { %2322 = vmatpush.msrb.mxu1 %v2264_v28  ;;  %v2434_v28 = vld [vmem:[#allocation15 + $0x360] sm:$0xff] }
0x1060   :  { %2323 = vmatpush.msrb.mxu1 %v2262_v7  ;;  %v2466_v7 = vld [vmem:[#allocation15 + $0x460] sm:$0xff] }
0x1062   :  { %2324 = vmatpush.msrb.mxu1 %v2260_v17  ;;  %v2449_v17 = vld [vmem:[#allocation15 + $0x3d8] sm:$0xff] }
0x1064   :  { %2325 = vmatpush.msrb.mxu1 %v2258_v18  ;;  %v2432_v18 = vld [vmem:[#allocation15 + $0x350] sm:$0xff] }
0x1066   :  { %2326 = vmatpush.msrb.mxu1 %v2256_v42  ;;  %v2464_v42 = vld [vmem:[#allocation15 + $0x450] sm:$0xff] }
0x1068   :  { %2327 = vmatpush.msrb.mxu1 %v2254_v35  ;;  %v2447_v35 = vld [vmem:[#allocation15 + $0x3c8] sm:$0xff] }
0x10bc   :  { %v2109_v12 = vpop.f32.mrf.mxu3  ;;  %v2129_v15 = vpop.f32.mrf.mxu0 }
0x10bd   :  { %v2110_v60 = vadd.f32 %v3151_v9, %v2109_v12  ;;  %v2357_v9 = vld [vmem:[#allocation13 + $0x290] sm:$0xff]  ;;  %v2339_v12 = vld [vmem:[#allocation13 + $0x200] sm:$0xff] }
0x10be   :  { %2409 = vmatpush.msra.mxu3 %v2357_v9  ;;  %2391 = vmatpush.msra.mxu2 %v2339_v12  ;;  %v2422_v9 = vld [vmem:[#allocation15 + $0x300] sm:$0xff]  ;;  %v2568_v12 = vld [vmem:[#allocation16 + $0x2f8] sm:$0xff] }
0x10bf   :  { %v2130_v19 = vadd.f32 %v2129_v15, %v2110_v60  ;;  %v2437_v60 = vld [vmem:[#allocation15 + $0x378] sm:$0xff] }
0x10c0   :  { %v2453_v15 = vld [vmem:[#allocation15 + $0x3f8] sm:$0xff]  ;;  %2410 = vmatpush.msra.mxu3 %v2356_v11  ;;  %2475 = vmatpush.msra.mxu0 %v2437_v60  ;;  %v2567_v11 = vld [vmem:[#allocation16 + $0x2f0] sm:$0xff]  ;;  %v2566_v60 = vld [vmem:[#allocation16 + $0x2e8] sm:$0xff] }
0x10c1   :  { %v2132_v22 = vmax.f32 %v2130_v19, 0.0  ;;  %v2469_v19 = vld [vmem:[#allocation15 + $0x478] sm:$0xff] }
0x10c2   :  { %2411 = vmatpush.msra.mxu3 %v2355_v14  ;;  %v2565_v14 = vld [vmem:[#allocation16 + $0x2e0] sm:$0xff] }
0x10c3   :  { %2133 = vst [vmem:[#allocation3 + $0x8] sm:$0xff] %v2132_v22  ;;  %2247 = vmatmul.f32.vlgmr.msrb.gmra.mxu3 %v2132_v22  ;;  %v2436_v22 = vld [vmem:[#allocation15 + $0x370] sm:$0xff] }
0x10c4   :  { %2476 = vmatpush.msra.mxu0 %v2436_v22  ;;  %2576 = vmatpush.msrb.mxu3 %v2567_v11  ;;  %v2561_v22 = vld [vmem:[#allocation16 + $0x2c0] sm:$0xff] }
0x10c6   :  { %2477 = vmatpush.msra.mxu0 %v2435_v25  ;;  %2577 = vmatpush.msrb.mxu3 %v2565_v14  ;;  %v2560_v25 = vld [vmem:[#allocation16 + $0x2b8] sm:$0xff] }
0x10c8   :  { %2478 = vmatpush.msra.mxu0 %v2434_v28  ;;  %v2555_v28 = vld [vmem:[#allocation16 + $0x290] sm:$0xff] }
0x10ca   :  { %v2134_v23 = vld [vmem:[#allocation3 + $0x4] sm:$0xff]  ;;  %2479 = vmatpush.msra.mxu0 %v2433_v8  ;;  %v3153_v8 = vld [vmem:[%s4169_s12 + $0x2] ss:$0 sm:$0xff] }
0x10cb   :  { %v2135_v26 = vld [vmem:[#allocation3 + $0x6] sm:$0xff]  ;;  %2207 = vmatmul.f32.vlgmr.msra.gmra.mxu1 %v2134_v23 }
0x10cc   :  { %2227 = vmatmul.f32.vlgmr.msrb.gmra.mxu2 %v2135_v26  ;;  %2495 = vmatpush.msra.mxu1 %v2453_v15  ;;  %v2452_v23 = vld [vmem:[#allocation15 + $0x3f0] sm:$0xff] }
0x10cd   :  { %v2468_v26 = vld [vmem:[#allocation15 + $0x470] sm:$0xff]  ;;  %2515 = vmatpush.msrb.mxu2 %v2469_v19  ;;  %2480 = vmatpush.msra.mxu0 %v2432_v18  ;;  %v2564_v19 = vld [vmem:[#allocation16 + $0x2d8] sm:$0xff] }
0x10ce   :  { %2496 = vmatpush.msra.mxu1 %v2452_v23  ;;  %v2563_v15 = vld [vmem:[#allocation16 + $0x2d0] sm:$0xff]  ;;  %v2562_v23 = vld [vmem:[#allocation16 + $0x2c8] sm:$0xff] }
0x10cf   :  { %2516 = vmatpush.msrb.mxu2 %v2468_v26  ;;  %2481 = vmatpush.msra.mxu0 %v2431_v34  ;;  %v2559_v26 = vld [vmem:[#allocation16 + $0x2b0] sm:$0xff] }
0x10d0   :  { %2497 = vmatpush.msra.mxu1 %v2451_v29  ;;  %2578 = vmatpush.msrb.mxu3 %v2563_v15  ;;  %v2557_v29 = vld [vmem:[#allocation16 + $0x2a0] sm:$0xff] }
0x10d1   :  { %2517 = vmatpush.msrb.mxu2 %v2467_v30  ;;  %2482 = vmatpush.msra.mxu0 %v2430_v20  ;;  %v2558_v30 = vld [vmem:[#allocation16 + $0x2a8] sm:$0xff] }
0x10d2   :  { %2498 = vmatpush.msra.mxu1 %v2450_v33  ;;  %2579 = vmatpush.msrb.mxu3 %v2561_v22  ;;  %v2556_v33 = vld [vmem:[#allocation16 + $0x298] sm:$0xff] }
0x10d3   :  { %2518 = vmatpush.msrb.mxu2 %v2466_v7  ;;  %2483 = vmatpush.msra.mxu0 %v2429_v27  ;;  %v2553_v7 = vld [vmem:[#allocation16 + $0x280] sm:$0xff]  ;;  %v2654_v27 = vld [vmem:[#allocation13 + $0x3f8] sm:$0xff] }
0x10d4   :  { %2499 = vmatpush.msra.mxu1 %v2449_v17  ;;  %2580 = vmatpush.msrb.mxu3 %v2559_v26  ;;  %v2554_v17 = vld [vmem:[#allocation16 + $0x288] sm:$0xff]  ;;  %v2643_v26 = vld [vmem:[#allocation13 + $0x3a0] sm:$0xff] }
0x10d5   :  { %2519 = vmatpush.msrb.mxu2 %v2465_v24  ;;  %2484 = vmatpush.msra.mxu0 %v2428_v44  ;;  %v2551_v24 = vld [vmem:[#allocation16 + $0x270] sm:$0xff] }
0x10d6   :  { %2500 = vmatpush.msra.mxu1 %v2448_v32  ;;  %2581 = vmatpush.msrb.mxu3 %v2557_v29  ;;  %v2552_v32 = vld [vmem:[#allocation16 + $0x278] sm:$0xff]  ;;  %v2637_v44 = vld [vmem:[#allocation13 + $0x370] sm:$0xff] }
0x10d7   :  { %2520 = vmatpush.msrb.mxu2 %v2464_v42  ;;  %v2549_v42 = vld [vmem:[#allocation16 + $0x260] sm:$0xff]  ;;  %v2642_v29 = vld [vmem:[#allocation13 + $0x398] sm:$0xff] }
0x10d8   :  { %2501 = vmatpush.msra.mxu1 %v2447_v35  ;;  %2582 = vmatpush.msrb.mxu3 %v2555_v28  ;;  %v2641_v28 = vld [vmem:[#allocation13 + $0x390] sm:$0xff] }
0x10d9   :  { %2521 = vmatpush.msrb.mxu2 %v2463_v36  ;;  %v2550_v36 = vld [vmem:[#allocation16 + $0x268] sm:$0xff] }
0x10da   :  { %2502 = vmatpush.msra.mxu1 %v2446_v37  ;;  %2583 = vmatpush.msrb.mxu3 %v2553_v7  ;;  %v2640_v7 = vld [vmem:[#allocation13 + $0x388] sm:$0xff] }
0x10db   :  { %2522 = vmatpush.msrb.mxu2 %v2462_v49 }
0x10dc   :  { %2584 = vmatpush.msrb.mxu3 %v2551_v24  ;;  %v2625_v24 = vld [vmem:[#allocation13 + $0x310] sm:$0xff] }
0x10dd   :  { %2523 = vmatpush.msrb.mxu2 %v2461_v39  ;;  %v2539_v39 = vld [vmem:[#allocation16 + $0x210] sm:$0xff] }
0x10de   :  { %2585 = vmatpush.msrb.mxu3 %v2549_v42  ;;  %v2721_v42 = vld [vmem:[#allocation15 + $0x4f8] sm:$0xff] }
0x10df   :  { %2524 = vmatpush.msrb.mxu2 %v2460_v58  ;;  %v2540_v58 = vld [vmem:[#allocation16 + $0x218] sm:$0xff] }
0x10e1   :  { %2525 = vmatpush.msrb.mxu2 %v2459_v13  ;;  %v2537_v13 = vld [vmem:[#allocation16 + $0x200] sm:$0xff] }
0x1146   :  { %v2248_v2 = vpop.f32.mrf.mxu3 }
0x1148   :  { %v2208_v62 = vpop.f32.mrf.mxu1 }
0x1149   :  { %v2209_v63 = vadd.f32 %v3152_v61, %v2208_v62  ;;  %v2456_v61 = vld [vmem:[#allocation15 + $0x410] sm:$0xff]  ;;  %v2427_v62 = vld [vmem:[#allocation15 + $0x328] sm:$0xff] }
0x114a   :  { %2485 = vmatpush.msra.mxu0 %v2427_v62  ;;  %v2651_v62 = vld [vmem:[#allocation13 + $0x3e0] sm:$0xff] }
0x114f   :  { %v2228_v0 = vpop.f32.mrf.mxu2 }
0x1150   :  { %v2229_v1 = vadd.f32 %v2228_v0, %v2209_v63  ;;  %v2443_v63 = vld [vmem:[#allocation15 + $0x3a8] sm:$0xff]  ;;  %v2426_v0 = vld [vmem:[#allocation15 + $0x320] sm:$0xff] }
0x1151   :  { %2486 = vmatpush.msra.mxu0 %v2426_v0  ;;  %v2650_v0 = vld [vmem:[#allocation13 + $0x3d8] sm:$0xff] }
0x1152   :  { %v2249_v3 = vadd.f32 %v2248_v2, %v2229_v1  ;;  %v2442_v1 = vld [vmem:[#allocation15 + $0x3a0] sm:$0xff]  ;;  %v2425_v2 = vld [vmem:[#allocation15 + $0x318] sm:$0xff] }
0x1153   :  { %2487 = vmatpush.msra.mxu0 %v2425_v2  ;;  %v2649_v2 = vld [vmem:[#allocation13 + $0x3d0] sm:$0xff] }
0x1154   :  { %v2251_v52 = vmax.f32 %v2249_v3, 0.0  ;;  %v2441_v3 = vld [vmem:[#allocation15 + $0x398] sm:$0xff] }
0x1155   :  { %2488 = vmatpush.msra.mxu0 %v2424_v53  ;;  %v2632_v53 = vld [vmem:[#allocation13 + $0x348] sm:$0xff] }
0x1156   :  { %2308 = vmatmul.f32.vlgmr.msrb.gmra.mxu0 %v2251_v52  ;;  %2328 = vmatmul.f32.vlgmr.msrb.gmra.mxu1 %v2251_v52  ;;  %v2455_v52 = vld [vmem:[#allocation15 + $0x408] sm:$0xff] }
0x1157   :  { %2489 = vmatpush.msra.mxu0 %v2423_v6  ;;  %v2646_v6 = vld [vmem:[#allocation13 + $0x3b8] sm:$0xff] }
0x1159   :  { %2490 = vmatpush.msra.mxu0 %v2422_v9  ;;  %v2644_v9 = vld [vmem:[#allocation13 + $0x3a8] sm:$0xff] }
0x115b   :  { %2596 = vmatpush.msrb.mxu0 %v2568_v12 }
0x115d   :  { %2597 = vmatpush.msrb.mxu0 %v2566_v60 }
0x115f   :  { %2598 = vmatpush.msrb.mxu0 %v2564_v19 }
0x1161   :  { %2599 = vmatpush.msrb.mxu0 %v2562_v23  ;;  %v2630_v23 = vld [vmem:[#allocation13 + $0x338] sm:$0xff] }
0x1163   :  { %2600 = vmatpush.msrb.mxu0 %v2560_v25  ;;  %v2629_v25 = vld [vmem:[#allocation13 + $0x330] sm:$0xff] }
0x1165   :  { %2601 = vmatpush.msrb.mxu0 %v2558_v30  ;;  %v2628_v30 = vld [vmem:[#allocation13 + $0x328] sm:$0xff] }
0x1167   :  { %2602 = vmatpush.msrb.mxu0 %v2556_v33  ;;  %v2627_v33 = vld [vmem:[#allocation13 + $0x320] sm:$0xff] }
0x1169   :  { %2603 = vmatpush.msrb.mxu0 %v2554_v17  ;;  %v2639_v17 = vld [vmem:[#allocation13 + $0x380] sm:$0xff] }
0x116b   :  { %2604 = vmatpush.msrb.mxu0 %v2552_v32  ;;  %v2623_v32 = vld [vmem:[#allocation13 + $0x300] sm:$0xff] }
0x116d   :  { %2605 = vmatpush.msrb.mxu0 %v2550_v36  ;;  %v2720_v36 = vld [vmem:[#allocation15 + $0x4f0] sm:$0xff] }
0x11d3   :  { %v2309_v46 = vpop.f32.mrf.mxu0  ;;  %v2329_v47 = vpop.f32.mrf.mxu1 }
0x11d4   :  { %v2310_v48 = vadd.f32 %v2309_v46, %v2288_v41  ;;  %v2330_v50 = vadd.f32 %v2329_v47, %v2289_v43  ;;  %v2547_v41 = vld [vmem:[#allocation16 + $0x250] sm:$0xff]  ;;  %v2548_v43 = vld [vmem:[#allocation16 + $0x258] sm:$0xff]  ;;  %v2545_v46 = vld [vmem:[#allocation16 + $0x240] sm:$0xff] }
0x11d5   :  { %2586 = vmatpush.msrb.mxu3 %v2547_v41  ;;  %2606 = vmatpush.msrb.mxu0 %v2548_v43  ;;  %v2546_v47 = vld [vmem:[#allocation16 + $0x248] sm:$0xff]  ;;  %v2718_v41 = vld [vmem:[#allocation15 + $0x4e0] sm:$0xff] }
0x11d6   :  { %v2332_v51 = vmax.f32 %v2310_v48, 0.0  ;;  %v2333_v54 = vmax.f32 %v2330_v50, 0.0  ;;  %v2543_v48 = vld [vmem:[#allocation16 + $0x230] sm:$0xff]  ;;  %v2544_v50 = vld [vmem:[#allocation16 + $0x238] sm:$0xff]  ;;  %v2751_v43 = vld [vmem:[#allocation15 + $0x5e8] sm:$0xff] }
0x11d7   :  { %2587 = vmatpush.msrb.mxu3 %v2545_v46  ;;  %2607 = vmatpush.msrb.mxu0 %v2546_v47  ;;  %v2734_v46 = vld [vmem:[#allocation15 + $0x560] sm:$0xff]  ;;  %v2717_v47 = vld [vmem:[#allocation15 + $0x4d8] sm:$0xff] }
0x11d8   :  { %v4094_v55 = vadd.f32 %v2332_v51, %v2052_v21  ;;  %v4098_v56 = vadd.f32 %v2333_v54, %v2053_v31  ;;  %v2458_v21 = vld [vmem:[#allocation15 + $0x420] sm:$0xff]  ;;  %v2445_v31 = vld [vmem:[#allocation15 + $0x3b8] sm:$0xff]  ;;  %v2542_v54 = vld [vmem:[#allocation16 + $0x228] sm:$0xff] }
0x11d9   :  { %2526 = vmatpush.msrb.mxu2 %v2458_v21  ;;  %2503 = vmatpush.msra.mxu1 %v2445_v31  ;;  %v2541_v51 = vld [vmem:[#allocation16 + $0x220] sm:$0xff]  ;;  %v2538_v21 = vld [vmem:[#allocation16 + $0x208] sm:$0xff]  ;;  %v2653_v31 = vld [vmem:[#allocation13 + $0x3f0] sm:$0xff] }
0x11da   :  { %v2336_v16 = vmax.f32 %v4094_v55, 0.0  ;;  %v2337_v38 = vmax.f32 %v4098_v56, 0.0  ;;  %2588 = vmatpush.msrb.mxu3 %v2543_v48  ;;  %2608 = vmatpush.msrb.mxu0 %v2544_v50  ;;  %v2750_v48 = vld [vmem:[#allocation15 + $0x5e0] sm:$0xff]  ;;  %v2733_v50 = vld [vmem:[#allocation15 + $0x558] sm:$0xff]  ;;  %v2712_v55 = vld [vmem:[#allocation15 + $0x4b0] sm:$0xff] }
0x11db   :  { %2527 = vmatpush.msrb.mxu2 %v2457_v59  ;;  %2504 = vmatpush.msra.mxu1 %v2444_v45  ;;  %v2638_v59 = vld [vmem:[#allocation13 + $0x378] sm:$0xff]  ;;  %v2652_v45 = vld [vmem:[#allocation13 + $0x3e8] sm:$0xff] }
0x11dc   :  { %2392 = vmatmul.f32.vlgmr.msra.gmra.mxu2 %v2336_v16  ;;  %2412 = vmatmul.f32.vlgmr.msra.gmra.mxu3 %v2337_v38  ;;  %v2745_v56 = vld [vmem:[#allocation15 + $0x5b8] sm:$0xff] }
0x11dd   :  { %2528 = vmatpush.msrb.mxu2 %v2456_v61  ;;  %2505 = vmatpush.msra.mxu1 %v2443_v63  ;;  %v2636_v61 = vld [vmem:[#allocation13 + $0x368] sm:$0xff]  ;;  %v2635_v63 = vld [vmem:[#allocation13 + $0x360] sm:$0xff] }
0x11de   :  { %2589 = vmatpush.msrb.mxu3 %v2541_v51  ;;  %2609 = vmatpush.msrb.mxu0 %v2542_v54  ;;  %v2716_v51 = vld [vmem:[#allocation15 + $0x4d0] sm:$0xff]  ;;  %v2749_v54 = vld [vmem:[#allocation15 + $0x5d8] sm:$0xff] }
0x11df   :  { %2506 = vmatpush.msra.mxu1 %v2442_v1  ;;  %2529 = vmatpush.msrb.mxu2 %v2455_v52  ;;  %v2634_v1 = vld [vmem:[#allocation13 + $0x358] sm:$0xff]  ;;  %v2648_v52 = vld [vmem:[#allocation13 + $0x3c8] sm:$0xff] }
0x11e0   :  { %2590 = vmatpush.msrb.mxu3 %v2539_v39  ;;  %2610 = vmatpush.msrb.mxu0 %v2540_v58  ;;  %v2732_v39 = vld [vmem:[#allocation15 + $0x550] sm:$0xff]  ;;  %v2715_v58 = vld [vmem:[#allocation15 + $0x4c8] sm:$0xff] }
0x11e1   :  { %2507 = vmatpush.msra.mxu1 %v2441_v3  ;;  %2530 = vmatpush.msrb.mxu2 %v2454_v5  ;;  %v2633_v3 = vld [vmem:[#allocation13 + $0x350] sm:$0xff]  ;;  %v2631_v5 = vld [vmem:[#allocation13 + $0x340] sm:$0xff] }
0x11e2   :  { %2591 = vmatpush.msrb.mxu3 %v2537_v13  ;;  %2611 = vmatpush.msrb.mxu0 %v2538_v21  ;;  %v3114_v13 = vld [vmem:[%s4173_s16 + $0x4] sm:$0x3] }
0x11e3   :  { %2508 = vmatpush.msra.mxu1 %v2440_v57  ;;  %2680 = vmatpush.msra.mxu2 %v2654_v27  ;;  %v2647_v57 = vld [vmem:[#allocation13 + $0x3c0] sm:$0xff]  ;;  %v2748_v21 = vld [vmem:[#allocation15 + $0x5d0] sm:$0xff]  ;;  %v2731_v27 = vld [vmem:[#allocation15 + $0x548] sm:$0xff] }
0x11e4   :  { %2759 = vmatpush.msra.mxu3 %v2721_v42  ;;  %v2850_v42 = vld [vmem:[#allocation16 + $0x3e8] sm:$0xff] }
0x11e5   :  { %2509 = vmatpush.msra.mxu1 %v2439_v4  ;;  %2681 = vmatpush.msra.mxu2 %v2653_v31  ;;  %v2645_v4 = vld [vmem:[#allocation13 + $0x3b0] sm:$0xff]  ;;  %v2714_v31 = vld [vmem:[#allocation15 + $0x4c0] sm:$0xff] }
0x11e6   :  { %2760 = vmatpush.msra.mxu3 %v2720_v36  ;;  %v2845_v36 = vld [vmem:[#allocation16 + $0x3c0] sm:$0xff] }
0x11e7   :  { %2510 = vmatpush.msra.mxu1 %v2438_v10  ;;  %2682 = vmatpush.msra.mxu2 %v2652_v45  ;;  %v3154_v10 = vld [vmem:[%s4171_s14 + $0x2] ss:$0 sm:$0xff]  ;;  %v2573_v45 = vperm.slane %v3114_v13, 1 }
0x11e9   :  { %2660 = vmatpush.msrb.mxu1 %v2638_v59  ;;  %2683 = vmatpush.msra.mxu2 %v2651_v62  ;;  %v2747_v59 = vld [vmem:[#allocation15 + $0x5c8] sm:$0xff] }
0x11eb   :  { %2661 = vmatpush.msrb.mxu1 %v2637_v44  ;;  %2684 = vmatpush.msra.mxu2 %v2650_v0  ;;  %v2730_v44 = vld [vmem:[#allocation15 + $0x540] sm:$0xff] }
0x11ed   :  { %2662 = vmatpush.msrb.mxu1 %v2636_v61  ;;  %2685 = vmatpush.msra.mxu2 %v2649_v2  ;;  %v2746_v61 = vld [vmem:[#allocation15 + $0x5c0] sm:$0xff] }
0x11ef   :  { %2663 = vmatpush.msrb.mxu1 %v2635_v63  ;;  %2686 = vmatpush.msra.mxu2 %v2648_v52 }
0x11f1   :  { %2664 = vmatpush.msrb.mxu1 %v2634_v1  ;;  %2687 = vmatpush.msra.mxu2 %v2647_v57  ;;  %v2572_v1 = vperm.slane %v3114_v13, 0 }
0x11f3   :  { %2665 = vmatpush.msrb.mxu1 %v2633_v3  ;;  %2688 = vmatpush.msra.mxu2 %v2646_v6 }
0x11f5   :  { %2666 = vmatpush.msrb.mxu1 %v2632_v53  ;;  %2689 = vmatpush.msra.mxu2 %v2645_v4  ;;  %v2743_v4 = vld [vmem:[#allocation15 + $0x5a8] sm:$0xff] }
0x11f7   :  { %2667 = vmatpush.msrb.mxu1 %v2631_v5  ;;  %2690 = vmatpush.msra.mxu2 %v2644_v9  ;;  %v2742_v9 = vld [vmem:[#allocation15 + $0x5a0] sm:$0xff] }
0x11f9   :  { %2668 = vmatpush.msrb.mxu1 %v2630_v23  ;;  %2691 = vmatpush.msra.mxu2 %v2643_v26  ;;  %v2709_v23 = vld [vmem:[#allocation15 + $0x498] sm:$0xff] }
0x11fa   :  { %v2725_v26 = vld [vmem:[#allocation15 + $0x518] sm:$0xff] }
0x11fb   :  { %2669 = vmatpush.msrb.mxu1 %v2629_v25  ;;  %2692 = vmatpush.msra.mxu2 %v2642_v29  ;;  %v2739_v25 = vld [vmem:[#allocation15 + $0x588] sm:$0xff]  ;;  %v2708_v29 = vld [vmem:[#allocation15 + $0x490] sm:$0xff] }
0x11fd   :  { %2670 = vmatpush.msrb.mxu1 %v2628_v30  ;;  %2693 = vmatpush.msra.mxu2 %v2641_v28  ;;  %v2724_v30 = vld [vmem:[#allocation15 + $0x510] sm:$0xff]  ;;  %v2738_v28 = vld [vmem:[#allocation15 + $0x580] sm:$0xff] }
0x11ff   :  { %2671 = vmatpush.msrb.mxu1 %v2627_v33  ;;  %2694 = vmatpush.msra.mxu2 %v2640_v7  ;;  %v2707_v33 = vld [vmem:[#allocation15 + $0x488] sm:$0xff] }
0x1200   :  { %v2723_v7 = vld [vmem:[#allocation15 + $0x508] sm:$0xff] }
0x1201   :  { %2695 = vmatpush.msra.mxu2 %v2639_v17  ;;  %v2722_v17 = vld [vmem:[#allocation15 + $0x500] sm:$0xff] }
0x125f   :  { %v2393_v18 = vpop.f32.mrf.mxu2  ;;  %v2413_v35 = vpop.f32.mrf.mxu3 }
0x1260   :  { %v2394_v34 = vadd.f32 %v3153_v8, %v2393_v18  ;;  %v2626_v8 = vld [vmem:[#allocation13 + $0x318] sm:$0xff]  ;;  %v2624_v18 = vld [vmem:[#allocation13 + $0x308] sm:$0xff] }
0x1261   :  { %2672 = vmatpush.msrb.mxu1 %v2626_v8  ;;  %v2706_v8 = vld [vmem:[#allocation15 + $0x480] sm:$0xff] }
0x1262   :  { %v2414_v20 = vadd.f32 %v2413_v35, %v2394_v34  ;;  %v2737_v34 = vld [vmem:[#allocation15 + $0x578] sm:$0xff] }
0x1263   :  { %2673 = vmatpush.msrb.mxu1 %v2625_v24  ;;  %v2753_v35 = vld [vmem:[#allocation15 + $0x5f8] sm:$0xff]  ;;  %v2851_v24 = vld [vmem:[#allocation16 + $0x3f0] sm:$0xff] }
0x1264   :  { %v2416_v37 = vmax.f32 %v2414_v20, 0.0  ;;  %v2736_v20 = vld [vmem:[#allocation15 + $0x570] sm:$0xff] }
0x1265   :  { %2674 = vmatpush.msrb.mxu1 %v2624_v18  ;;  %v2852_v18 = vld [vmem:[#allocation16 + $0x3f8] sm:$0xff] }
0x1266   :  { %2417 = vst [vmem:[#allocation3 + $0x8] sm:$0xff] %v2416_v37  ;;  %2531 = vmatmul.f32.vlgmr.msrb.gmra.mxu2 %v2416_v37  ;;  %v2719_v37 = vld [vmem:[#allocation15 + $0x4e8] sm:$0xff] }
0x1267   :  { %2675 = vmatpush.msrb.mxu1 %v2623_v32  ;;  %2761 = vmatpush.msra.mxu3 %v2719_v37  ;;  %v2849_v32 = vld [vmem:[#allocation16 + $0x3e0] sm:$0xff]  ;;  %v2843_v37 = vld [vmem:[#allocation16 + $0x3b0] sm:$0xff] }
0x1268   :  { %2860 = vmatpush.msrb.mxu2 %v2851_v24  ;;  %v2909_v24 = vld [vmem:[#allocation18 + $0x18] sm:$0xff] }
0x1269   :  { %2762 = vmatpush.msra.mxu3 %v2718_v41  ;;  %v2842_v41 = vld [vmem:[#allocation16 + $0x3a8] sm:$0xff] }
0x126a   :  { %2861 = vmatpush.msrb.mxu2 %v2849_v32  ;;  %v2907_v32 = vld [vmem:[#allocation18 + $0x8] sm:$0xff] }
0x126b   :  { %2763 = vmatpush.msra.mxu3 %v2717_v47  ;;  %v2837_v47 = vld [vmem:[#allocation16 + $0x380] sm:$0xff] }
0x126d   :  { %v2418_v49 = vld [vmem:[#allocation3 + $0x6] sm:$0xff]  ;;  %2764 = vmatpush.msra.mxu3 %v2716_v51 }
0x126e   :  { %v2419_v40 = vld [vmem:[#allocation3 + $0x7] sm:$0xff]  ;;  %2491 = vmatmul.f32.vlgmr.msra.gmra.mxu0 %v2418_v49 }
0x126f   :  { %2511 = vmatmul.f32.vlgmr.msra.gmra.mxu1 %v2419_v40  ;;  %2779 = vmatpush.msra.mxu0 %v2737_v34  ;;  %v2752_v49 = vld [vmem:[#allocation15 + $0x5f0] sm:$0xff]  ;;  %v2735_v40 = vld [vmem:[#allocation15 + $0x568] sm:$0xff] }
0x1270   :  { %2799 = vmatpush.msra.mxu1 %v2753_v35  ;;  %2765 = vmatpush.msra.mxu3 %v2715_v58  ;;  %v2847_v34 = vld [vmem:[#allocation16 + $0x3d0] sm:$0xff]  ;;  %v2848_v35 = vld [vmem:[#allocation16 + $0x3d8] sm:$0xff] }
0x1271   :  { %2780 = vmatpush.msra.mxu0 %v2736_v20  ;;  %2862 = vmatpush.msrb.mxu2 %v2847_v34  ;;  %v2846_v20 = vld [vmem:[#allocation16 + $0x3c8] sm:$0xff]  ;;  %v3117_v34 = vld [vmem:[%s4173_s16 + $0x6] sm:$0x3]  ;;  %s3006_s16 = sshll.u32 %s3571_s9, 4  ;;  %s3007_s16 = int_to_ptr.vmem [resolvable:$true] %s3006_s16 }
0x1272   :  { %2800 = vmatpush.msra.mxu1 %v2752_v49  ;;  %2766 = vmatpush.msra.mxu3 %v2714_v31  ;;  %v2844_v49 = vld [vmem:[#allocation16 + $0x3b8] sm:$0xff]  ;;  %v2835_v31 = vld [vmem:[#allocation16 + $0x370] sm:$0xff]  ;;  %3011 = dma.vmem_to_hbm [thread:$0]  %s3007_s16, 16, %s3009_s30, [#allocation21]  }
0x1273   :  { %2781 = vmatpush.msra.mxu0 %v2735_v40  ;;  %2863 = vmatpush.msrb.mxu2 %v2845_v36  ;;  %v2841_v40 = vld [vmem:[#allocation16 + $0x3a0] sm:$0xff]  ;;  %v2857_v36 = vperm.slane %v3117_v34, 1 }
0x1274   :  { %2801 = vmatpush.msra.mxu1 %v2751_v43  ;;  %v2839_v43 = vld [vmem:[#allocation16 + $0x390] sm:$0xff] }
0x1275   :  { %2782 = vmatpush.msra.mxu0 %v2734_v46  ;;  %2864 = vmatpush.msrb.mxu2 %v2843_v37  ;;  %v2840_v46 = vld [vmem:[#allocation16 + $0x398] sm:$0xff] }
0x1276   :  { %2802 = vmatpush.msra.mxu1 %v2750_v48  ;;  %v3155_v48 = vld [vmem:[%s4169_s12 + $0x3] ss:$0 sm:$0xff] }
0x1277   :  { %2783 = vmatpush.msra.mxu0 %v2733_v50  ;;  %2865 = vmatpush.msrb.mxu2 %v2841_v40  ;;  %v2838_v50 = vld [vmem:[#allocation16 + $0x388] sm:$0xff] }
0x1278   :  { %2803 = vmatpush.msra.mxu1 %v2749_v54 }
0x1279   :  { %2784 = vmatpush.msra.mxu0 %v2732_v39  ;;  %2866 = vmatpush.msrb.mxu2 %v2839_v43 }
0x127a   :  { %2804 = vmatpush.msra.mxu1 %v2748_v21 }
0x127b   :  { %2785 = vmatpush.msra.mxu0 %v2731_v27  ;;  %2867 = vmatpush.msrb.mxu2 %v2837_v47 }
0x127c   :  { %2805 = vmatpush.msra.mxu1 %v2747_v59  ;;  %v2836_v59 = vld [vmem:[#allocation16 + $0x378] sm:$0xff] }
0x127d   :  { %2786 = vmatpush.msra.mxu0 %v2730_v44  ;;  %v2833_v44 = vld [vmem:[#allocation16 + $0x360] sm:$0xff]  ;;  %2868 = vmatpush.msrb.mxu2 %v2835_v31 }
0x127e   :  { %2806 = vmatpush.msra.mxu1 %v2746_v61  ;;  %v2831_v61 = vld [vmem:[#allocation16 + $0x350] sm:$0xff] }
0x127f   :  { %2869 = vmatpush.msrb.mxu2 %v2833_v44 }
0x1280   :  { %2807 = vmatpush.msra.mxu1 %v2745_v56  ;;  %v2823_v56 = vld [vmem:[#allocation16 + $0x310] sm:$0xff] }
0x1281   :  { %2870 = vmatpush.msrb.mxu2 %v2831_v61 }
0x12e9   :  { %v2532_v15 = vpop.f32.mrf.mxu2 }
0x12eb   :  { %v2492_v11 = vpop.f32.mrf.mxu0 }
0x12ec   :  { %v2493_v12 = vadd.f32 %v3154_v10, %v2492_v11  ;;  %v2512_v14 = vpop.f32.mrf.mxu1  ;;  %v2713_v10 = vld [vmem:[#allocation15 + $0x4b8] sm:$0xff] }
0x12ed   :  { %v2729_v11 = vld [vmem:[#allocation15 + $0x538] sm:$0xff]  ;;  %2767 = vmatpush.msra.mxu3 %v2713_v10 }
0x12ee   :  { %v2513_v60 = vadd.f32 %v2512_v14, %v2493_v12  ;;  %v2741_v12 = vld [vmem:[#allocation15 + $0x598] sm:$0xff]  ;;  %2787 = vmatpush.msra.mxu0 %v2729_v11  ;;  %v2740_v14 = vld [vmem:[#allocation15 + $0x590] sm:$0xff] }
0x12ef   :  { %2768 = vmatpush.msra.mxu3 %v2712_v55  ;;  %v2921_v10 = vld [vmem:[#allocation18 + $0x78] sm:$0xff]  ;;  %v2920_v11 = vld [vmem:[#allocation18 + $0x70] sm:$0xff]  ;;  %v2918_v55 = vld [vmem:[#allocation18 + $0x60] sm:$0xff] }
0x12f0   :  { %v2533_v19 = vadd.f32 %v2532_v15, %v2513_v60  ;;  %v2711_v60 = vld [vmem:[#allocation15 + $0x4a8] sm:$0xff] }
0x12f1   :  { %v2727_v15 = vld [vmem:[#allocation15 + $0x528] sm:$0xff]  ;;  %2769 = vmatpush.msra.mxu3 %v2711_v60 }
0x12f2   :  { %v2535_v22 = vmax.f32 %v2533_v19, 0.0  ;;  %v2710_v19 = vld [vmem:[#allocation15 + $0x4a0] sm:$0xff]  ;;  %v2915_v60 = vld [vmem:[#allocation18 + $0x48] sm:$0xff] }
0x12f3   :  { %2770 = vmatpush.msra.mxu3 %v2710_v19  ;;  %v2913_v19 = vld [vmem:[#allocation18 + $0x38] sm:$0xff] }
0x12f4   :  { %2592 = vmatmul.f32.vlgmr.msrb.gmra.mxu3 %v2535_v22  ;;  %2612 = vmatmul.f32.vlgmr.msrb.gmra.mxu0 %v2535_v22  ;;  %v2726_v22 = vld [vmem:[#allocation15 + $0x520] sm:$0xff] }
0x12f5   :  { %2771 = vmatpush.msra.mxu3 %v2709_v23  ;;  %v2911_v23 = vld [vmem:[#allocation18 + $0x28] sm:$0xff] }
0x12f7   :  { %2772 = vmatpush.msra.mxu3 %v2708_v29 }
0x12f9   :  { %2773 = vmatpush.msra.mxu3 %v2707_v33 }
0x12fb   :  { %2774 = vmatpush.msra.mxu3 %v2706_v8 }
0x12fd   :  { %2880 = vmatpush.msrb.mxu3 %v2852_v18  ;;  %v2908_v18 = vld [vmem:[#allocation18 + $0x10] sm:$0xff] }
0x12ff   :  { %2881 = vmatpush.msrb.mxu3 %v2850_v42  ;;  %v2906_v42 = vld [vmem:[#allocation18] sm:$0xff] }
0x1301   :  { %2882 = vmatpush.msrb.mxu3 %v2848_v35  ;;  %v2856_v35 = vperm.slane %v3117_v34, 0 }
0x1303   :  { %2883 = vmatpush.msrb.mxu3 %v2846_v20 }
0x1305   :  { %2884 = vmatpush.msrb.mxu3 %v2844_v49 }
0x1307   :  { %2885 = vmatpush.msrb.mxu3 %v2842_v41 }
0x1309   :  { %2886 = vmatpush.msrb.mxu3 %v2840_v46 }
0x130b   :  { %2887 = vmatpush.msrb.mxu3 %v2838_v50 }
0x130d   :  { %2888 = vmatpush.msrb.mxu3 %v2836_v59 }
0x1371   :  { %v2613_v62 = vpop.f32.mrf.mxu0 }
0x1372   :  { %v2614_v63 = vadd.f32 %v2613_v62, %v2573_v45  ;;  %v2834_v45 = vld [vmem:[#allocation16 + $0x368] sm:$0xff]  ;;  %v2832_v62 = vld [vmem:[#allocation16 + $0x358] sm:$0xff] }
0x1373   :  { %2889 = vmatpush.msrb.mxu3 %v2834_v45 }
0x1374   :  { %v2617_v0 = vmax.f32 %v2614_v63, 0.0  ;;  %v2829_v63 = vld [vmem:[#allocation16 + $0x340] sm:$0xff] }
0x1375   :  { %2890 = vmatpush.msrb.mxu3 %v2832_v62  ;;  %2871 = vmatpush.msrb.mxu2 %v2829_v63 }
0x1376   :  { %v4117_v2 = vadd.f32 %v2617_v0, %v2337_v38  ;;  %v2744_v38 = vld [vmem:[#allocation15 + $0x5b0] sm:$0xff]  ;;  %v2830_v0 = vld [vmem:[#allocation16 + $0x348] sm:$0xff] }
0x1377   :  { %v2593_v3 = vpop.f32.mrf.mxu3  ;;  %2808 = vmatpush.msra.mxu1 %v2744_v38  ;;  %2891 = vmatpush.msrb.mxu3 %v2830_v0  ;;  %v2824_v38 = vld [vmem:[#allocation16 + $0x318] sm:$0xff] }
0x1378   :  { %v2621_v52 = vmax.f32 %v4117_v2, 0.0  ;;  %v2594_v53 = vadd.f32 %v2593_v3, %v2572_v1  ;;  %v2827_v1 = vld [vmem:[#allocation16 + $0x330] sm:$0xff]  ;;  %v2828_v3 = vld [vmem:[#allocation16 + $0x338] sm:$0xff] }
0x1379   :  { %2809 = vmatpush.msra.mxu1 %v2743_v4  ;;  %2872 = vmatpush.msrb.mxu2 %v2827_v1  ;;  %v2821_v4 = vld [vmem:[#allocation16 + $0x300] sm:$0xff]  ;;  %v3158_v2 = vld [vmem:[%s4175_s18] ss:$0 sm:$0xff] }
0x137a   :  { %v2616_v57 = vmax.f32 %v2594_v53, 0.0  ;;  %2696 = vmatmul.f32.vlgmr.msra.gmra.mxu2 %v2621_v52  ;;  %2892 = vmatpush.msrb.mxu3 %v2828_v3  ;;  %v2825_v53 = vld [vmem:[#allocation16 + $0x320] sm:$0xff] }
0x137b   :  { %2810 = vmatpush.msra.mxu1 %v2742_v9  ;;  %2873 = vmatpush.msrb.mxu2 %v2825_v53  ;;  %v2822_v9 = vld [vmem:[#allocation16 + $0x308] sm:$0xff] }
0x137c   :  { %v4124_v5 = vadd.f32 %v2616_v57, %v2336_v16  ;;  %v2728_v16 = vld [vmem:[#allocation15 + $0x530] sm:$0xff]  ;;  %v2826_v57 = vld [vmem:[#allocation16 + $0x328] sm:$0xff] }
0x137d   :  { %2811 = vmatpush.msra.mxu1 %v2741_v12  ;;  %2788 = vmatpush.msra.mxu0 %v2728_v16  ;;  %v2919_v12 = vld [vmem:[#allocation18 + $0x68] sm:$0xff]  ;;  %v2917_v16 = vld [vmem:[#allocation18 + $0x58] sm:$0xff] }
0x137e   :  { %v2620_v6 = vmax.f32 %v4124_v5, 0.0  ;;  %2893 = vmatpush.msrb.mxu3 %v2826_v57  ;;  %2874 = vmatpush.msrb.mxu2 %v2823_v56  ;;  %v3157_v5 = vld [vmem:[%s4175_s18] ss:$0 sm:$0xff] }
0x137f   :  { %2812 = vmatpush.msra.mxu1 %v2740_v14  ;;  %2789 = vmatpush.msra.mxu0 %v2727_v15  ;;  %v2916_v14 = vld [vmem:[#allocation18 + $0x50] sm:$0xff]  ;;  %v2914_v15 = vld [vmem:[#allocation18 + $0x40] sm:$0xff] }
0x1380   :  { %2676 = vmatmul.f32.vlgmr.msrb.gmra.mxu1 %v2620_v6  ;;  %2894 = vmatpush.msrb.mxu3 %v2824_v38 }
0x1381   :  { %2790 = vmatpush.msra.mxu0 %v2726_v22  ;;  %2813 = vmatpush.msra.mxu1 %v2739_v25  ;;  %v2912_v22 = vld [vmem:[#allocation18 + $0x30] sm:$0xff] }
0x1382   :  { %2875 = vmatpush.msrb.mxu2 %v2821_v4  ;;  %2895 = vmatpush.msrb.mxu3 %v2822_v9 }
0x1383   :  { %2791 = vmatpush.msra.mxu0 %v2725_v26  ;;  %2814 = vmatpush.msra.mxu1 %v2738_v28  ;;  %v3156_v26 = vld [vmem:[%s4171_s14 + $0x3] ss:$0 sm:$0xff] }
0x1385   :  { %2792 = vmatpush.msra.mxu0 %v2724_v30  ;;  %2967 = vmatpush.msrb.mxu1 %v2921_v10 }
0x1387   :  { %2793 = vmatpush.msra.mxu0 %v2723_v7  ;;  %2968 = vmatpush.msrb.mxu1 %v2920_v11 }
0x1389   :  { %2794 = vmatpush.msra.mxu0 %v2722_v17  ;;  %2969 = vmatpush.msrb.mxu1 %v2919_v12  ;;  %v2910_v17 = vld [vmem:[#allocation18 + $0x20] sm:$0xff] }
0x138b   :  { %2926 = vmatpush.msrb.mxu0 %v2921_v10  ;;  %2970 = vmatpush.msrb.mxu1 %v2918_v55 }
0x138d   :  { %2927 = vmatpush.msrb.mxu0 %v2920_v11  ;;  %2971 = vmatpush.msrb.mxu1 %v2917_v16 }
0x138f   :  { %2928 = vmatpush.msrb.mxu0 %v2919_v12  ;;  %2972 = vmatpush.msrb.mxu1 %v2916_v14 }
0x1391   :  { %2929 = vmatpush.msrb.mxu0 %v2918_v55  ;;  %2973 = vmatpush.msrb.mxu1 %v2915_v60 }
0x1393   :  { %2930 = vmatpush.msrb.mxu0 %v2917_v16  ;;  %2974 = vmatpush.msrb.mxu1 %v2914_v15 }
0x1395   :  { %2931 = vmatpush.msrb.mxu0 %v2916_v14  ;;  %2975 = vmatpush.msrb.mxu1 %v2913_v19 }
0x1397   :  { %2932 = vmatpush.msrb.mxu0 %v2915_v60  ;;  %2976 = vmatpush.msrb.mxu1 %v2912_v22 }
0x1399   :  { %2933 = vmatpush.msrb.mxu0 %v2914_v15  ;;  %2977 = vmatpush.msrb.mxu1 %v2911_v23 }
0x139b   :  { %2934 = vmatpush.msrb.mxu0 %v2913_v19  ;;  %2978 = vmatpush.msrb.mxu1 %v2910_v17 }
0x139d   :  { %2935 = vmatpush.msrb.mxu0 %v2912_v22  ;;  %2979 = vmatpush.msrb.mxu1 %v2909_v24 }
0x139f   :  { %2936 = vmatpush.msrb.mxu0 %v2911_v23  ;;  %2980 = vmatpush.msrb.mxu1 %v2908_v18 }
0x13a1   :  { %2937 = vmatpush.msrb.mxu0 %v2910_v17  ;;  %2981 = vmatpush.msrb.mxu1 %v2907_v32 }
0x13a3   :  { %2938 = vmatpush.msrb.mxu0 %v2909_v24  ;;  %2982 = vmatpush.msrb.mxu1 %v2906_v42 }
0x13a5   :  { %2939 = vmatpush.msrb.mxu0 %v2908_v18 }
0x13a7   :  { %2940 = vmatpush.msrb.mxu0 %v2907_v32 }
0x13a9   :  { %2941 = vmatpush.msrb.mxu0 %v2906_v42 }
0x13fd   :  { %v2677_v51 = vpop.f32.mrf.mxu1  ;;  %v2697_v39 = vpop.f32.mrf.mxu2 }
0x13fe   :  { %v2678_v54 = vadd.f32 %v3155_v48, %v2677_v51 }
0x1400   :  { %v2698_v58 = vadd.f32 %v2697_v39, %v2678_v54 }
0x1402   :  { %v2700_v13 = vmax.f32 %v2698_v58, 0.0 }
0x1404   :  { %2701 = vst [vmem:[#allocation3 + $0x8] sm:$0xff] %v2700_v13  ;;  %2815 = vmatmul.f32.vlgmr.msra.gmra.mxu1 %v2700_v13 }
0x140b   :  { %v2702_v21 = vld [vmem:[#allocation3 + $0x4] sm:$0xff] }
0x140c   :  { %v2703_v27 = vld [vmem:[#allocation3 + $0x6] sm:$0xff]  ;;  %2775 = vmatmul.f32.vlgmr.msra.gmra.mxu3 %v2702_v21 }
0x140d   :  { %2795 = vmatmul.f32.vlgmr.msra.gmra.mxu0 %v2703_v27 }
0x1481   :  { %v2816_v33 = vpop.f32.mrf.mxu1 }
0x148a   :  { %v2796_v30 = vpop.f32.mrf.mxu0 }
0x148f   :  { %v2776_v25 = vpop.f32.mrf.mxu3 }
0x1490   :  { %v2777_v29 = vadd.f32 %v3156_v26, %v2776_v25 }
0x1492   :  { %v2797_v28 = vadd.f32 %v2796_v30, %v2777_v29 }
0x1494   :  { %v2817_v7 = vadd.f32 %v2816_v33, %v2797_v28 }
0x1496   :  { %v2819_v8 = vmax.f32 %v2817_v7, 0.0 }
0x1498   :  { %2876 = vmatmul.f32.vlgmr.msrb.gmra.mxu2 %v2819_v8  ;;  %2896 = vmatmul.f32.vlgmr.msrb.gmra.mxu3 %v2819_v8 }
0x151b   :  { %v2877_v20 = vpop.f32.mrf.mxu2  ;;  %v2897_v37 = vpop.f32.mrf.mxu3 }
0x151c   :  { %v2878_v49 = vadd.f32 %v2877_v20, %v2856_v35  ;;  %v2898_v40 = vadd.f32 %v2897_v37, %v2857_v36 }
0x151e   :  { %v2900_v41 = vmax.f32 %v2878_v49, 0.0  ;;  %v2901_v43 = vmax.f32 %v2898_v40, 0.0 }
0x1520   :  { %v2902_v46 = vadd.f32 %v2900_v41, %v2620_v6  ;;  %v2903_v47 = vadd.f32 %v2901_v43, %v2621_v52 }
0x1522   :  { %v2904_v48 = vmax.f32 %v2902_v46, 0.0  ;;  %v2905_v50 = vmax.f32 %v2903_v47, 0.0 }
0x1524   :  { %2942 = vmatmul.f32.vlgmr.msrb.gmra.mxu0 %v2904_v48  ;;  %2983 = vmatmul.f32.vlgmr.msrb.gmra.mxu1 %v2905_v50 }
0x15a1   :  { %v2943_v52 = vpop.f32.mrf.mxu0  ;;  %v2984_v6 = vpop.f32.mrf.mxu1 }
0x15a2   :  { %v2944_v51 = vadd.f32 %v3157_v5, %v2943_v52  ;;  %v2985_v54 = vadd.f32 %v3158_v2, %v2984_v6 }
0x15a4   :  { %2946 = vst [vmem:[#allocation19] sm:$0xff] %v2944_v51 }
0x15a5   :  { %2987 = vst [vmem:[#allocation19 + $0x8] sm:$0xff] %v2985_v54 }
0x15a6   :  { %3000 = dma.vmem_to_hbm [thread:$0]  %s2993_s13, 256, %s2995_s27, [#allocation6], %s3555_s24, %s3555_s24, %s3556_s2  }
0x15a7   :  { %3546 = dma.done.wait [#allocation6], 256  }
0x15a8   :  { %3547 = vsyncadd [#allocation6], 4294967040 }
0x15a9   :  { %3548 = dma.done.wait [#allocation21], 16  }
0x15aa   :  { %3549 = vsyncadd [#allocation21], 4294967280 }
0x15ab   :  { %3020 = vsyncpa [#allocation5], 1 }
0x15ac   :  { %3021 = vsyncpa [#allocation8], 1 }
0x15ad   :  { %3022 = vsyncpa [#allocation11], 1 }
0x15ae   :  { %3023 = vsyncpa [#allocation14], 1 }
0x15af   :  { %3024 = vsyncpa [#allocation17], 1 }
0x15b0   :  { %3025 = vsyncpa [#allocation6], 1 }
0x15b1   :  { %3026 = vsyncpa [#allocation21], 1 }

</bundles_post_ra>
